<compile_context>
chip_gen: v7x
topology: tpu7x:2x2x1
jax: 0.10.0
libtpu: 0.0.40
codegen_flags: <defaults>
</compile_context>

<pallas_src>
import jax
import jax.numpy as jnp
from jax import lax
from jax.experimental import pallas as pl
from jax.experimental.pallas import tpu as pltpu

B = 8            # batch
T_IN = 20        # "rows" per sample in the raw input
F_IN = 3         # features per row (last row is `ctr`)
SEQ = T_IN * F_IN   # 60 — LSTM sequence length after view(-1, 60)
H = 64           # LSTM hidden size
UNROLL = 7       # combined wavefront steps per fori iteration
MAIN_ITERS = 8   # 8 * 7 = 56 combined steps in the fori loop (t = 1..56)


def _cell(gates, c):
    # Gate columns host-permuted to [i, f, o, g]:
    #   * one contiguous sigmoid slab (B, 3H) — tanh form keeps all
    #     transcendental work in the EUP slot (no f32 divide on the chain)
    #   * one tanh slab (B, H) for the candidate gate
    s = 0.5 * jnp.tanh(0.5 * gates[:, :3 * H]) + 0.5
    g = jnp.tanh(gates[:, 3 * H:])
    i_g = s[:, 0:H]
    f_g = s[:, H:2 * H]
    o_g = s[:, 2 * H:3 * H]
    c_new = f_g * c + i_g * g
    h_new = o_g * jnp.tanh(c_new)
    return h_new, c_new


def net_kernel(x_ref, ctr_ref,
               w_ih0_ref, b0_ref, w_hh0_ref,
               w_ih1_ref, b1_ref, w_hh1_ref,
               w1_ref, bf1_ref,
               w2a_ref, w2b_ref, bf2_ref,
               w3_ref, bf3_ref,
               w4_ref, bf4_ref,
               o_ref,
               gates_ref):
    # x_ref: (SEQ*B, 1) time-major flattened sequence (row t*B + b == x[b, t]).
    # gates_ref: (SEQ*B, 4H) scratch holding all layer-0 gate inputs.

    # ---- MLP side branch, independent of the LSTM: compute up front so it is
    # fully hidden under the recurrence. --------------------------------------
    ctr_feature = (jnp.dot(ctr_ref[...], w4_ref[...],
                           preferred_element_type=jnp.float32) + bf4_ref[...])
    ctr_act = jnp.maximum(ctr_feature, 0.0)        # == relu(cat)[:, 64:]

    # ---- Layer-0 input projection hoisted out of the loop (one broadcast). --
    # gates0_in[t*B + b, :] = x[t, b] * W_ih0 + (b_ih0 + b_hh0)
    gates_ref[...] = x_ref[...] * w_ih0_ref[...] + b0_ref[...]

    # Hoist the layer-1 bias broadcast (JAX does not CSE broadcast_in_dim).
    b1_b = jnp.broadcast_to(b1_ref[...], (B, 4 * H))

    def l0_step(r, h0, c0):
        g = gates_ref[pl.ds(r, B), :] + jnp.dot(
            h0, w_hh0_ref[...], preferred_element_type=jnp.float32)
        return _cell(g, c0)

    def l1_step(h0_in, h1, c1):
        g = (jnp.dot(h0_in, w_ih1_ref[...], preferred_element_type=jnp.float32)
             + jnp.dot(h1, w_hh1_ref[...], preferred_element_type=jnp.float32)
             + b1_b)
        return _cell(g, c1)

    zeros = jnp.zeros((B, H), jnp.float32)

    # ---- Prologue: layer-0 step 0. ------------------------------------------
    h0, c0 = l0_step(0, zeros, zeros)
    h1, c1 = zeros, zeros

    # ---- Wavefront recurrence: combined step t = layer-0 cell t + layer-1
    # cell t-1.  Both cells read only the carried state, so their MXU pushes
    # and EUP activations interleave within one iteration. ---------------------
    def body(i, carry):
        h0, c0, h1, c1 = carry
        for j in range(UNROLL):                      # manual unroll
            r = pl.multiple_of((1 + i * UNROLL + j) * B, B)
            h0_new, c0_new = l0_step(r, h0, c0)
            h1, c1 = l1_step(h0, h1, c1)             # consumes h0_{t-1}
            h0, c0 = h0_new, c0_new
        return h0, c0, h1, c1

    h0, c0, h1, c1 = lax.fori_loop(0, MAIN_ITERS, body, (h0, c0, h1, c1))

    # ---- Epilogue: remaining combined steps, then the final layer-1 step. ---
    for t in range(1 + MAIN_ITERS * UNROLL, SEQ):
        h0_new, c0_new = l0_step(t * B, h0, c0)
        h1, c1 = l1_step(h0, h1, c1)
        h0, c0 = h0_new, c0_new
    h1, c1 = l1_step(h0, h1, c1)                     # layer-1 step SEQ-1

    # ---- MLP head (concat eliminated via row-split fc2 weights). ------------
    xr = jnp.maximum(h1, 0.0)                                        # relu(lstm_out)
    fc1 = jnp.dot(xr, w1_ref[...], preferred_element_type=jnp.float32) + bf1_ref[...]
    fc2 = (jnp.dot(jnp.maximum(fc1, 0.0), w2a_ref[...],
                   preferred_element_type=jnp.float32)
           + jnp.dot(ctr_act, w2b_ref[...],
                     preferred_element_type=jnp.float32)
           + bf2_ref[...])
    fc3 = (jnp.dot(jnp.maximum(fc2, 0.0), w3_ref[...],
                   preferred_element_type=jnp.float32) + bf3_ref[...])
    # softmax over dim=1 (3 classes)
    m = jnp.max(fc3, axis=1, keepdims=True)
    e = jnp.exp(fc3 - m)
    o_ref[...] = e / jnp.sum(e, axis=1, keepdims=True)


def net_forward(x, kernel_params):
    # x: (B, 20, 3) float32
    ctr = x[:, -1]                                      # (B, 3)
    seq = x.reshape(B, SEQ)                             # row-major, same as torch.view
    x_seq = jnp.transpose(seq).reshape(SEQ * B, 1)      # time-major, flattened (SEQ*B, 1)

    inputs = [x_seq, ctr] + list(kernel_params)
    vmem = pl.BlockSpec(memory_space=pltpu.MemorySpace.VMEM)
    return pl.pallas_call(
        net_kernel,
        out_shape=jax.ShapeDtypeStruct((B, 3), jnp.float32),
        in_specs=[vmem] * len(inputs),
        out_specs=vmem,
        scratch_shapes=[
            pltpu.VMEM((SEQ * B, 4 * H), jnp.float32),   # layer-0 gate inputs
        ],
    )(*inputs)


# ---------------- deterministic parameter construction (PyTorch layouts) ----
def make_torch_params(key):
    ks = jax.random.split(key, 16)
    u = lambda k, shape, s=0.2: jax.random.uniform(k, shape, jnp.float32, -s, s)
    w_ih_l0 = u(ks[0], (4 * H, 1));   w_hh_l0 = u(ks[1], (4 * H, H))
    b_ih_l0 = u(ks[2], (4 * H,));     b_hh_l0 = u(ks[3], (4 * H,))
    w_ih_l1 = u(ks[4], (4 * H, H));   w_hh_l1 = u(ks[5], (4 * H, H))
    b_ih_l1 = u(ks[6], (4 * H,));     b_hh_l1 = u(ks[7], (4 * H,))
    fc1_w = u(ks[8], (64, 64));       fc1_b = u(ks[9], (64,))
    fc2_w = u(ks[10], (64, 128));     fc2_b = u(ks[11], (64,))
    fc3_w = u(ks[12], (3, 64));       fc3_b = u(ks[13], (3,))
    fc4_w = u(ks[14], (64, 3));       fc4_b = u(ks[15], (64,))
    return (w_ih_l0, w_hh_l0, b_ih_l0, b_hh_l0,
            w_ih_l1, w_hh_l1, b_ih_l1, b_hh_l1,
            fc1_w, fc1_b, fc2_w, fc2_b, fc3_w, fc3_b, fc4_w, fc4_b)


def _perm_gates(w):
    # Permute the 4H gate axis from PyTorch order [i, f, g, o] -> [i, f, o, g]
    # so the kernel applies sigmoid to one contiguous 3H slab and tanh to the
    # trailing H slab.
    return jnp.concatenate([w[..., :2 * H], w[..., 3 * H:], w[..., 2 * H:3 * H]],
                           axis=-1)


def to_kernel_params(tp):
    (w_ih_l0, w_hh_l0, b_ih_l0, b_hh_l0,
     w_ih_l1, w_hh_l1, b_ih_l1, b_hh_l1,
     fc1_w, fc1_b, fc2_w, fc2_b, fc3_w, fc3_b, fc4_w, fc4_b) = tp
    w2_t = fc2_w.T                                   # (128, 64)
    return (
        _perm_gates(w_ih_l0.T),                                   # (1, 4H)
        _perm_gates((b_ih_l0 + b_hh_l0).reshape(1, 4 * H)),
        _perm_gates(w_hh_l0.T),                                   # (H, 4H)
        _perm_gates(w_ih_l1.T),                                   # (H, 4H)
        _perm_gates((b_ih_l1 + b_hh_l1).reshape(1, 4 * H)),
        _perm_gates(w_hh_l1.T),                                   # (H, 4H)
        fc1_w.T, fc1_b.reshape(1, 64),
        w2_t[:64], w2_t[64:], fc2_b.reshape(1, 64),  # fc2 split: [fc1 rows | ctr rows]
        fc3_w.T, fc3_b.reshape(1, 3),
        fc4_w.T, fc4_b.reshape(1, 64),
    )


# ---------------- pure-JAX reference (mirrors the PyTorch forward) ----------
def net_reference(x, tp):
    (w_ih_l0, w_hh_l0, b_ih_l0, b_hh_l0,
     w_ih_l1, w_hh_l1, b_ih_l1, b_hh_l1,
     fc1_w, fc1_b, fc2_w, fc2_b, fc3_w, fc3_b, fc4_w, fc4_b) = tp
    ctr = x[:, -1]
    ctr_feature = ctr @ fc4_w.T + fc4_b
    seq = x.reshape(-1, SEQ)
    bsz = seq.shape[0]
    xs = seq[:, :, None]

    def lstm_layer(inp, w_ih, w_hh, b_ih, b_hh):
        def step(carry, x_t):
            h, c = carry
            g = x_t @ w_ih.T + h @ w_hh.T + b_ih + b_hh
            i = jax.nn.sigmoid(g[:, :H]); f = jax.nn.sigmoid(g[:, H:2 * H])
            gg = jnp.tanh(g[:, 2 * H:3 * H]); o = jax.nn.sigmoid(g[:, 3 * H:])
            c = f * c + i * gg
            h = o * jnp.tanh(c)
            return (h, c), h
        init = (jnp.zeros((bsz, H)), jnp.zeros((bsz, H)))
        _, hs = lax.scan(step, init, jnp.swapaxes(inp, 0, 1))
        return jnp.swapaxes(hs, 0, 1)

    out0 = lstm_layer(xs, w_ih_l0, w_hh_l0, b_ih_l0, b_hh_l0)
    out1 = lstm_layer(out0, w_ih_l1, w_hh_l1, b_ih_l1, b_hh_l1)
    lstm_out = out1[:, -1, :]
    x1 = jax.nn.relu(lstm_out) @ fc1_w.T + fc1_b
    cat = jnp.concatenate([x1, ctr_feature], axis=1)
    x2 = jax.nn.relu(cat) @ fc2_w.T + fc2_b
    x3 = jax.nn.relu(x2) @ fc3_w.T + fc3_b
    return jax.nn.softmax(x3, axis=1)


if __name__ == "__main__":
    key = jax.random.PRNGKey(0)
    k_params, k_x = jax.random.split(key)
    torch_params = make_torch_params(k_params)
    kernel_params = to_kernel_params(torch_params)

    x = jax.random.normal(k_x, (B, T_IN, F_IN), jnp.float32)

    out = jax.jit(net_forward)(x, kernel_params)
    out = jax.block_until_ready(out)

    ref = net_reference(x, torch_params)
    assert out.shape == (B, 3)
    # slightly looser atol than before: the tanh-form sigmoid is mathematically
    # identical but rounds differently at f32 over the 60-step recurrence.
    assert jnp.allclose(out, ref, rtol=2e-4, atol=1e-4), (out, ref)
    assert jnp.allclose(jnp.sum(out, axis=1), 1.0, atol=1e-5)

    print("KERNEL_OK")
</pallas_src>

<mosaic_0001>
module attributes {stable_mosaic.version = 11 : i64} {
  func.func @net_kernel(%arg0: memref<480x1xf32, #tpu.memory_space<vmem>>, %arg1: memref<8x3xf32, #tpu.memory_space<vmem>>, %arg2: memref<1x256xf32, #tpu.memory_space<vmem>>, %arg3: memref<1x256xf32, #tpu.memory_space<vmem>>, %arg4: memref<64x256xf32, #tpu.memory_space<vmem>>, %arg5: memref<64x256xf32, #tpu.memory_space<vmem>>, %arg6: memref<1x256xf32, #tpu.memory_space<vmem>>, %arg7: memref<64x256xf32, #tpu.memory_space<vmem>>, %arg8: memref<64x64xf32, #tpu.memory_space<vmem>>, %arg9: memref<1x64xf32, #tpu.memory_space<vmem>>, %arg10: memref<64x64xf32, #tpu.memory_space<vmem>>, %arg11: memref<64x64xf32, #tpu.memory_space<vmem>>, %arg12: memref<1x64xf32, #tpu.memory_space<vmem>>, %arg13: memref<64x3xf32, #tpu.memory_space<vmem>>, %arg14: memref<1x3xf32, #tpu.memory_space<vmem>>, %arg15: memref<3x64xf32, #tpu.memory_space<vmem>>, %arg16: memref<1x64xf32, #tpu.memory_space<vmem>>, %arg17: memref<8x3xf32, #tpu.memory_space<vmem>>, %arg18: memref<480x256xf32, #tpu.memory_space<vmem>>) attributes {dimension_semantics = [], scalar_prefetch = 0 : i64, scratch_operands = 1 : i64, tpu.core_type = #tpu.core_type<tc>} {
    %c0 = arith.constant 0 : index
    %c0_0 = arith.constant 0 : index
    %0 = vector.load %arg1[%c0, %c0_0] : memref<8x3xf32, #tpu.memory_space<vmem>>, vector<8x3xf32>
    %c0_1 = arith.constant 0 : index
    %c0_2 = arith.constant 0 : index
    %1 = vector.load %arg15[%c0_1, %c0_2] : memref<3x64xf32, #tpu.memory_space<vmem>>, vector<3x64xf32>
    %cst = arith.constant dense<0.000000e+00> : vector<8x64xf32>
    %2 = tpu.matmul %0, %1, %cst {dimension_numbers = #tpu.dot_dimension_numbers<[1], [0], [0], [1], [0, 0, 1, 1], [], []>} : vector<8x3xf32>, vector<3x64xf32>, vector<8x64xf32> -> vector<8x64xf32>
    %c0_3 = arith.constant 0 : index
    %c0_4 = arith.constant 0 : index
    %3 = vector.load %arg16[%c0_3, %c0_4] : memref<1x64xf32, #tpu.memory_space<vmem>>, vector<1x64xf32>
    %4 = vector.broadcast %3 : vector<1x64xf32> to vector<8x64xf32>
    %5 = arith.addf %2, %4 : vector<8x64xf32>
    %cst_5 = arith.constant 0.000000e+00 : f32
    %6 = vector.broadcast %cst_5 : f32 to vector<8x64xf32>
    %7 = arith.maximumf %5, %6 : vector<8x64xf32>
    %c0_6 = arith.constant 0 : index
    %c0_7 = arith.constant 0 : index
    %8 = vector.load %arg0[%c0_6, %c0_7] : memref<480x1xf32, #tpu.memory_space<vmem>>, vector<480x1xf32>
    %c0_8 = arith.constant 0 : index
    %c0_9 = arith.constant 0 : index
    %9 = vector.load %arg2[%c0_8, %c0_9] : memref<1x256xf32, #tpu.memory_space<vmem>>, vector<1x256xf32>
    %10 = vector.broadcast %8 : vector<480x1xf32> to vector<480x256xf32>
    %11 = vector.broadcast %9 : vector<1x256xf32> to vector<480x256xf32>
    %12 = arith.mulf %10, %11 : vector<480x256xf32>
    %c0_10 = arith.constant 0 : index
    %c0_11 = arith.constant 0 : index
    %13 = vector.load %arg3[%c0_10, %c0_11] : memref<1x256xf32, #tpu.memory_space<vmem>>, vector<1x256xf32>
    %14 = vector.broadcast %13 : vector<1x256xf32> to vector<480x256xf32>
    %15 = arith.addf %12, %14 : vector<480x256xf32>
    %c0_12 = arith.constant 0 : index
    %c0_13 = arith.constant 0 : index
    %16 = vector.load %arg18[%c0_12, %c0_13] : memref<480x256xf32, #tpu.memory_space<vmem>>, vector<480x256xf32>
    tpu.vector_store %arg18[%c0_12, %c0_13], %15 {strides = array<i32>} : memref<480x256xf32, #tpu.memory_space<vmem>>, vector<480x256xf32>,
    %c0_14 = arith.constant 0 : index
    %c0_15 = arith.constant 0 : index
    %17 = vector.load %arg6[%c0_14, %c0_15] : memref<1x256xf32, #tpu.memory_space<vmem>>, vector<1x256xf32>
    %18 = vector.shape_cast %17 : vector<1x256xf32> to vector<1x256xf32>
    %19 = vector.broadcast %18 : vector<1x256xf32> to vector<8x256xf32>
    %cst_16 = arith.constant 0.000000e+00 : f32
    %20 = vector.broadcast %cst_16 : f32 to vector<8x64xf32>
    %c0_17 = arith.constant 0 : index
    %c0_18 = arith.constant 0 : index
    %21 = vector.load %arg18[%c0_17, %c0_18] : memref<480x256xf32, #tpu.memory_space<vmem>>, vector<8x256xf32>
    %c0_19 = arith.constant 0 : index
    %c0_20 = arith.constant 0 : index
    %22 = vector.load %arg4[%c0_19, %c0_20] : memref<64x256xf32, #tpu.memory_space<vmem>>, vector<64x256xf32>
    %cst_21 = arith.constant dense<0.000000e+00> : vector<8x256xf32>
    %23 = tpu.matmul %20, %22, %cst_21 {dimension_numbers = #tpu.dot_dimension_numbers<[1], [0], [0], [1], [0, 0, 1, 1], [], []>} : vector<8x64xf32>, vector<64x256xf32>, vector<8x256xf32> -> vector<8x256xf32>
    %24 = arith.addf %21, %23 : vector<8x256xf32>
    %25 = vector.extract_strided_slice %24 {offsets = [0, 0], sizes = [8, 192], strides = [1, 1]} : vector<8x256xf32> to vector<8x192xf32>
    %cst_22 = arith.constant 5.000000e-01 : f32
    %26 = vector.broadcast %cst_22 : f32 to vector<8x192xf32>
    %27 = arith.mulf %26, %25 : vector<8x192xf32>
    %28 = math.tanh %27 : vector<8x192xf32>
    %cst_23 = arith.constant 5.000000e-01 : f32
    %29 = vector.broadcast %cst_23 : f32 to vector<8x192xf32>
    %30 = arith.mulf %29, %28 : vector<8x192xf32>
    %cst_24 = arith.constant 5.000000e-01 : f32
    %31 = vector.broadcast %cst_24 : f32 to vector<8x192xf32>
    %32 = arith.addf %30, %31 : vector<8x192xf32>
    %33 = vector.extract_strided_slice %24 {offsets = [0, 192], sizes = [8, 64], strides = [1, 1]} : vector<8x256xf32> to vector<8x64xf32>
    %34 = math.tanh %33 : vector<8x64xf32>
    %35 = vector.extract_strided_slice %32 {offsets = [0, 0], sizes = [8, 64], strides = [1, 1]} : vector<8x192xf32> to vector<8x64xf32>
    %36 = vector.extract_strided_slice %32 {offsets = [0, 64], sizes = [8, 64], strides = [1, 1]} : vector<8x192xf32> to vector<8x64xf32>
    %37 = vector.extract_strided_slice %32 {offsets = [0, 128], sizes = [8, 64], strides = [1, 1]} : vector<8x192xf32> to vector<8x64xf32>
    %38 = arith.mulf %36, %20 : vector<8x64xf32>
    %39 = arith.mulf %35, %34 : vector<8x64xf32>
    %40 = arith.addf %38, %39 : vector<8x64xf32>
    %41 = math.tanh %40 : vector<8x64xf32>
    %42 = arith.mulf %37, %41 : vector<8x64xf32>
    %c0_i32 = arith.constant 0 : i32
    %c8_i32 = arith.constant 8 : i32
    %43 = arith.addi %c0_i32, %c8_i32 : i32
    %c1_i32 = arith.constant 1 : i32
    %44:4 = scf.for %arg19 = %c0_i32 to %43 step %c1_i32 iter_args(%arg20 = %42, %arg21 = %40, %arg22 = %20, %arg23 = %20) -> (vector<8x64xf32>, vector<8x64xf32>, vector<8x64xf32>, vector<8x64xf32>)  : i32 {
      %c7_i32 = arith.constant 7 : i32
      %241 = arith.muli %arg19, %c7_i32 : i32
      %c1_i32_108 = arith.constant 1 : i32
      %242 = arith.addi %c1_i32_108, %241 : i32
      %c0_i32_109 = arith.constant 0 : i32
      %243 = arith.addi %242, %c0_i32_109 : i32
      %c8_i32_110 = arith.constant 8 : i32
      %244 = arith.muli %243, %c8_i32_110 : i32
      %245 = tpu.assume_multiple %244, 8 : i32
      %246 = arith.index_cast %245 : i32 to index
      %c0_111 = arith.constant 0 : index
      %247 = vector.load %arg18[%246, %c0_111] : memref<480x256xf32, #tpu.memory_space<vmem>>, vector<8x256xf32>
      %c0_112 = arith.constant 0 : index
      %c0_113 = arith.constant 0 : index
      %248 = vector.load %arg4[%c0_112, %c0_113] : memref<64x256xf32, #tpu.memory_space<vmem>>, vector<64x256xf32>
      %cst_114 = arith.constant dense<0.000000e+00> : vector<8x256xf32>
      %249 = tpu.matmul %arg20, %248, %cst_114 {dimension_numbers = #tpu.dot_dimension_numbers<[1], [0], [0], [1], [0, 0, 1, 1], [], []>} : vector<8x64xf32>, vector<64x256xf32>, vector<8x256xf32> -> vector<8x256xf32>
      %250 = arith.addf %247, %249 : vector<8x256xf32>
      %251 = vector.extract_strided_slice %250 {offsets = [0, 0], sizes = [8, 192], strides = [1, 1]} : vector<8x256xf32> to vector<8x192xf32>
      %cst_115 = arith.constant 5.000000e-01 : f32
      %252 = vector.broadcast %cst_115 : f32 to vector<8x192xf32>
      %253 = arith.mulf %252, %251 : vector<8x192xf32>
      %254 = math.tanh %253 : vector<8x192xf32>
      %cst_116 = arith.constant 5.000000e-01 : f32
      %255 = vector.broadcast %cst_116 : f32 to vector<8x192xf32>
      %256 = arith.mulf %255, %254 : vector<8x192xf32>
      %cst_117 = arith.constant 5.000000e-01 : f32
      %257 = vector.broadcast %cst_117 : f32 to vector<8x192xf32>
      %258 = arith.addf %256, %257 : vector<8x192xf32>
      %259 = vector.extract_strided_slice %250 {offsets = [0, 192], sizes = [8, 64], strides = [1, 1]} : vector<8x256xf32> to vector<8x64xf32>
      %260 = math.tanh %259 : vector<8x64xf32>
      %261 = vector.extract_strided_slice %258 {offsets = [0, 0], sizes = [8, 64], strides = [1, 1]} : vector<8x192xf32> to vector<8x64xf32>
      %262 = vector.extract_strided_slice %258 {offsets = [0, 64], sizes = [8, 64], strides = [1, 1]} : vector<8x192xf32> to vector<8x64xf32>
      %263 = vector.extract_strided_slice %258 {offsets = [0, 128], sizes = [8, 64], strides = [1, 1]} : vector<8x192xf32> to vector<8x64xf32>
      %264 = arith.mulf %262, %arg21 : vector<8x64xf32>
      %265 = arith.mulf %261, %260 : vector<8x64xf32>
      %266 = arith.addf %264, %265 : vector<8x64xf32>
      %267 = math.tanh %266 : vector<8x64xf32>
      %268 = arith.mulf %263, %267 : vector<8x64xf32>
      %c0_118 = arith.constant 0 : index
      %c0_119 = arith.constant 0 : index
      %269 = vector.load %arg5[%c0_118, %c0_119] : memref<64x256xf32, #tpu.memory_space<vmem>>, vector<64x256xf32>
      %cst_120 = arith.constant dense<0.000000e+00> : vector<8x256xf32>
      %270 = tpu.matmul %arg20, %269, %cst_120 {dimension_numbers = #tpu.dot_dimension_numbers<[1], [0], [0], [1], [0, 0, 1, 1], [], []>} : vector<8x64xf32>, vector<64x256xf32>, vector<8x256xf32> -> vector<8x256xf32>
      %c0_121 = arith.constant 0 : index
      %c0_122 = arith.constant 0 : index
      %271 = vector.load %arg7[%c0_121, %c0_122] : memref<64x256xf32, #tpu.memory_space<vmem>>, vector<64x256xf32>
      %cst_123 = arith.constant dense<0.000000e+00> : vector<8x256xf32>
      %272 = tpu.matmul %arg22, %271, %cst_123 {dimension_numbers = #tpu.dot_dimension_numbers<[1], [0], [0], [1], [0, 0, 1, 1], [], []>} : vector<8x64xf32>, vector<64x256xf32>, vector<8x256xf32> -> vector<8x256xf32>
      %273 = arith.addf %270, %272 : vector<8x256xf32>
      %274 = arith.addf %273, %19 : vector<8x256xf32>
      %275 = vector.extract_strided_slice %274 {offsets = [0, 0], sizes = [8, 192], strides = [1, 1]} : vector<8x256xf32> to vector<8x192xf32>
      %cst_124 = arith.constant 5.000000e-01 : f32
      %276 = vector.broadcast %cst_124 : f32 to vector<8x192xf32>
      %277 = arith.mulf %276, %275 : vector<8x192xf32>
      %278 = math.tanh %277 : vector<8x192xf32>
      %cst_125 = arith.constant 5.000000e-01 : f32
      %279 = vector.broadcast %cst_125 : f32 to vector<8x192xf32>
      %280 = arith.mulf %279, %278 : vector<8x192xf32>
      %cst_126 = arith.constant 5.000000e-01 : f32
      %281 = vector.broadcast %cst_126 : f32 to vector<8x192xf32>
      %282 = arith.addf %280, %281 : vector<8x192xf32>
      %283 = vector.extract_strided_slice %274 {offsets = [0, 192], sizes = [8, 64], strides = [1, 1]} : vector<8x256xf32> to vector<8x64xf32>
      %284 = math.tanh %283 : vector<8x64xf32>
      %285 = vector.extract_strided_slice %282 {offsets = [0, 0], sizes = [8, 64], strides = [1, 1]} : vector<8x192xf32> to vector<8x64xf32>
      %286 = vector.extract_strided_slice %282 {offsets = [0, 64], sizes = [8, 64], strides = [1, 1]} : vector<8x192xf32> to vector<8x64xf32>
      %287 = vector.extract_strided_slice %282 {offsets = [0, 128], sizes = [8, 64], strides = [1, 1]} : vector<8x192xf32> to vector<8x64xf32>
      %288 = arith.mulf %286, %arg23 : vector<8x64xf32>
      %289 = arith.mulf %285, %284 : vector<8x64xf32>
      %290 = arith.addf %288, %289 : vector<8x64xf32>
      %291 = math.tanh %290 : vector<8x64xf32>
      %292 = arith.mulf %287, %291 : vector<8x64xf32>
      %c7_i32_127 = arith.constant 7 : i32
      %293 = arith.muli %arg19, %c7_i32_127 : i32
      %c1_i32_128 = arith.constant 1 : i32
      %294 = arith.addi %c1_i32_128, %293 : i32
      %c1_i32_129 = arith.constant 1 : i32
      %295 = arith.addi %294, %c1_i32_129 : i32
      %c8_i32_130 = arith.constant 8 : i32
      %296 = arith.muli %295, %c8_i32_130 : i32
      %297 = tpu.assume_multiple %296, 8 : i32
      %298 = arith.index_cast %297 : i32 to index
      %c0_131 = arith.constant 0 : index
      %299 = vector.load %arg18[%298, %c0_131] : memref<480x256xf32, #tpu.memory_space<vmem>>, vector<8x256xf32>
      %c0_132 = arith.constant 0 : index
      %c0_133 = arith.constant 0 : index
      %300 = vector.load %arg4[%c0_132, %c0_133] : memref<64x256xf32, #tpu.memory_space<vmem>>, vector<64x256xf32>
      %cst_134 = arith.constant dense<0.000000e+00> : vector<8x256xf32>
      %301 = tpu.matmul %268, %300, %cst_134 {dimension_numbers = #tpu.dot_dimension_numbers<[1], [0], [0], [1], [0, 0, 1, 1], [], []>} : vector<8x64xf32>, vector<64x256xf32>, vector<8x256xf32> -> vector<8x256xf32>
      %302 = arith.addf %299, %301 : vector<8x256xf32>
      %303 = vector.extract_strided_slice %302 {offsets = [0, 0], sizes = [8, 192], strides = [1, 1]} : vector<8x256xf32> to vector<8x192xf32>
      %cst_135 = arith.constant 5.000000e-01 : f32
      %304 = vector.broadcast %cst_135 : f32 to vector<8x192xf32>
      %305 = arith.mulf %304, %303 : vector<8x192xf32>
      %306 = math.tanh %305 : vector<8x192xf32>
      %cst_136 = arith.constant 5.000000e-01 : f32
      %307 = vector.broadcast %cst_136 : f32 to vector<8x192xf32>
      %308 = arith.mulf %307, %306 : vector<8x192xf32>
      %cst_137 = arith.constant 5.000000e-01 : f32
      %309 = vector.broadcast %cst_137 : f32 to vector<8x192xf32>
      %310 = arith.addf %308, %309 : vector<8x192xf32>
      %311 = vector.extract_strided_slice %302 {offsets = [0, 192], sizes = [8, 64], strides = [1, 1]} : vector<8x256xf32> to vector<8x64xf32>
      %312 = math.tanh %311 : vector<8x64xf32>
      %313 = vector.extract_strided_slice %310 {offsets = [0, 0], sizes = [8, 64], strides = [1, 1]} : vector<8x192xf32> to vector<8x64xf32>
      %314 = vector.extract_strided_slice %310 {offsets = [0, 64], sizes = [8, 64], strides = [1, 1]} : vector<8x192xf32> to vector<8x64xf32>
      %315 = vector.extract_strided_slice %310 {offsets = [0, 128], sizes = [8, 64], strides = [1, 1]} : vector<8x192xf32> to vector<8x64xf32>
      %316 = arith.mulf %314, %266 : vector<8x64xf32>
      %317 = arith.mulf %313, %312 : vector<8x64xf32>
      %318 = arith.addf %316, %317 : vector<8x64xf32>
      %319 = math.tanh %318 : vector<8x64xf32>
      %320 = arith.mulf %315, %319 : vector<8x64xf32>
      %c0_138 = arith.constant 0 : index
      %c0_139 = arith.constant 0 : index
      %321 = vector.load %arg5[%c0_138, %c0_139] : memref<64x256xf32, #tpu.memory_space<vmem>>, vector<64x256xf32>
      %cst_140 = arith.constant dense<0.000000e+00> : vector<8x256xf32>
      %322 = tpu.matmul %268, %321, %cst_140 {dimension_numbers = #tpu.dot_dimension_numbers<[1], [0], [0], [1], [0, 0, 1, 1], [], []>} : vector<8x64xf32>, vector<64x256xf32>, vector<8x256xf32> -> vector<8x256xf32>
      %c0_141 = arith.constant 0 : index
      %c0_142 = arith.constant 0 : index
      %323 = vector.load %arg7[%c0_141, %c0_142] : memref<64x256xf32, #tpu.memory_space<vmem>>, vector<64x256xf32>
      %cst_143 = arith.constant dense<0.000000e+00> : vector<8x256xf32>
      %324 = tpu.matmul %292, %323, %cst_143 {dimension_numbers = #tpu.dot_dimension_numbers<[1], [0], [0], [1], [0, 0, 1, 1], [], []>} : vector<8x64xf32>, vector<64x256xf32>, vector<8x256xf32> -> vector<8x256xf32>
      %325 = arith.addf %322, %324 : vector<8x256xf32>
      %326 = arith.addf %325, %19 : vector<8x256xf32>
      %327 = vector.extract_strided_slice %326 {offsets = [0, 0], sizes = [8, 192], strides = [1, 1]} : vector<8x256xf32> to vector<8x192xf32>
      %cst_144 = arith.constant 5.000000e-01 : f32
      %328 = vector.broadcast %cst_144 : f32 to vector<8x192xf32>
      %329 = arith.mulf %328, %327 : vector<8x192xf32>
      %330 = math.tanh %329 : vector<8x192xf32>
      %cst_145 = arith.constant 5.000000e-01 : f32
      %331 = vector.broadcast %cst_145 : f32 to vector<8x192xf32>
      %332 = arith.mulf %331, %330 : vector<8x192xf32>
      %cst_146 = arith.constant 5.000000e-01 : f32
      %333 = vector.broadcast %cst_146 : f32 to vector<8x192xf32>
      %334 = arith.addf %332, %333 : vector<8x192xf32>
      %335 = vector.extract_strided_slice %326 {offsets = [0, 192], sizes = [8, 64], strides = [1, 1]} : vector<8x256xf32> to vector<8x64xf32>
      %336 = math.tanh %335 : vector<8x64xf32>
      %337 = vector.extract_strided_slice %334 {offsets = [0, 0], sizes = [8, 64], strides = [1, 1]} : vector<8x192xf32> to vector<8x64xf32>
      %338 = vector.extract_strided_slice %334 {offsets = [0, 64], sizes = [8, 64], strides = [1, 1]} : vector<8x192xf32> to vector<8x64xf32>
      %339 = vector.extract_strided_slice %334 {offsets = [0, 128], sizes = [8, 64], strides = [1, 1]} : vector<8x192xf32> to vector<8x64xf32>
      %340 = arith.mulf %338, %290 : vector<8x64xf32>
      %341 = arith.mulf %337, %336 : vector<8x64xf32>
      %342 = arith.addf %340, %341 : vector<8x64xf32>
      %343 = math.tanh %342 : vector<8x64xf32>
      %344 = arith.mulf %339, %343 : vector<8x64xf32>
      %c7_i32_147 = arith.constant 7 : i32
      %345 = arith.muli %arg19, %c7_i32_147 : i32
      %c1_i32_148 = arith.constant 1 : i32
      %346 = arith.addi %c1_i32_148, %345 : i32
      %c2_i32 = arith.constant 2 : i32
      %347 = arith.addi %346, %c2_i32 : i32
      %c8_i32_149 = arith.constant 8 : i32
      %348 = arith.muli %347, %c8_i32_149 : i32
      %349 = tpu.assume_multiple %348, 8 : i32
      %350 = arith.index_cast %349 : i32 to index
      %c0_150 = arith.constant 0 : index
      %351 = vector.load %arg18[%350, %c0_150] : memref<480x256xf32, #tpu.memory_space<vmem>>, vector<8x256xf32>
      %c0_151 = arith.constant 0 : index
      %c0_152 = arith.constant 0 : index
      %352 = vector.load %arg4[%c0_151, %c0_152] : memref<64x256xf32, #tpu.memory_space<vmem>>, vector<64x256xf32>
      %cst_153 = arith.constant dense<0.000000e+00> : vector<8x256xf32>
      %353 = tpu.matmul %320, %352, %cst_153 {dimension_numbers = #tpu.dot_dimension_numbers<[1], [0], [0], [1], [0, 0, 1, 1], [], []>} : vector<8x64xf32>, vector<64x256xf32>, vector<8x256xf32> -> vector<8x256xf32>
      %354 = arith.addf %351, %353 : vector<8x256xf32>
      %355 = vector.extract_strided_slice %354 {offsets = [0, 0], sizes = [8, 192], strides = [1, 1]} : vector<8x256xf32> to vector<8x192xf32>
      %cst_154 = arith.constant 5.000000e-01 : f32
      %356 = vector.broadcast %cst_154 : f32 to vector<8x192xf32>
      %357 = arith.mulf %356, %355 : vector<8x192xf32>
      %358 = math.tanh %357 : vector<8x192xf32>
      %cst_155 = arith.constant 5.000000e-01 : f32
      %359 = vector.broadcast %cst_155 : f32 to vector<8x192xf32>
      %360 = arith.mulf %359, %358 : vector<8x192xf32>
      %cst_156 = arith.constant 5.000000e-01 : f32
      %361 = vector.broadcast %cst_156 : f32 to vector<8x192xf32>
      %362 = arith.addf %360, %361 : vector<8x192xf32>
      %363 = vector.extract_strided_slice %354 {offsets = [0, 192], sizes = [8, 64], strides = [1, 1]} : vector<8x256xf32> to vector<8x64xf32>
      %364 = math.tanh %363 : vector<8x64xf32>
      %365 = vector.extract_strided_slice %362 {offsets = [0, 0], sizes = [8, 64], strides = [1, 1]} : vector<8x192xf32> to vector<8x64xf32>
      %366 = vector.extract_strided_slice %362 {offsets = [0, 64], sizes = [8, 64], strides = [1, 1]} : vector<8x192xf32> to vector<8x64xf32>
      %367 = vector.extract_strided_slice %362 {offsets = [0, 128], sizes = [8, 64], strides = [1, 1]} : vector<8x192xf32> to vector<8x64xf32>
      %368 = arith.mulf %366, %318 : vector<8x64xf32>
      %369 = arith.mulf %365, %364 : vector<8x64xf32>
      %370 = arith.addf %368, %369 : vector<8x64xf32>
      %371 = math.tanh %370 : vector<8x64xf32>
      %372 = arith.mulf %367, %371 : vector<8x64xf32>
      %c0_157 = arith.constant 0 : index
      %c0_158 = arith.constant 0 : index
      %373 = vector.load %arg5[%c0_157, %c0_158] : memref<64x256xf32, #tpu.memory_space<vmem>>, vector<64x256xf32>
      %cst_159 = arith.constant dense<0.000000e+00> : vector<8x256xf32>
      %374 = tpu.matmul %320, %373, %cst_159 {dimension_numbers = #tpu.dot_dimension_numbers<[1], [0], [0], [1], [0, 0, 1, 1], [], []>} : vector<8x64xf32>, vector<64x256xf32>, vector<8x256xf32> -> vector<8x256xf32>
      %c0_160 = arith.constant 0 : index
      %c0_161 = arith.constant 0 : index
      %375 = vector.load %arg7[%c0_160, %c0_161] : memref<64x256xf32, #tpu.memory_space<vmem>>, vector<64x256xf32>
      %cst_162 = arith.constant dense<0.000000e+00> : vector<8x256xf32>
      %376 = tpu.matmul %344, %375, %cst_162 {dimension_numbers = #tpu.dot_dimension_numbers<[1], [0], [0], [1], [0, 0, 1, 1], [], []>} : vector<8x64xf32>, vector<64x256xf32>, vector<8x256xf32> -> vector<8x256xf32>
      %377 = arith.addf %374, %376 : vector<8x256xf32>
      %378 = arith.addf %377, %19 : vector<8x256xf32>
      %379 = vector.extract_strided_slice %378 {offsets = [0, 0], sizes = [8, 192], strides = [1, 1]} : vector<8x256xf32> to vector<8x192xf32>
      %cst_163 = arith.constant 5.000000e-01 : f32
      %380 = vector.broadcast %cst_163 : f32 to vector<8x192xf32>
      %381 = arith.mulf %380, %379 : vector<8x192xf32>
      %382 = math.tanh %381 : vector<8x192xf32>
      %cst_164 = arith.constant 5.000000e-01 : f32
      %383 = vector.broadcast %cst_164 : f32 to vector<8x192xf32>
      %384 = arith.mulf %383, %382 : vector<8x192xf32>
      %cst_165 = arith.constant 5.000000e-01 : f32
      %385 = vector.broadcast %cst_165 : f32 to vector<8x192xf32>
      %386 = arith.addf %384, %385 : vector<8x192xf32>
      %387 = vector.extract_strided_slice %378 {offsets = [0, 192], sizes = [8, 64], strides = [1, 1]} : vector<8x256xf32> to vector<8x64xf32>
      %388 = math.tanh %387 : vector<8x64xf32>
      %389 = vector.extract_strided_slice %386 {offsets = [0, 0], sizes = [8, 64], strides = [1, 1]} : vector<8x192xf32> to vector<8x64xf32>
      %390 = vector.extract_strided_slice %386 {offsets = [0, 64], sizes = [8, 64], strides = [1, 1]} : vector<8x192xf32> to vector<8x64xf32>
      %391 = vector.extract_strided_slice %386 {offsets = [0, 128], sizes = [8, 64], strides = [1, 1]} : vector<8x192xf32> to vector<8x64xf32>
      %392 = arith.mulf %390, %342 : vector<8x64xf32>
      %393 = arith.mulf %389, %388 : vector<8x64xf32>
      %394 = arith.addf %392, %393 : vector<8x64xf32>
      %395 = math.tanh %394 : vector<8x64xf32>
      %396 = arith.mulf %391, %395 : vector<8x64xf32>
      %c7_i32_166 = arith.constant 7 : i32
      %397 = arith.muli %arg19, %c7_i32_166 : i32
      %c1_i32_167 = arith.constant 1 : i32
      %398 = arith.addi %c1_i32_167, %397 : i32
      %c3_i32 = arith.constant 3 : i32
      %399 = arith.addi %398, %c3_i32 : i32
      %c8_i32_168 = arith.constant 8 : i32
      %400 = arith.muli %399, %c8_i32_168 : i32
      %401 = tpu.assume_multiple %400, 8 : i32
      %402 = arith.index_cast %401 : i32 to index
      %c0_169 = arith.constant 0 : index
      %403 = vector.load %arg18[%402, %c0_169] : memref<480x256xf32, #tpu.memory_space<vmem>>, vector<8x256xf32>
      %c0_170 = arith.constant 0 : index
      %c0_171 = arith.constant 0 : index
      %404 = vector.load %arg4[%c0_170, %c0_171] : memref<64x256xf32, #tpu.memory_space<vmem>>, vector<64x256xf32>
      %cst_172 = arith.constant dense<0.000000e+00> : vector<8x256xf32>
      %405 = tpu.matmul %372, %404, %cst_172 {dimension_numbers = #tpu.dot_dimension_numbers<[1], [0], [0], [1], [0, 0, 1, 1], [], []>} : vector<8x64xf32>, vector<64x256xf32>, vector<8x256xf32> -> vector<8x256xf32>
      %406 = arith.addf %403, %405 : vector<8x256xf32>
      %407 = vector.extract_strided_slice %406 {offsets = [0, 0], sizes = [8, 192], strides = [1, 1]} : vector<8x256xf32> to vector<8x192xf32>
      %cst_173 = arith.constant 5.000000e-01 : f32
      %408 = vector.broadcast %cst_173 : f32 to vector<8x192xf32>
      %409 = arith.mulf %408, %407 : vector<8x192xf32>
      %410 = math.tanh %409 : vector<8x192xf32>
      %cst_174 = arith.constant 5.000000e-01 : f32
      %411 = vector.broadcast %cst_174 : f32 to vector<8x192xf32>
      %412 = arith.mulf %411, %410 : vector<8x192xf32>
      %cst_175 = arith.constant 5.000000e-01 : f32
      %413 = vector.broadcast %cst_175 : f32 to vector<8x192xf32>
      %414 = arith.addf %412, %413 : vector<8x192xf32>
      %415 = vector.extract_strided_slice %406 {offsets = [0, 192], sizes = [8, 64], strides = [1, 1]} : vector<8x256xf32> to vector<8x64xf32>
      %416 = math.tanh %415 : vector<8x64xf32>
      %417 = vector.extract_strided_slice %414 {offsets = [0, 0], sizes = [8, 64], strides = [1, 1]} : vector<8x192xf32> to vector<8x64xf32>
      %418 = vector.extract_strided_slice %414 {offsets = [0, 64], sizes = [8, 64], strides = [1, 1]} : vector<8x192xf32> to vector<8x64xf32>
      %419 = vector.extract_strided_slice %414 {offsets = [0, 128], sizes = [8, 64], strides = [1, 1]} : vector<8x192xf32> to vector<8x64xf32>
      %420 = arith.mulf %418, %370 : vector<8x64xf32>
      %421 = arith.mulf %417, %416 : vector<8x64xf32>
      %422 = arith.addf %420, %421 : vector<8x64xf32>
      %423 = math.tanh %422 : vector<8x64xf32>
      %424 = arith.mulf %419, %423 : vector<8x64xf32>
      %c0_176 = arith.constant 0 : index
      %c0_177 = arith.constant 0 : index
      %425 = vector.load %arg5[%c0_176, %c0_177] : memref<64x256xf32, #tpu.memory_space<vmem>>, vector<64x256xf32>
      %cst_178 = arith.constant dense<0.000000e+00> : vector<8x256xf32>
      %426 = tpu.matmul %372, %425, %cst_178 {dimension_numbers = #tpu.dot_dimension_numbers<[1], [0], [0], [1], [0, 0, 1, 1], [], []>} : vector<8x64xf32>, vector<64x256xf32>, vector<8x256xf32> -> vector<8x256xf32>
      %c0_179 = arith.constant 0 : index
      %c0_180 = arith.constant 0 : index
      %427 = vector.load %arg7[%c0_179, %c0_180] : memref<64x256xf32, #tpu.memory_space<vmem>>, vector<64x256xf32>
      %cst_181 = arith.constant dense<0.000000e+00> : vector<8x256xf32>
      %428 = tpu.matmul %396, %427, %cst_181 {dimension_numbers = #tpu.dot_dimension_numbers<[1], [0], [0], [1], [0, 0, 1, 1], [], []>} : vector<8x64xf32>, vector<64x256xf32>, vector<8x256xf32> -> vector<8x256xf32>
      %429 = arith.addf %426, %428 : vector<8x256xf32>
      %430 = arith.addf %429, %19 : vector<8x256xf32>
      %431 = vector.extract_strided_slice %430 {offsets = [0, 0], sizes = [8, 192], strides = [1, 1]} : vector<8x256xf32> to vector<8x192xf32>
      %cst_182 = arith.constant 5.000000e-01 : f32
      %432 = vector.broadcast %cst_182 : f32 to vector<8x192xf32>
      %433 = arith.mulf %432, %431 : vector<8x192xf32>
      %434 = math.tanh %433 : vector<8x192xf32>
      %cst_183 = arith.constant 5.000000e-01 : f32
      %435 = vector.broadcast %cst_183 : f32 to vector<8x192xf32>
      %436 = arith.mulf %435, %434 : vector<8x192xf32>
      %cst_184 = arith.constant 5.000000e-01 : f32
      %437 = vector.broadcast %cst_184 : f32 to vector<8x192xf32>
      %438 = arith.addf %436, %437 : vector<8x192xf32>
      %439 = vector.extract_strided_slice %430 {offsets = [0, 192], sizes = [8, 64], strides = [1, 1]} : vector<8x256xf32> to vector<8x64xf32>
      %440 = math.tanh %439 : vector<8x64xf32>
      %441 = vector.extract_strided_slice %438 {offsets = [0, 0], sizes = [8, 64], strides = [1, 1]} : vector<8x192xf32> to vector<8x64xf32>
      %442 = vector.extract_strided_slice %438 {offsets = [0, 64], sizes = [8, 64], strides = [1, 1]} : vector<8x192xf32> to vector<8x64xf32>
      %443 = vector.extract_strided_slice %438 {offsets = [0, 128], sizes = [8, 64], strides = [1, 1]} : vector<8x192xf32> to vector<8x64xf32>
      %444 = arith.mulf %442, %394 : vector<8x64xf32>
      %445 = arith.mulf %441, %440 : vector<8x64xf32>
      %446 = arith.addf %444, %445 : vector<8x64xf32>
      %447 = math.tanh %446 : vector<8x64xf32>
      %448 = arith.mulf %443, %447 : vector<8x64xf32>
      %c7_i32_185 = arith.constant 7 : i32
      %449 = arith.muli %arg19, %c7_i32_185 : i32
      %c1_i32_186 = arith.constant 1 : i32
      %450 = arith.addi %c1_i32_186, %449 : i32
      %c4_i32 = arith.constant 4 : i32
      %451 = arith.addi %450, %c4_i32 : i32
      %c8_i32_187 = arith.constant 8 : i32
      %452 = arith.muli %451, %c8_i32_187 : i32
      %453 = tpu.assume_multiple %452, 8 : i32
      %454 = arith.index_cast %453 : i32 to index
      %c0_188 = arith.constant 0 : index
      %455 = vector.load %arg18[%454, %c0_188] : memref<480x256xf32, #tpu.memory_space<vmem>>, vector<8x256xf32>
      %c0_189 = arith.constant 0 : index
      %c0_190 = arith.constant 0 : index
      %456 = vector.load %arg4[%c0_189, %c0_190] : memref<64x256xf32, #tpu.memory_space<vmem>>, vector<64x256xf32>
      %cst_191 = arith.constant dense<0.000000e+00> : vector<8x256xf32>
      %457 = tpu.matmul %424, %456, %cst_191 {dimension_numbers = #tpu.dot_dimension_numbers<[1], [0], [0], [1], [0, 0, 1, 1], [], []>} : vector<8x64xf32>, vector<64x256xf32>, vector<8x256xf32> -> vector<8x256xf32>
      %458 = arith.addf %455, %457 : vector<8x256xf32>
      %459 = vector.extract_strided_slice %458 {offsets = [0, 0], sizes = [8, 192], strides = [1, 1]} : vector<8x256xf32> to vector<8x192xf32>
      %cst_192 = arith.constant 5.000000e-01 : f32
      %460 = vector.broadcast %cst_192 : f32 to vector<8x192xf32>
      %461 = arith.mulf %460, %459 : vector<8x192xf32>
      %462 = math.tanh %461 : vector<8x192xf32>
      %cst_193 = arith.constant 5.000000e-01 : f32
      %463 = vector.broadcast %cst_193 : f32 to vector<8x192xf32>
      %464 = arith.mulf %463, %462 : vector<8x192xf32>
      %cst_194 = arith.constant 5.000000e-01 : f32
      %465 = vector.broadcast %cst_194 : f32 to vector<8x192xf32>
      %466 = arith.addf %464, %465 : vector<8x192xf32>
      %467 = vector.extract_strided_slice %458 {offsets = [0, 192], sizes = [8, 64], strides = [1, 1]} : vector<8x256xf32> to vector<8x64xf32>
      %468 = math.tanh %467 : vector<8x64xf32>
      %469 = vector.extract_strided_slice %466 {offsets = [0, 0], sizes = [8, 64], strides = [1, 1]} : vector<8x192xf32> to vector<8x64xf32>
      %470 = vector.extract_strided_slice %466 {offsets = [0, 64], sizes = [8, 64], strides = [1, 1]} : vector<8x192xf32> to vector<8x64xf32>
      %471 = vector.extract_strided_slice %466 {offsets = [0, 128], sizes = [8, 64], strides = [1, 1]} : vector<8x192xf32> to vector<8x64xf32>
      %472 = arith.mulf %470, %422 : vector<8x64xf32>
      %473 = arith.mulf %469, %468 : vector<8x64xf32>
      %474 = arith.addf %472, %473 : vector<8x64xf32>
      %475 = math.tanh %474 : vector<8x64xf32>
      %476 = arith.mulf %471, %475 : vector<8x64xf32>
      %c0_195 = arith.constant 0 : index
      %c0_196 = arith.constant 0 : index
      %477 = vector.load %arg5[%c0_195, %c0_196] : memref<64x256xf32, #tpu.memory_space<vmem>>, vector<64x256xf32>
      %cst_197 = arith.constant dense<0.000000e+00> : vector<8x256xf32>
      %478 = tpu.matmul %424, %477, %cst_197 {dimension_numbers = #tpu.dot_dimension_numbers<[1], [0], [0], [1], [0, 0, 1, 1], [], []>} : vector<8x64xf32>, vector<64x256xf32>, vector<8x256xf32> -> vector<8x256xf32>
      %c0_198 = arith.constant 0 : index
      %c0_199 = arith.constant 0 : index
      %479 = vector.load %arg7[%c0_198, %c0_199] : memref<64x256xf32, #tpu.memory_space<vmem>>, vector<64x256xf32>
      %cst_200 = arith.constant dense<0.000000e+00> : vector<8x256xf32>
      %480 = tpu.matmul %448, %479, %cst_200 {dimension_numbers = #tpu.dot_dimension_numbers<[1], [0], [0], [1], [0, 0, 1, 1], [], []>} : vector<8x64xf32>, vector<64x256xf32>, vector<8x256xf32> -> vector<8x256xf32>
      %481 = arith.addf %478, %480 : vector<8x256xf32>
      %482 = arith.addf %481, %19 : vector<8x256xf32>
      %483 = vector.extract_strided_slice %482 {offsets = [0, 0], sizes = [8, 192], strides = [1, 1]} : vector<8x256xf32> to vector<8x192xf32>
      %cst_201 = arith.constant 5.000000e-01 : f32
      %484 = vector.broadcast %cst_201 : f32 to vector<8x192xf32>
      %485 = arith.mulf %484, %483 : vector<8x192xf32>
      %486 = math.tanh %485 : vector<8x192xf32>
      %cst_202 = arith.constant 5.000000e-01 : f32
      %487 = vector.broadcast %cst_202 : f32 to vector<8x192xf32>
      %488 = arith.mulf %487, %486 : vector<8x192xf32>
      %cst_203 = arith.constant 5.000000e-01 : f32
      %489 = vector.broadcast %cst_203 : f32 to vector<8x192xf32>
      %490 = arith.addf %488, %489 : vector<8x192xf32>
      %491 = vector.extract_strided_slice %482 {offsets = [0, 192], sizes = [8, 64], strides = [1, 1]} : vector<8x256xf32> to vector<8x64xf32>
      %492 = math.tanh %491 : vector<8x64xf32>
      %493 = vector.extract_strided_slice %490 {offsets = [0, 0], sizes = [8, 64], strides = [1, 1]} : vector<8x192xf32> to vector<8x64xf32>
      %494 = vector.extract_strided_slice %490 {offsets = [0, 64], sizes = [8, 64], strides = [1, 1]} : vector<8x192xf32> to vector<8x64xf32>
      %495 = vector.extract_strided_slice %490 {offsets = [0, 128], sizes = [8, 64], strides = [1, 1]} : vector<8x192xf32> to vector<8x64xf32>
      %496 = arith.mulf %494, %446 : vector<8x64xf32>
      %497 = arith.mulf %493, %492 : vector<8x64xf32>
      %498 = arith.addf %496, %497 : vector<8x64xf32>
      %499 = math.tanh %498 : vector<8x64xf32>
      %500 = arith.mulf %495, %499 : vector<8x64xf32>
      %c7_i32_204 = arith.constant 7 : i32
      %501 = arith.muli %arg19, %c7_i32_204 : i32
      %c1_i32_205 = arith.constant 1 : i32
      %502 = arith.addi %c1_i32_205, %501 : i32
      %c5_i32 = arith.constant 5 : i32
      %503 = arith.addi %502, %c5_i32 : i32
      %c8_i32_206 = arith.constant 8 : i32
      %504 = arith.muli %503, %c8_i32_206 : i32
      %505 = tpu.assume_multiple %504, 8 : i32
      %506 = arith.index_cast %505 : i32 to index
      %c0_207 = arith.constant 0 : index
      %507 = vector.load %arg18[%506, %c0_207] : memref<480x256xf32, #tpu.memory_space<vmem>>, vector<8x256xf32>
      %c0_208 = arith.constant 0 : index
      %c0_209 = arith.constant 0 : index
      %508 = vector.load %arg4[%c0_208, %c0_209] : memref<64x256xf32, #tpu.memory_space<vmem>>, vector<64x256xf32>
      %cst_210 = arith.constant dense<0.000000e+00> : vector<8x256xf32>
      %509 = tpu.matmul %476, %508, %cst_210 {dimension_numbers = #tpu.dot_dimension_numbers<[1], [0], [0], [1], [0, 0, 1, 1], [], []>} : vector<8x64xf32>, vector<64x256xf32>, vector<8x256xf32> -> vector<8x256xf32>
      %510 = arith.addf %507, %509 : vector<8x256xf32>
      %511 = vector.extract_strided_slice %510 {offsets = [0, 0], sizes = [8, 192], strides = [1, 1]} : vector<8x256xf32> to vector<8x192xf32>
      %cst_211 = arith.constant 5.000000e-01 : f32
      %512 = vector.broadcast %cst_211 : f32 to vector<8x192xf32>
      %513 = arith.mulf %512, %511 : vector<8x192xf32>
      %514 = math.tanh %513 : vector<8x192xf32>
      %cst_212 = arith.constant 5.000000e-01 : f32
      %515 = vector.broadcast %cst_212 : f32 to vector<8x192xf32>
      %516 = arith.mulf %515, %514 : vector<8x192xf32>
      %cst_213 = arith.constant 5.000000e-01 : f32
      %517 = vector.broadcast %cst_213 : f32 to vector<8x192xf32>
      %518 = arith.addf %516, %517 : vector<8x192xf32>
      %519 = vector.extract_strided_slice %510 {offsets = [0, 192], sizes = [8, 64], strides = [1, 1]} : vector<8x256xf32> to vector<8x64xf32>
      %520 = math.tanh %519 : vector<8x64xf32>
      %521 = vector.extract_strided_slice %518 {offsets = [0, 0], sizes = [8, 64], strides = [1, 1]} : vector<8x192xf32> to vector<8x64xf32>
      %522 = vector.extract_strided_slice %518 {offsets = [0, 64], sizes = [8, 64], strides = [1, 1]} : vector<8x192xf32> to vector<8x64xf32>
      %523 = vector.extract_strided_slice %518 {offsets = [0, 128], sizes = [8, 64], strides = [1, 1]} : vector<8x192xf32> to vector<8x64xf32>
      %524 = arith.mulf %522, %474 : vector<8x64xf32>
      %525 = arith.mulf %521, %520 : vector<8x64xf32>
      %526 = arith.addf %524, %525 : vector<8x64xf32>
      %527 = math.tanh %526 : vector<8x64xf32>
      %528 = arith.mulf %523, %527 : vector<8x64xf32>
      %c0_214 = arith.constant 0 : index
      %c0_215 = arith.constant 0 : index
      %529 = vector.load %arg5[%c0_214, %c0_215] : memref<64x256xf32, #tpu.memory_space<vmem>>, vector<64x256xf32>
      %cst_216 = arith.constant dense<0.000000e+00> : vector<8x256xf32>
      %530 = tpu.matmul %476, %529, %cst_216 {dimension_numbers = #tpu.dot_dimension_numbers<[1], [0], [0], [1], [0, 0, 1, 1], [], []>} : vector<8x64xf32>, vector<64x256xf32>, vector<8x256xf32> -> vector<8x256xf32>
      %c0_217 = arith.constant 0 : index
      %c0_218 = arith.constant 0 : index
      %531 = vector.load %arg7[%c0_217, %c0_218] : memref<64x256xf32, #tpu.memory_space<vmem>>, vector<64x256xf32>
      %cst_219 = arith.constant dense<0.000000e+00> : vector<8x256xf32>
      %532 = tpu.matmul %500, %531, %cst_219 {dimension_numbers = #tpu.dot_dimension_numbers<[1], [0], [0], [1], [0, 0, 1, 1], [], []>} : vector<8x64xf32>, vector<64x256xf32>, vector<8x256xf32> -> vector<8x256xf32>
      %533 = arith.addf %530, %532 : vector<8x256xf32>
      %534 = arith.addf %533, %19 : vector<8x256xf32>
      %535 = vector.extract_strided_slice %534 {offsets = [0, 0], sizes = [8, 192], strides = [1, 1]} : vector<8x256xf32> to vector<8x192xf32>
      %cst_220 = arith.constant 5.000000e-01 : f32
      %536 = vector.broadcast %cst_220 : f32 to vector<8x192xf32>
      %537 = arith.mulf %536, %535 : vector<8x192xf32>
      %538 = math.tanh %537 : vector<8x192xf32>
      %cst_221 = arith.constant 5.000000e-01 : f32
      %539 = vector.broadcast %cst_221 : f32 to vector<8x192xf32>
      %540 = arith.mulf %539, %538 : vector<8x192xf32>
      %cst_222 = arith.constant 5.000000e-01 : f32
      %541 = vector.broadcast %cst_222 : f32 to vector<8x192xf32>
      %542 = arith.addf %540, %541 : vector<8x192xf32>
      %543 = vector.extract_strided_slice %534 {offsets = [0, 192], sizes = [8, 64], strides = [1, 1]} : vector<8x256xf32> to vector<8x64xf32>
      %544 = math.tanh %543 : vector<8x64xf32>
      %545 = vector.extract_strided_slice %542 {offsets = [0, 0], sizes = [8, 64], strides = [1, 1]} : vector<8x192xf32> to vector<8x64xf32>
      %546 = vector.extract_strided_slice %542 {offsets = [0, 64], sizes = [8, 64], strides = [1, 1]} : vector<8x192xf32> to vector<8x64xf32>
      %547 = vector.extract_strided_slice %542 {offsets = [0, 128], sizes = [8, 64], strides = [1, 1]} : vector<8x192xf32> to vector<8x64xf32>
      %548 = arith.mulf %546, %498 : vector<8x64xf32>
      %549 = arith.mulf %545, %544 : vector<8x64xf32>
      %550 = arith.addf %548, %549 : vector<8x64xf32>
      %551 = math.tanh %550 : vector<8x64xf32>
      %552 = arith.mulf %547, %551 : vector<8x64xf32>
      %c7_i32_223 = arith.constant 7 : i32
      %553 = arith.muli %arg19, %c7_i32_223 : i32
      %c1_i32_224 = arith.constant 1 : i32
      %554 = arith.addi %c1_i32_224, %553 : i32
      %c6_i32 = arith.constant 6 : i32
      %555 = arith.addi %554, %c6_i32 : i32
      %c8_i32_225 = arith.constant 8 : i32
      %556 = arith.muli %555, %c8_i32_225 : i32
      %557 = tpu.assume_multiple %556, 8 : i32
      %558 = arith.index_cast %557 : i32 to index
      %c0_226 = arith.constant 0 : index
      %559 = vector.load %arg18[%558, %c0_226] : memref<480x256xf32, #tpu.memory_space<vmem>>, vector<8x256xf32>
      %c0_227 = arith.constant 0 : index
      %c0_228 = arith.constant 0 : index
      %560 = vector.load %arg4[%c0_227, %c0_228] : memref<64x256xf32, #tpu.memory_space<vmem>>, vector<64x256xf32>
      %cst_229 = arith.constant dense<0.000000e+00> : vector<8x256xf32>
      %561 = tpu.matmul %528, %560, %cst_229 {dimension_numbers = #tpu.dot_dimension_numbers<[1], [0], [0], [1], [0, 0, 1, 1], [], []>} : vector<8x64xf32>, vector<64x256xf32>, vector<8x256xf32> -> vector<8x256xf32>
      %562 = arith.addf %559, %561 : vector<8x256xf32>
      %563 = vector.extract_strided_slice %562 {offsets = [0, 0], sizes = [8, 192], strides = [1, 1]} : vector<8x256xf32> to vector<8x192xf32>
      %cst_230 = arith.constant 5.000000e-01 : f32
      %564 = vector.broadcast %cst_230 : f32 to vector<8x192xf32>
      %565 = arith.mulf %564, %563 : vector<8x192xf32>
      %566 = math.tanh %565 : vector<8x192xf32>
      %cst_231 = arith.constant 5.000000e-01 : f32
      %567 = vector.broadcast %cst_231 : f32 to vector<8x192xf32>
      %568 = arith.mulf %567, %566 : vector<8x192xf32>
      %cst_232 = arith.constant 5.000000e-01 : f32
      %569 = vector.broadcast %cst_232 : f32 to vector<8x192xf32>
      %570 = arith.addf %568, %569 : vector<8x192xf32>
      %571 = vector.extract_strided_slice %562 {offsets = [0, 192], sizes = [8, 64], strides = [1, 1]} : vector<8x256xf32> to vector<8x64xf32>
      %572 = math.tanh %571 : vector<8x64xf32>
      %573 = vector.extract_strided_slice %570 {offsets = [0, 0], sizes = [8, 64], strides = [1, 1]} : vector<8x192xf32> to vector<8x64xf32>
      %574 = vector.extract_strided_slice %570 {offsets = [0, 64], sizes = [8, 64], strides = [1, 1]} : vector<8x192xf32> to vector<8x64xf32>
      %575 = vector.extract_strided_slice %570 {offsets = [0, 128], sizes = [8, 64], strides = [1, 1]} : vector<8x192xf32> to vector<8x64xf32>
      %576 = arith.mulf %574, %526 : vector<8x64xf32>
      %577 = arith.mulf %573, %572 : vector<8x64xf32>
      %578 = arith.addf %576, %577 : vector<8x64xf32>
      %579 = math.tanh %578 : vector<8x64xf32>
      %580 = arith.mulf %575, %579 : vector<8x64xf32>
      %c0_233 = arith.constant 0 : index
      %c0_234 = arith.constant 0 : index
      %581 = vector.load %arg5[%c0_233, %c0_234] : memref<64x256xf32, #tpu.memory_space<vmem>>, vector<64x256xf32>
      %cst_235 = arith.constant dense<0.000000e+00> : vector<8x256xf32>
      %582 = tpu.matmul %528, %581, %cst_235 {dimension_numbers = #tpu.dot_dimension_numbers<[1], [0], [0], [1], [0, 0, 1, 1], [], []>} : vector<8x64xf32>, vector<64x256xf32>, vector<8x256xf32> -> vector<8x256xf32>
      %c0_236 = arith.constant 0 : index
      %c0_237 = arith.constant 0 : index
      %583 = vector.load %arg7[%c0_236, %c0_237] : memref<64x256xf32, #tpu.memory_space<vmem>>, vector<64x256xf32>
      %cst_238 = arith.constant dense<0.000000e+00> : vector<8x256xf32>
      %584 = tpu.matmul %552, %583, %cst_238 {dimension_numbers = #tpu.dot_dimension_numbers<[1], [0], [0], [1], [0, 0, 1, 1], [], []>} : vector<8x64xf32>, vector<64x256xf32>, vector<8x256xf32> -> vector<8x256xf32>
      %585 = arith.addf %582, %584 : vector<8x256xf32>
      %586 = arith.addf %585, %19 : vector<8x256xf32>
      %587 = vector.extract_strided_slice %586 {offsets = [0, 0], sizes = [8, 192], strides = [1, 1]} : vector<8x256xf32> to vector<8x192xf32>
      %cst_239 = arith.constant 5.000000e-01 : f32
      %588 = vector.broadcast %cst_239 : f32 to vector<8x192xf32>
      %589 = arith.mulf %588, %587 : vector<8x192xf32>
      %590 = math.tanh %589 : vector<8x192xf32>
      %cst_240 = arith.constant 5.000000e-01 : f32
      %591 = vector.broadcast %cst_240 : f32 to vector<8x192xf32>
      %592 = arith.mulf %591, %590 : vector<8x192xf32>
      %cst_241 = arith.constant 5.000000e-01 : f32
      %593 = vector.broadcast %cst_241 : f32 to vector<8x192xf32>
      %594 = arith.addf %592, %593 : vector<8x192xf32>
      %595 = vector.extract_strided_slice %586 {offsets = [0, 192], sizes = [8, 64], strides = [1, 1]} : vector<8x256xf32> to vector<8x64xf32>
      %596 = math.tanh %595 : vector<8x64xf32>
      %597 = vector.extract_strided_slice %594 {offsets = [0, 0], sizes = [8, 64], strides = [1, 1]} : vector<8x192xf32> to vector<8x64xf32>
      %598 = vector.extract_strided_slice %594 {offsets = [0, 64], sizes = [8, 64], strides = [1, 1]} : vector<8x192xf32> to vector<8x64xf32>
      %599 = vector.extract_strided_slice %594 {offsets = [0, 128], sizes = [8, 64], strides = [1, 1]} : vector<8x192xf32> to vector<8x64xf32>
      %600 = arith.mulf %598, %550 : vector<8x64xf32>
      %601 = arith.mulf %597, %596 : vector<8x64xf32>
      %602 = arith.addf %600, %601 : vector<8x64xf32>
      %603 = math.tanh %602 : vector<8x64xf32>
      %604 = arith.mulf %599, %603 : vector<8x64xf32>
      scf.yield %580, %578, %604, %602 : vector<8x64xf32>, vector<8x64xf32>, vector<8x64xf32>, vector<8x64xf32>
    }
    %c8_i32_25 = arith.constant 8 : i32
    %c456 = arith.constant 456 : index
    %c0_26 = arith.constant 0 : index
    %45 = vector.load %arg18[%c456, %c0_26] : memref<480x256xf32, #tpu.memory_space<vmem>>, vector<8x256xf32>
    %c0_27 = arith.constant 0 : index
    %c0_28 = arith.constant 0 : index
    %46 = vector.load %arg4[%c0_27, %c0_28] : memref<64x256xf32, #tpu.memory_space<vmem>>, vector<64x256xf32>
    %cst_29 = arith.constant dense<0.000000e+00> : vector<8x256xf32>
    %47 = tpu.matmul %44#0, %46, %cst_29 {dimension_numbers = #tpu.dot_dimension_numbers<[1], [0], [0], [1], [0, 0, 1, 1], [], []>} : vector<8x64xf32>, vector<64x256xf32>, vector<8x256xf32> -> vector<8x256xf32>
    %48 = arith.addf %45, %47 : vector<8x256xf32>
    %49 = vector.extract_strided_slice %48 {offsets = [0, 0], sizes = [8, 192], strides = [1, 1]} : vector<8x256xf32> to vector<8x192xf32>
    %cst_30 = arith.constant 5.000000e-01 : f32
    %50 = vector.broadcast %cst_30 : f32 to vector<8x192xf32>
    %51 = arith.mulf %50, %49 : vector<8x192xf32>
    %52 = math.tanh %51 : vector<8x192xf32>
    %cst_31 = arith.constant 5.000000e-01 : f32
    %53 = vector.broadcast %cst_31 : f32 to vector<8x192xf32>
    %54 = arith.mulf %53, %52 : vector<8x192xf32>
    %cst_32 = arith.constant 5.000000e-01 : f32
    %55 = vector.broadcast %cst_32 : f32 to vector<8x192xf32>
    %56 = arith.addf %54, %55 : vector<8x192xf32>
    %57 = vector.extract_strided_slice %48 {offsets = [0, 192], sizes = [8, 64], strides = [1, 1]} : vector<8x256xf32> to vector<8x64xf32>
    %58 = math.tanh %57 : vector<8x64xf32>
    %59 = vector.extract_strided_slice %56 {offsets = [0, 0], sizes = [8, 64], strides = [1, 1]} : vector<8x192xf32> to vector<8x64xf32>
    %60 = vector.extract_strided_slice %56 {offsets = [0, 64], sizes = [8, 64], strides = [1, 1]} : vector<8x192xf32> to vector<8x64xf32>
    %61 = vector.extract_strided_slice %56 {offsets = [0, 128], sizes = [8, 64], strides = [1, 1]} : vector<8x192xf32> to vector<8x64xf32>
    %62 = arith.mulf %60, %44#1 : vector<8x64xf32>
    %63 = arith.mulf %59, %58 : vector<8x64xf32>
    %64 = arith.addf %62, %63 : vector<8x64xf32>
    %65 = math.tanh %64 : vector<8x64xf32>
    %66 = arith.mulf %61, %65 : vector<8x64xf32>
    %c0_33 = arith.constant 0 : index
    %c0_34 = arith.constant 0 : index
    %67 = vector.load %arg5[%c0_33, %c0_34] : memref<64x256xf32, #tpu.memory_space<vmem>>, vector<64x256xf32>
    %cst_35 = arith.constant dense<0.000000e+00> : vector<8x256xf32>
    %68 = tpu.matmul %44#0, %67, %cst_35 {dimension_numbers = #tpu.dot_dimension_numbers<[1], [0], [0], [1], [0, 0, 1, 1], [], []>} : vector<8x64xf32>, vector<64x256xf32>, vector<8x256xf32> -> vector<8x256xf32>
    %c0_36 = arith.constant 0 : index
    %c0_37 = arith.constant 0 : index
    %69 = vector.load %arg7[%c0_36, %c0_37] : memref<64x256xf32, #tpu.memory_space<vmem>>, vector<64x256xf32>
    %cst_38 = arith.constant dense<0.000000e+00> : vector<8x256xf32>
    %70 = tpu.matmul %44#2, %69, %cst_38 {dimension_numbers = #tpu.dot_dimension_numbers<[1], [0], [0], [1], [0, 0, 1, 1], [], []>} : vector<8x64xf32>, vector<64x256xf32>, vector<8x256xf32> -> vector<8x256xf32>
    %71 = arith.addf %68, %70 : vector<8x256xf32>
    %72 = arith.addf %71, %19 : vector<8x256xf32>
    %73 = vector.extract_strided_slice %72 {offsets = [0, 0], sizes = [8, 192], strides = [1, 1]} : vector<8x256xf32> to vector<8x192xf32>
    %cst_39 = arith.constant 5.000000e-01 : f32
    %74 = vector.broadcast %cst_39 : f32 to vector<8x192xf32>
    %75 = arith.mulf %74, %73 : vector<8x192xf32>
    %76 = math.tanh %75 : vector<8x192xf32>
    %cst_40 = arith.constant 5.000000e-01 : f32
    %77 = vector.broadcast %cst_40 : f32 to vector<8x192xf32>
    %78 = arith.mulf %77, %76 : vector<8x192xf32>
    %cst_41 = arith.constant 5.000000e-01 : f32
    %79 = vector.broadcast %cst_41 : f32 to vector<8x192xf32>
    %80 = arith.addf %78, %79 : vector<8x192xf32>
    %81 = vector.extract_strided_slice %72 {offsets = [0, 192], sizes = [8, 64], strides = [1, 1]} : vector<8x256xf32> to vector<8x64xf32>
    %82 = math.tanh %81 : vector<8x64xf32>
    %83 = vector.extract_strided_slice %80 {offsets = [0, 0], sizes = [8, 64], strides = [1, 1]} : vector<8x192xf32> to vector<8x64xf32>
    %84 = vector.extract_strided_slice %80 {offsets = [0, 64], sizes = [8, 64], strides = [1, 1]} : vector<8x192xf32> to vector<8x64xf32>
    %85 = vector.extract_strided_slice %80 {offsets = [0, 128], sizes = [8, 64], strides = [1, 1]} : vector<8x192xf32> to vector<8x64xf32>
    %86 = arith.mulf %84, %44#3 : vector<8x64xf32>
    %87 = arith.mulf %83, %82 : vector<8x64xf32>
    %88 = arith.addf %86, %87 : vector<8x64xf32>
    %89 = math.tanh %88 : vector<8x64xf32>
    %90 = arith.mulf %85, %89 : vector<8x64xf32>
    %c464 = arith.constant 464 : index
    %c0_42 = arith.constant 0 : index
    %91 = vector.load %arg18[%c464, %c0_42] : memref<480x256xf32, #tpu.memory_space<vmem>>, vector<8x256xf32>
    %c0_43 = arith.constant 0 : index
    %c0_44 = arith.constant 0 : index
    %92 = vector.load %arg4[%c0_43, %c0_44] : memref<64x256xf32, #tpu.memory_space<vmem>>, vector<64x256xf32>
    %cst_45 = arith.constant dense<0.000000e+00> : vector<8x256xf32>
    %93 = tpu.matmul %66, %92, %cst_45 {dimension_numbers = #tpu.dot_dimension_numbers<[1], [0], [0], [1], [0, 0, 1, 1], [], []>} : vector<8x64xf32>, vector<64x256xf32>, vector<8x256xf32> -> vector<8x256xf32>
    %94 = arith.addf %91, %93 : vector<8x256xf32>
    %95 = vector.extract_strided_slice %94 {offsets = [0, 0], sizes = [8, 192], strides = [1, 1]} : vector<8x256xf32> to vector<8x192xf32>
    %cst_46 = arith.constant 5.000000e-01 : f32
    %96 = vector.broadcast %cst_46 : f32 to vector<8x192xf32>
    %97 = arith.mulf %96, %95 : vector<8x192xf32>
    %98 = math.tanh %97 : vector<8x192xf32>
    %cst_47 = arith.constant 5.000000e-01 : f32
    %99 = vector.broadcast %cst_47 : f32 to vector<8x192xf32>
    %100 = arith.mulf %99, %98 : vector<8x192xf32>
    %cst_48 = arith.constant 5.000000e-01 : f32
    %101 = vector.broadcast %cst_48 : f32 to vector<8x192xf32>
    %102 = arith.addf %100, %101 : vector<8x192xf32>
    %103 = vector.extract_strided_slice %94 {offsets = [0, 192], sizes = [8, 64], strides = [1, 1]} : vector<8x256xf32> to vector<8x64xf32>
    %104 = math.tanh %103 : vector<8x64xf32>
    %105 = vector.extract_strided_slice %102 {offsets = [0, 0], sizes = [8, 64], strides = [1, 1]} : vector<8x192xf32> to vector<8x64xf32>
    %106 = vector.extract_strided_slice %102 {offsets = [0, 64], sizes = [8, 64], strides = [1, 1]} : vector<8x192xf32> to vector<8x64xf32>
    %107 = vector.extract_strided_slice %102 {offsets = [0, 128], sizes = [8, 64], strides = [1, 1]} : vector<8x192xf32> to vector<8x64xf32>
    %108 = arith.mulf %106, %64 : vector<8x64xf32>
    %109 = arith.mulf %105, %104 : vector<8x64xf32>
    %110 = arith.addf %108, %109 : vector<8x64xf32>
    %111 = math.tanh %110 : vector<8x64xf32>
    %112 = arith.mulf %107, %111 : vector<8x64xf32>
    %c0_49 = arith.constant 0 : index
    %c0_50 = arith.constant 0 : index
    %113 = vector.load %arg5[%c0_49, %c0_50] : memref<64x256xf32, #tpu.memory_space<vmem>>, vector<64x256xf32>
    %cst_51 = arith.constant dense<0.000000e+00> : vector<8x256xf32>
    %114 = tpu.matmul %66, %113, %cst_51 {dimension_numbers = #tpu.dot_dimension_numbers<[1], [0], [0], [1], [0, 0, 1, 1], [], []>} : vector<8x64xf32>, vector<64x256xf32>, vector<8x256xf32> -> vector<8x256xf32>
    %c0_52 = arith.constant 0 : index
    %c0_53 = arith.constant 0 : index
    %115 = vector.load %arg7[%c0_52, %c0_53] : memref<64x256xf32, #tpu.memory_space<vmem>>, vector<64x256xf32>
    %cst_54 = arith.constant dense<0.000000e+00> : vector<8x256xf32>
    %116 = tpu.matmul %90, %115, %cst_54 {dimension_numbers = #tpu.dot_dimension_numbers<[1], [0], [0], [1], [0, 0, 1, 1], [], []>} : vector<8x64xf32>, vector<64x256xf32>, vector<8x256xf32> -> vector<8x256xf32>
    %117 = arith.addf %114, %116 : vector<8x256xf32>
    %118 = arith.addf %117, %19 : vector<8x256xf32>
    %119 = vector.extract_strided_slice %118 {offsets = [0, 0], sizes = [8, 192], strides = [1, 1]} : vector<8x256xf32> to vector<8x192xf32>
    %cst_55 = arith.constant 5.000000e-01 : f32
    %120 = vector.broadcast %cst_55 : f32 to vector<8x192xf32>
    %121 = arith.mulf %120, %119 : vector<8x192xf32>
    %122 = math.tanh %121 : vector<8x192xf32>
    %cst_56 = arith.constant 5.000000e-01 : f32
    %123 = vector.broadcast %cst_56 : f32 to vector<8x192xf32>
    %124 = arith.mulf %123, %122 : vector<8x192xf32>
    %cst_57 = arith.constant 5.000000e-01 : f32
    %125 = vector.broadcast %cst_57 : f32 to vector<8x192xf32>
    %126 = arith.addf %124, %125 : vector<8x192xf32>
    %127 = vector.extract_strided_slice %118 {offsets = [0, 192], sizes = [8, 64], strides = [1, 1]} : vector<8x256xf32> to vector<8x64xf32>
    %128 = math.tanh %127 : vector<8x64xf32>
    %129 = vector.extract_strided_slice %126 {offsets = [0, 0], sizes = [8, 64], strides = [1, 1]} : vector<8x192xf32> to vector<8x64xf32>
    %130 = vector.extract_strided_slice %126 {offsets = [0, 64], sizes = [8, 64], strides = [1, 1]} : vector<8x192xf32> to vector<8x64xf32>
    %131 = vector.extract_strided_slice %126 {offsets = [0, 128], sizes = [8, 64], strides = [1, 1]} : vector<8x192xf32> to vector<8x64xf32>
    %132 = arith.mulf %130, %88 : vector<8x64xf32>
    %133 = arith.mulf %129, %128 : vector<8x64xf32>
    %134 = arith.addf %132, %133 : vector<8x64xf32>
    %135 = math.tanh %134 : vector<8x64xf32>
    %136 = arith.mulf %131, %135 : vector<8x64xf32>
    %c472 = arith.constant 472 : index
    %c0_58 = arith.constant 0 : index
    %137 = vector.load %arg18[%c472, %c0_58] : memref<480x256xf32, #tpu.memory_space<vmem>>, vector<8x256xf32>
    %c0_59 = arith.constant 0 : index
    %c0_60 = arith.constant 0 : index
    %138 = vector.load %arg4[%c0_59, %c0_60] : memref<64x256xf32, #tpu.memory_space<vmem>>, vector<64x256xf32>
    %cst_61 = arith.constant dense<0.000000e+00> : vector<8x256xf32>
    %139 = tpu.matmul %112, %138, %cst_61 {dimension_numbers = #tpu.dot_dimension_numbers<[1], [0], [0], [1], [0, 0, 1, 1], [], []>} : vector<8x64xf32>, vector<64x256xf32>, vector<8x256xf32> -> vector<8x256xf32>
    %140 = arith.addf %137, %139 : vector<8x256xf32>
    %141 = vector.extract_strided_slice %140 {offsets = [0, 0], sizes = [8, 192], strides = [1, 1]} : vector<8x256xf32> to vector<8x192xf32>
    %cst_62 = arith.constant 5.000000e-01 : f32
    %142 = vector.broadcast %cst_62 : f32 to vector<8x192xf32>
    %143 = arith.mulf %142, %141 : vector<8x192xf32>
    %144 = math.tanh %143 : vector<8x192xf32>
    %cst_63 = arith.constant 5.000000e-01 : f32
    %145 = vector.broadcast %cst_63 : f32 to vector<8x192xf32>
    %146 = arith.mulf %145, %144 : vector<8x192xf32>
    %cst_64 = arith.constant 5.000000e-01 : f32
    %147 = vector.broadcast %cst_64 : f32 to vector<8x192xf32>
    %148 = arith.addf %146, %147 : vector<8x192xf32>
    %149 = vector.extract_strided_slice %140 {offsets = [0, 192], sizes = [8, 64], strides = [1, 1]} : vector<8x256xf32> to vector<8x64xf32>
    %150 = math.tanh %149 : vector<8x64xf32>
    %151 = vector.extract_strided_slice %148 {offsets = [0, 0], sizes = [8, 64], strides = [1, 1]} : vector<8x192xf32> to vector<8x64xf32>
    %152 = vector.extract_strided_slice %148 {offsets = [0, 64], sizes = [8, 64], strides = [1, 1]} : vector<8x192xf32> to vector<8x64xf32>
    %153 = vector.extract_strided_slice %148 {offsets = [0, 128], sizes = [8, 64], strides = [1, 1]} : vector<8x192xf32> to vector<8x64xf32>
    %154 = arith.mulf %152, %110 : vector<8x64xf32>
    %155 = arith.mulf %151, %150 : vector<8x64xf32>
    %156 = arith.addf %154, %155 : vector<8x64xf32>
    %157 = math.tanh %156 : vector<8x64xf32>
    %158 = arith.mulf %153, %157 : vector<8x64xf32>
    %c0_65 = arith.constant 0 : index
    %c0_66 = arith.constant 0 : index
    %159 = vector.load %arg5[%c0_65, %c0_66] : memref<64x256xf32, #tpu.memory_space<vmem>>, vector<64x256xf32>
    %cst_67 = arith.constant dense<0.000000e+00> : vector<8x256xf32>
    %160 = tpu.matmul %112, %159, %cst_67 {dimension_numbers = #tpu.dot_dimension_numbers<[1], [0], [0], [1], [0, 0, 1, 1], [], []>} : vector<8x64xf32>, vector<64x256xf32>, vector<8x256xf32> -> vector<8x256xf32>
    %c0_68 = arith.constant 0 : index
    %c0_69 = arith.constant 0 : index
    %161 = vector.load %arg7[%c0_68, %c0_69] : memref<64x256xf32, #tpu.memory_space<vmem>>, vector<64x256xf32>
    %cst_70 = arith.constant dense<0.000000e+00> : vector<8x256xf32>
    %162 = tpu.matmul %136, %161, %cst_70 {dimension_numbers = #tpu.dot_dimension_numbers<[1], [0], [0], [1], [0, 0, 1, 1], [], []>} : vector<8x64xf32>, vector<64x256xf32>, vector<8x256xf32> -> vector<8x256xf32>
    %163 = arith.addf %160, %162 : vector<8x256xf32>
    %164 = arith.addf %163, %19 : vector<8x256xf32>
    %165 = vector.extract_strided_slice %164 {offsets = [0, 0], sizes = [8, 192], strides = [1, 1]} : vector<8x256xf32> to vector<8x192xf32>
    %cst_71 = arith.constant 5.000000e-01 : f32
    %166 = vector.broadcast %cst_71 : f32 to vector<8x192xf32>
    %167 = arith.mulf %166, %165 : vector<8x192xf32>
    %168 = math.tanh %167 : vector<8x192xf32>
    %cst_72 = arith.constant 5.000000e-01 : f32
    %169 = vector.broadcast %cst_72 : f32 to vector<8x192xf32>
    %170 = arith.mulf %169, %168 : vector<8x192xf32>
    %cst_73 = arith.constant 5.000000e-01 : f32
    %171 = vector.broadcast %cst_73 : f32 to vector<8x192xf32>
    %172 = arith.addf %170, %171 : vector<8x192xf32>
    %173 = vector.extract_strided_slice %164 {offsets = [0, 192], sizes = [8, 64], strides = [1, 1]} : vector<8x256xf32> to vector<8x64xf32>
    %174 = math.tanh %173 : vector<8x64xf32>
    %175 = vector.extract_strided_slice %172 {offsets = [0, 0], sizes = [8, 64], strides = [1, 1]} : vector<8x192xf32> to vector<8x64xf32>
    %176 = vector.extract_strided_slice %172 {offsets = [0, 64], sizes = [8, 64], strides = [1, 1]} : vector<8x192xf32> to vector<8x64xf32>
    %177 = vector.extract_strided_slice %172 {offsets = [0, 128], sizes = [8, 64], strides = [1, 1]} : vector<8x192xf32> to vector<8x64xf32>
    %178 = arith.mulf %176, %134 : vector<8x64xf32>
    %179 = arith.mulf %175, %174 : vector<8x64xf32>
    %180 = arith.addf %178, %179 : vector<8x64xf32>
    %181 = math.tanh %180 : vector<8x64xf32>
    %182 = arith.mulf %177, %181 : vector<8x64xf32>
    %c0_74 = arith.constant 0 : index
    %c0_75 = arith.constant 0 : index
    %183 = vector.load %arg5[%c0_74, %c0_75] : memref<64x256xf32, #tpu.memory_space<vmem>>, vector<64x256xf32>
    %cst_76 = arith.constant dense<0.000000e+00> : vector<8x256xf32>
    %184 = tpu.matmul %158, %183, %cst_76 {dimension_numbers = #tpu.dot_dimension_numbers<[1], [0], [0], [1], [0, 0, 1, 1], [], []>} : vector<8x64xf32>, vector<64x256xf32>, vector<8x256xf32> -> vector<8x256xf32>
    %c0_77 = arith.constant 0 : index
    %c0_78 = arith.constant 0 : index
    %185 = vector.load %arg7[%c0_77, %c0_78] : memref<64x256xf32, #tpu.memory_space<vmem>>, vector<64x256xf32>
    %cst_79 = arith.constant dense<0.000000e+00> : vector<8x256xf32>
    %186 = tpu.matmul %182, %185, %cst_79 {dimension_numbers = #tpu.dot_dimension_numbers<[1], [0], [0], [1], [0, 0, 1, 1], [], []>} : vector<8x64xf32>, vector<64x256xf32>, vector<8x256xf32> -> vector<8x256xf32>
    %187 = arith.addf %184, %186 : vector<8x256xf32>
    %188 = arith.addf %187, %19 : vector<8x256xf32>
    %189 = vector.extract_strided_slice %188 {offsets = [0, 0], sizes = [8, 192], strides = [1, 1]} : vector<8x256xf32> to vector<8x192xf32>
    %cst_80 = arith.constant 5.000000e-01 : f32
    %190 = vector.broadcast %cst_80 : f32 to vector<8x192xf32>
    %191 = arith.mulf %190, %189 : vector<8x192xf32>
    %192 = math.tanh %191 : vector<8x192xf32>
    %cst_81 = arith.constant 5.000000e-01 : f32
    %193 = vector.broadcast %cst_81 : f32 to vector<8x192xf32>
    %194 = arith.mulf %193, %192 : vector<8x192xf32>
    %cst_82 = arith.constant 5.000000e-01 : f32
    %195 = vector.broadcast %cst_82 : f32 to vector<8x192xf32>
    %196 = arith.addf %194, %195 : vector<8x192xf32>
    %197 = vector.extract_strided_slice %188 {offsets = [0, 192], sizes = [8, 64], strides = [1, 1]} : vector<8x256xf32> to vector<8x64xf32>
    %198 = math.tanh %197 : vector<8x64xf32>
    %199 = vector.extract_strided_slice %196 {offsets = [0, 0], sizes = [8, 64], strides = [1, 1]} : vector<8x192xf32> to vector<8x64xf32>
    %200 = vector.extract_strided_slice %196 {offsets = [0, 64], sizes = [8, 64], strides = [1, 1]} : vector<8x192xf32> to vector<8x64xf32>
    %201 = vector.extract_strided_slice %196 {offsets = [0, 128], sizes = [8, 64], strides = [1, 1]} : vector<8x192xf32> to vector<8x64xf32>
    %202 = arith.mulf %200, %180 : vector<8x64xf32>
    %203 = arith.mulf %199, %198 : vector<8x64xf32>
    %204 = arith.addf %202, %203 : vector<8x64xf32>
    %205 = math.tanh %204 : vector<8x64xf32>
    %206 = arith.mulf %201, %205 : vector<8x64xf32>
    %cst_83 = arith.constant 0.000000e+00 : f32
    %207 = vector.broadcast %cst_83 : f32 to vector<8x64xf32>
    %208 = arith.maximumf %206, %207 : vector<8x64xf32>
    %c0_84 = arith.constant 0 : index
    %c0_85 = arith.constant 0 : index
    %209 = vector.load %arg8[%c0_84, %c0_85] : memref<64x64xf32, #tpu.memory_space<vmem>>, vector<64x64xf32>
    %cst_86 = arith.constant dense<0.000000e+00> : vector<8x64xf32>
    %210 = tpu.matmul %208, %209, %cst_86 {dimension_numbers = #tpu.dot_dimension_numbers<[1], [0], [0], [1], [0, 0, 1, 1], [], []>} : vector<8x64xf32>, vector<64x64xf32>, vector<8x64xf32> -> vector<8x64xf32>
    %c0_87 = arith.constant 0 : index
    %c0_88 = arith.constant 0 : index
    %211 = vector.load %arg9[%c0_87, %c0_88] : memref<1x64xf32, #tpu.memory_space<vmem>>, vector<1x64xf32>
    %212 = vector.broadcast %211 : vector<1x64xf32> to vector<8x64xf32>
    %213 = arith.addf %210, %212 : vector<8x64xf32>
    %cst_89 = arith.constant 0.000000e+00 : f32
    %214 = vector.broadcast %cst_89 : f32 to vector<8x64xf32>
    %215 = arith.maximumf %213, %214 : vector<8x64xf32>
    %c0_90 = arith.constant 0 : index
    %c0_91 = arith.constant 0 : index
    %216 = vector.load %arg10[%c0_90, %c0_91] : memref<64x64xf32, #tpu.memory_space<vmem>>, vector<64x64xf32>
    %cst_92 = arith.constant dense<0.000000e+00> : vector<8x64xf32>
    %217 = tpu.matmul %215, %216, %cst_92 {dimension_numbers = #tpu.dot_dimension_numbers<[1], [0], [0], [1], [0, 0, 1, 1], [], []>} : vector<8x64xf32>, vector<64x64xf32>, vector<8x64xf32> -> vector<8x64xf32>
    %c0_93 = arith.constant 0 : index
    %c0_94 = arith.constant 0 : index
    %218 = vector.load %arg11[%c0_93, %c0_94] : memref<64x64xf32, #tpu.memory_space<vmem>>, vector<64x64xf32>
    %cst_95 = arith.constant dense<0.000000e+00> : vector<8x64xf32>
    %219 = tpu.matmul %7, %218, %cst_95 {dimension_numbers = #tpu.dot_dimension_numbers<[1], [0], [0], [1], [0, 0, 1, 1], [], []>} : vector<8x64xf32>, vector<64x64xf32>, vector<8x64xf32> -> vector<8x64xf32>
    %220 = arith.addf %217, %219 : vector<8x64xf32>
    %c0_96 = arith.constant 0 : index
    %c0_97 = arith.constant 0 : index
    %221 = vector.load %arg12[%c0_96, %c0_97] : memref<1x64xf32, #tpu.memory_space<vmem>>, vector<1x64xf32>
    %222 = vector.broadcast %221 : vector<1x64xf32> to vector<8x64xf32>
    %223 = arith.addf %220, %222 : vector<8x64xf32>
    %cst_98 = arith.constant 0.000000e+00 : f32
    %224 = vector.broadcast %cst_98 : f32 to vector<8x64xf32>
    %225 = arith.maximumf %223, %224 : vector<8x64xf32>
    %c0_99 = arith.constant 0 : index
    %c0_100 = arith.constant 0 : index
    %226 = vector.load %arg13[%c0_99, %c0_100] : memref<64x3xf32, #tpu.memory_space<vmem>>, vector<64x3xf32>
    %cst_101 = arith.constant dense<0.000000e+00> : vector<8x3xf32>
    %227 = tpu.matmul %225, %226, %cst_101 {dimension_numbers = #tpu.dot_dimension_numbers<[1], [0], [0], [1], [0, 0, 1, 1], [], []>} : vector<8x64xf32>, vector<64x3xf32>, vector<8x3xf32> -> vector<8x3xf32>
    %c0_102 = arith.constant 0 : index
    %c0_103 = arith.constant 0 : index
    %228 = vector.load %arg14[%c0_102, %c0_103] : memref<1x3xf32, #tpu.memory_space<vmem>>, vector<1x3xf32>
    %229 = vector.broadcast %228 : vector<1x3xf32> to vector<8x3xf32>
    %230 = arith.addf %227, %229 : vector<8x3xf32>
    %cst_104 = arith.constant dense<0xFF800000> : vector<8xf32>
    %231 = vector.multi_reduction <maximumf>, %230, %cst_104 [1] : vector<8x3xf32> to vector<8xf32>
    %232 = vector.shape_cast %231 : vector<8xf32> to vector<8x1xf32>
    %233 = vector.broadcast %232 : vector<8x1xf32> to vector<8x3xf32>
    %234 = arith.subf %230, %233 : vector<8x3xf32>
    %235 = math.exp %234 : vector<8x3xf32>
    %cst_105 = arith.constant dense<0.000000e+00> : vector<8xf32>
    %236 = vector.multi_reduction <add>, %235, %cst_105 [1] : vector<8x3xf32> to vector<8xf32>
    %237 = vector.shape_cast %236 : vector<8xf32> to vector<8x1xf32>
    %238 = vector.broadcast %237 : vector<8x1xf32> to vector<8x3xf32>
    %239 = arith.divf %235, %238 : vector<8x3xf32>
    %c0_106 = arith.constant 0 : index
    %c0_107 = arith.constant 0 : index
    %240 = vector.load %arg17[%c0_106, %c0_107] : memref<8x3xf32, #tpu.memory_space<vmem>>, vector<8x3xf32>
    tpu.vector_store %arg17[%c0_106, %c0_107], %239 {strides = array<i32>} : memref<8x3xf32, #tpu.memory_space<vmem>>, vector<8x3xf32>,
    return
  }
}

</mosaic_0001>

<bundles_post_ra>
// kernel: net_forward.1
= control target key start
LH: loop header
LB: loop body
LE: loop exit
PB: predicated region body
PF: predicated region fallthrough
CT: control target
= control target key end

     0   :  { %vm918_vm0 = vcmask 523264   ;;  %v5580_v3 = vmov 0.0   ;;  %v5581_v4 = vmov 0   ;;  %v506_v47 = vlaneseq  ;;  %s7234_s4 = inlined_call_operand.vmem [shape: f32[64,256], index: 4, kind: input, shape index: {}]   ;;  %s7235_s0 = inlined_call_operand.vmem [shape: f32[480,1], index: 0, kind: input, shape index: {}]   ;;  %s7236_s6 = inlined_call_operand.vmem [shape: f32[1,256], index: 6, kind: input, shape index: {}]   ;;  %s7237_s2 = inlined_call_operand.vmem [shape: f32[1,256], index: 2, kind: input, shape index: {}]   ;;  %s7238_s3 = inlined_call_operand.vmem [shape: f32[1,256], index: 3, kind: input, shape index: {}]   ;;  %s7239_s15 = inlined_call_operand.vmem [shape: f32[3,64], index: 15, kind: input, shape index: {}]   ;;  %s7240_s1 = inlined_call_operand.vmem [shape: f32[8,3], index: 1, kind: input, shape index: {}]   ;;  %s7241_s5 = inlined_call_operand.vmem [shape: f32[64,256], index: 5, kind: input, shape index: {}]   ;;  %s7242_s7 = inlined_call_operand.vmem [shape: f32[64,256], index: 7, kind: input, shape index: {}]   ;;  %s7243_s8 = inlined_call_operand.vmem [shape: f32[64,64], index: 8, kind: input, shape index: {}]   ;;  %s7244_s9 = inlined_call_operand.vmem [shape: f32[1,64], index: 9, kind: input, shape index: {}]   ;;  %s7245_s10 = inlined_call_operand.vmem [shape: f32[64,64], index: 10, kind: input, shape index: {}]   ;;  %s7246_s11 = inlined_call_operand.vmem [shape: f32[64,64], index: 11, kind: input, shape index: {}]   ;;  %s7247_s12 = inlined_call_operand.vmem [shape: f32[1,64], index: 12, kind: input, shape index: {}]   ;;  %s7248_s13 = inlined_call_operand.vmem [shape: f32[64,3], index: 13, kind: input, shape index: {}]   ;;  %s7249_s14 = inlined_call_operand.vmem [shape: f32[1,3], index: 14, kind: input, shape index: {}]   ;;  %s7250_s17 = inlined_call_operand.vmem [shape: f32[8,3], index: 17, kind: output, shape index: {}]   ;;  %s7251_s16 = inlined_call_operand.vmem [shape: f32[1,64], index: 16, kind: input, shape index: {}]  }
   0x1   :  { %7255 = sst [smem:[#allocation3_spill]] %s7234_s4  ;;  %986 = vmatprep.mubr.f32.mxu1 %v5580_v3  ;;  %5358 = vset.pattern.permute.xlu0 %v5581_v4  ;;  %v888_v51 = vld [vmem:[%s7236_s6] sm:$0x3]  ;;  %vm69_vm1 = vcmask 1042432   ;;  %vm65_vm2 = vcmask 23552   ;;  %vm5583_vm3 = vmmov 0  }
   0x2   :  { %7256 = sst [smem:[#allocation4_spill]] %s7235_s0  ;;  %s7257_s26 = sld [smem:[#allocation3_spill]]  ;;  %5359 = vset.pattern.permute.xlu1 %v5581_v4  ;;  %4632 = vmatprep.subr.mxu0 %v5580_v3  ;;  %v507_v49 = vshrl.u32 %v506_v47, 7  ;;  %v204_v55 = vld [vmem:[%s7237_s2] sm:$0x3] }
   0x3   :  { %s7258_s22 = sld [smem:[#allocation4_spill]]  ;;  %v636_v56 = vld [vmem:[%s7238_s3] sm:$0x3]  ;;  %s5582_s2 = smov 64   ;;  %4634 = vmatprep.mubr.msk.f32.mxu0 %vm5583_vm3, %v5580_v3 }
   0x4   :  { %v508_v50 = vsub.s32 0, %v507_v49  ;;  %v512_v53 = vsub.s32 1, %v507_v49 }
   0x6   :  { %v5821_v52 = vrot.slane %v888_v51, %v508_v50  ;;  %v5823_v54 = vrot.slane %v888_v51, %v512_v53  ;;  %v5831_v57 = vrot.slane %v204_v55, %v508_v50  ;;  %v5833_v58 = vrot.slane %v204_v55, %v512_v53 }
   0x7   :  { %v5835_v59 = vrot.slane %v636_v56, %v508_v50  ;;  %v5837_v60 = vrot.slane %v636_v56, %v512_v53 }
   0x8   :  { %v903_v0 = vld [vmem:[%s7257_s26 + $0x8] sm:$0xff]  ;;  %v905_v1 = vld [vmem:[%s7257_s26 + $0x18] sm:$0xff]  ;;  %v902_v2 = vld [vmem:[%s7257_s26] sm:$0xff] }
   0x9   :  { %v5687_v5 = vpack.c.bf16 %v905_v1, %v903_v0  ;;  %v904_v6 = vld [vmem:[%s7257_s26 + $0x10] sm:$0xff]  ;;  %v907_v7 = vld [vmem:[%s7257_s26 + $0x28] sm:$0xff]  ;;  %v909_v8 = vld [vmem:[%s7257_s26 + $0x38] sm:$0xff] }
   0xa   :  { %v5699_v9 = vpack.c.bf16 %v904_v6, %v902_v2  ;;  %v5701_v10 = vpack.c.bf16 %v909_v8, %v907_v7  ;;  %v906_v11 = vld [vmem:[%s7257_s26 + $0x20] sm:$0xff]  ;;  %v908_v12 = vld [vmem:[%s7257_s26 + $0x30] sm:$0xff]  ;;  %v911_v13 = vld [vmem:[%s7257_s26 + $0x48] sm:$0xff] }
   0xb   :  { %4714 = vmatprep.subr.bf16.mxu1 %v5687_v5  ;;  %v913_v14 = vld [vmem:[%s7257_s26 + $0x58] sm:$0xff]  ;;  %v5717_v15 = vpack.c.bf16 %v908_v12, %v906_v11  ;;  %v910_v17 = vld [vmem:[%s7257_s26 + $0x40] sm:$0xff]  ;;  %v912_v18 = vld [vmem:[%s7257_s26 + $0x50] sm:$0xff] }
   0xc   :  { %4716 = vmatpush1.bf16.msra.mxu1 %v5699_v9  ;;  %v5720_v16 = vpack.c.bf16 %v913_v14, %v911_v13  ;;  %v144_v19 = vld [vmem:[%s7258_s22] sm:$0xff]  ;;  %v915_v20 = vld [vmem:[%s7257_s26 + $0x68] sm:$0xff]  ;;  %v917_v21 = vld [vmem:[%s7257_s26 + $0x78] sm:$0xff]  ;;  %v5741_v23 = vpack.c.bf16 %v912_v18, %v910_v17 }
   0xd   :  { %4718 = vmatprep.subr.bf16.mxu1 %v5701_v10  ;;  %207 = vperm.xlu0 %5358, %v144_v19   ;;  %v145_v22 = vld [vmem:[%s7258_s22 + $0x8] sm:$0xff]  ;;  %v5744_v24 = vpack.c.bf16 %v917_v21, %v915_v20  ;;  %v914_v25 = vld [vmem:[%s7257_s26 + $0x60] sm:$0xff]  ;;  %v916_v26 = vld [vmem:[%s7257_s26 + $0x70] sm:$0xff] }
   0xe   :  { %v148_v27 = vld [vmem:[%s7258_s22 + $0x20] sm:$0xff]  ;;  %v5756_v28 = vpack.c.bf16 %v916_v26, %v914_v25  ;;  %v150_v29 = vld [vmem:[%s7258_s22 + $0x30] sm:$0xff]  ;;  %v147_v34 = vld [vmem:[%s7258_s22 + $0x18] sm:$0xff] }
   0xf   :  { %v152_v30 = vld [vmem:[%s7258_s22 + $0x40] sm:$0xff]  ;;  %v154_v31 = vld [vmem:[%s7258_s22 + $0x50] sm:$0xff]  ;;  %v149_v36 = vld [vmem:[%s7258_s22 + $0x28] sm:$0xff] }
  0x10   :  { %4720 = vmatpush1.bf16.msra.mxu1 %v5717_v15  ;;  %v146_v32 = vld [vmem:[%s7258_s22 + $0x10] sm:$0xff]  ;;  %v156_v33 = vld [vmem:[%s7258_s22 + $0x60] sm:$0xff]  ;;  %v159_v37 = vld [vmem:[%s7258_s22 + $0x78] sm:$0xff] }
  0x11   :  { %4722 = vmatprep.subr.bf16.mxu1 %v5720_v16  ;;  %212 = vperm.xlu0 %5358, %v145_v22   ;;  %v158_v35 = vld [vmem:[%s7258_s22 + $0x70] sm:$0xff]  ;;  %v151_v38 = vld [vmem:[%s7258_s22 + $0x38] sm:$0xff]  ;;  %v161_v39 = vld [vmem:[%s7258_s22 + $0x88] sm:$0xff] }
  0x12   :  { %217 = vperm.xlu1 %5359, %v146_v32   ;;  %v153_v40 = vld [vmem:[%s7258_s22 + $0x48] sm:$0xff]  ;;  %v163_v41 = vld [vmem:[%s7258_s22 + $0x98] sm:$0xff] }
  0x13   :  { %v155_v42 = vld [vmem:[%s7258_s22 + $0x58] sm:$0xff]  ;;  %v165_v43 = vld [vmem:[%s7258_s22 + $0xa8] sm:$0xff] }
  0x14   :  { %4724 = vmatpush1.bf16.msra.mxu1 %v5741_v23  ;;  %v157_v44 = vld [vmem:[%s7258_s22 + $0x68] sm:$0xff]  ;;  %v167_v45 = vld [vmem:[%s7258_s22 + $0xb8] sm:$0xff] }
  0x15   :  { %4726 = vmatprep.subr.bf16.mxu1 %v5744_v24  ;;  %227 = vperm.xlu0 %5358, %v148_v27   ;;  %v169_v46 = vld [vmem:[%s7258_s22 + $0xc8] sm:$0xff]  ;;  %v171_v48 = vld [vmem:[%s7258_s22 + $0xd8] sm:$0xff] }
  0x16   :  { %222 = vperm.xlu1 %5359, %v147_v34  }
  0x18   :  { %4728 = vmatpush1.bf16.msra.mxu1 %v5756_v28 }
  0x19   :  { %237 = vperm.xlu0 %5358, %v150_v29  }
  0x1a   :  { %232 = vperm.xlu1 %5359, %v149_v36  }
  0x1b   :  { %987 = vmatmul.mubr.f32.vlgmr.msra.gmra.mrb[0].mxu1 %v5580_v3 }
  0x1d   :  { %247 = vperm.xlu0 %5358, %v152_v30  }
  0x1e   :  { %242 = vperm.xlu1 %5359, %v151_v38  }
  0x21   :  { %257 = vperm.xlu0 %5358, %v154_v31  }
  0x22   :  { %252 = vperm.xlu1 %5359, %v153_v40  }
  0x25   :  { %267 = vperm.xlu0 %5358, %v156_v33  }
  0x26   :  { %262 = vperm.xlu1 %5359, %v155_v42  }
  0x29   :  { %277 = vperm.xlu0 %5358, %v158_v35  }
  0x2a   :  { %272 = vperm.xlu1 %5359, %v157_v44  }
  0x2d   :  { %282 = vperm.xlu0 %5358, %v159_v37  }
  0x31   :  { %292 = vperm.xlu0 %5358, %v161_v39  }
  0x35   :  { %302 = vperm.xlu0 %5358, %v163_v41  }
  0x39   :  { %312 = vperm.xlu0 %5358, %v165_v43  }
  0x3d   :  { %322 = vperm.xlu0 %5358, %v167_v45  }
  0x41   :  { %332 = vperm.xlu0 %5358, %v169_v46  }
  0x45   :  { %342 = vperm.xlu0 %5358, %v171_v48  }
  0x8c   :  { %v208_v61 = vpop.permute.xlu0 %207 }
  0x8d   :  { %v516_v62 = vmul.f32 %v5831_v57, %v208_v61  ;;  %v517_v63 = vmul.f32 %v5833_v58, %v208_v61 }
  0x8f   :  { %v5842_v0 = vadd.f32 %v5835_v59, %v516_v62  ;;  %v5845_v1 = vadd.f32 %v5837_v60, %v517_v63 }
  0x90   :  { %v213_v2 = vpop.permute.xlu0 %212 }
  0x91   :  { %768 = vst [vmem:[#allocation2] sm:$0xff] %v5842_v0  ;;  %769 = vst [vmem:[#allocation2 + $0x8] sm:$0xff] %v5845_v1  ;;  %v518_v4 = vmul.f32 %v5831_v57, %v213_v2  ;;  %v519_v6 = vmul.f32 %v5833_v58, %v213_v2 }
  0x93   :  { %v650_v7 = vadd.f32 %v5835_v59, %v518_v4  ;;  %v651_v8 = vadd.f32 %v5837_v60, %v519_v6 }
  0x94   :  { %v228_v11 = vpop.permute.xlu0 %227 }
  0x95   :  { %770 = vst [vmem:[#allocation2 + $0x10] sm:$0xff] %v650_v7  ;;  %771 = vst [vmem:[#allocation2 + $0x18] sm:$0xff] %v651_v8  ;;  %v524_v12 = vmul.f32 %v5831_v57, %v228_v11  ;;  %v525_v13 = vmul.f32 %v5833_v58, %v228_v11  ;;  %v218_v8 = vpop.permute.xlu1 %217 }
  0x97   :  { %v656_v14 = vadd.f32 %v5835_v59, %v524_v12  ;;  %v657_v17 = vadd.f32 %v5837_v60, %v525_v13  ;;  %v520_v13 = vmul.f32 %v5831_v57, %v218_v8 }
  0x98   :  { %v238_v18 = vpop.permute.xlu0 %237 }
  0x99   :  { %776 = vst [vmem:[#allocation2 + $0x40] sm:$0xff] %v656_v14  ;;  %777 = vst [vmem:[#allocation2 + $0x48] sm:$0xff] %v657_v17  ;;  %v528_v19 = vmul.f32 %v5831_v57, %v238_v18  ;;  %v529_v20 = vmul.f32 %v5833_v58, %v238_v18  ;;  %v521_v14 = vmul.f32 %v5833_v58, %v218_v8 }
  0x9b   :  { %v660_v21 = vadd.f32 %v5835_v59, %v528_v19  ;;  %v661_v22 = vadd.f32 %v5837_v60, %v529_v20  ;;  %v652_v19 = vadd.f32 %v5835_v59, %v520_v13  ;;  %v653_v20 = vadd.f32 %v5837_v60, %v521_v14 }
  0x9c   :  { %v248_v25 = vpop.permute.xlu0 %247 }
  0x9d   :  { %780 = vst [vmem:[#allocation2 + $0x60] sm:$0xff] %v660_v21  ;;  %781 = vst [vmem:[#allocation2 + $0x68] sm:$0xff] %v661_v22  ;;  %v532_v26 = vmul.f32 %v5831_v57, %v248_v25  ;;  %v533_v27 = vmul.f32 %v5833_v58, %v248_v25  ;;  %v223_v22 = vpop.permute.xlu1 %222 }
  0x9e   :  { %772 = vst [vmem:[#allocation2 + $0x20] sm:$0xff] %v652_v19  ;;  %773 = vst [vmem:[#allocation2 + $0x28] sm:$0xff] %v653_v20 }
  0x9f   :  { %v664_v29 = vadd.f32 %v5835_v59, %v532_v26  ;;  %v665_v30 = vadd.f32 %v5837_v60, %v533_v27  ;;  %v522_v27 = vmul.f32 %v5831_v57, %v223_v22 }
  0xa0   :  { %v258_v31 = vpop.permute.xlu0 %257 }
  0xa1   :  { %784 = vst [vmem:[#allocation2 + $0x80] sm:$0xff] %v664_v29  ;;  %785 = vst [vmem:[#allocation2 + $0x88] sm:$0xff] %v665_v30  ;;  %v536_v32 = vmul.f32 %v5831_v57, %v258_v31  ;;  %v537_v33 = vmul.f32 %v5833_v58, %v258_v31  ;;  %v523_v29 = vmul.f32 %v5833_v58, %v223_v22 }
  0xa3   :  { %v668_v34 = vadd.f32 %v5835_v59, %v536_v32  ;;  %v669_v35 = vadd.f32 %v5837_v60, %v537_v33  ;;  %v654_v32 = vadd.f32 %v5835_v59, %v522_v27  ;;  %v655_v33 = vadd.f32 %v5837_v60, %v523_v29  ;;  %v166_v27 = vld [vmem:[%s7258_s22 + $0xb0] sm:$0xff]  ;;  %v57_v29 = vld [vmem:[%s7239_s15] sm:$0x7] }
  0xa4   :  { %v268_v36 = vpop.permute.xlu0 %267  ;;  %4633 = vmatpush3.msk.msra.mxu0 %vm69_vm1, %v57_v29 }
  0xa5   :  { %788 = vst [vmem:[#allocation2 + $0xa0] sm:$0xff] %v668_v34  ;;  %789 = vst [vmem:[#allocation2 + $0xa8] sm:$0xff] %v669_v35  ;;  %v540_v37 = vmul.f32 %v5831_v57, %v268_v36  ;;  %v541_v38 = vmul.f32 %v5833_v58, %v268_v36  ;;  %v233_v35 = vpop.permute.xlu1 %232 }
  0xa6   :  { %774 = vst [vmem:[#allocation2 + $0x30] sm:$0xff] %v654_v32  ;;  %775 = vst [vmem:[#allocation2 + $0x38] sm:$0xff] %v655_v33  ;;  %v170_v32 = vld [vmem:[%s7258_s22 + $0xd0] sm:$0xff]  ;;  %v172_v33 = vld [vmem:[%s7258_s22 + $0xe0] sm:$0xff] }
  0xa7   :  { %v672_v39 = vadd.f32 %v5835_v59, %v540_v37  ;;  %v673_v40 = vadd.f32 %v5837_v60, %v541_v38  ;;  %v526_v38 = vmul.f32 %v5831_v57, %v233_v35 }
  0xa8   :  { %v278_v41 = vpop.permute.xlu0 %277 }
  0xa9   :  { %792 = vst [vmem:[#allocation2 + $0xc0] sm:$0xff] %v672_v39  ;;  %793 = vst [vmem:[#allocation2 + $0xc8] sm:$0xff] %v673_v40  ;;  %v544_v42 = vmul.f32 %v5831_v57, %v278_v41  ;;  %v545_v43 = vmul.f32 %v5833_v58, %v278_v41  ;;  %v527_v39 = vmul.f32 %v5833_v58, %v233_v35  ;;  %v175_v35 = vld [vmem:[%s7258_s22 + $0xf8] sm:$0xff] }
  0xab   :  { %v676_v44 = vadd.f32 %v5835_v59, %v544_v42  ;;  %v677_v45 = vadd.f32 %v5837_v60, %v545_v43  ;;  %v658_v42 = vadd.f32 %v5835_v59, %v526_v38  ;;  %v659_v43 = vadd.f32 %v5837_v60, %v527_v39  ;;  %v181_v38 = vld [vmem:[%s7258_s22 + $0x128] sm:$0xff]  ;;  %v183_v39 = vld [vmem:[%s7258_s22 + $0x138] sm:$0xff] }
  0xac   :  { %v283_v46 = vpop.permute.xlu0 %282 }
  0xad   :  { %796 = vst [vmem:[#allocation2 + $0xe0] sm:$0xff] %v676_v44  ;;  %797 = vst [vmem:[#allocation2 + $0xe8] sm:$0xff] %v677_v45  ;;  %v546_v47 = vmul.f32 %v5831_v57, %v283_v46  ;;  %v547_v48 = vmul.f32 %v5833_v58, %v283_v46  ;;  %v243_v45 = vpop.permute.xlu1 %242 }
  0xae   :  { %778 = vst [vmem:[#allocation2 + $0x50] sm:$0xff] %v658_v42  ;;  %779 = vst [vmem:[#allocation2 + $0x58] sm:$0xff] %v659_v43  ;;  %v189_v42 = vld [vmem:[%s7258_s22 + $0x168] sm:$0xff]  ;;  %v191_v43 = vld [vmem:[%s7258_s22 + $0x178] sm:$0xff] }
  0xaf   :  { %v678_v49 = vadd.f32 %v5835_v59, %v546_v47  ;;  %v679_v50 = vadd.f32 %v5837_v60, %v547_v48  ;;  %v530_v48 = vmul.f32 %v5831_v57, %v243_v45 }
  0xb0   :  { %v293_v51 = vpop.permute.xlu0 %292 }
  0xb1   :  { %798 = vst [vmem:[#allocation2 + $0xf0] sm:$0xff] %v678_v49  ;;  %799 = vst [vmem:[#allocation2 + $0xf8] sm:$0xff] %v679_v50  ;;  %v550_v53 = vmul.f32 %v5831_v57, %v293_v51  ;;  %v551_v55 = vmul.f32 %v5833_v58, %v293_v51  ;;  %v531_v49 = vmul.f32 %v5833_v58, %v243_v45  ;;  %v195_v45 = vld [vmem:[%s7258_s22 + $0x198] sm:$0xff] }
  0xb3   :  { %v682_v56 = vadd.f32 %v5835_v59, %v550_v53  ;;  %v683_v61 = vadd.f32 %v5837_v60, %v551_v55  ;;  %v662_v53 = vadd.f32 %v5835_v59, %v530_v48  ;;  %v663_v55 = vadd.f32 %v5837_v60, %v531_v49  ;;  %v201_v48 = vld [vmem:[%s7258_s22 + $0x1c8] sm:$0xff] }
  0xb4   :  { %v303_v62 = vpop.permute.xlu0 %302 }
  0xb5   :  { %802 = vst [vmem:[#allocation2 + $0x110] sm:$0xff] %v682_v56  ;;  %803 = vst [vmem:[#allocation2 + $0x118] sm:$0xff] %v683_v61  ;;  %v554_v63 = vmul.f32 %v5831_v57, %v303_v62  ;;  %v555_v2 = vmul.f32 %v5833_v58, %v303_v62  ;;  %v253_v56 = vpop.permute.xlu1 %252 }
  0xb6   :  { %782 = vst [vmem:[#allocation2 + $0x70] sm:$0xff] %v662_v53  ;;  %783 = vst [vmem:[#allocation2 + $0x78] sm:$0xff] %v663_v55  ;;  %v534_v61 = vmul.f32 %v5831_v57, %v253_v56  ;;  %v535_v62 = vmul.f32 %v5833_v58, %v253_v56 }
  0xb7   :  { %v686_v4 = vadd.f32 %v5835_v59, %v554_v63  ;;  %v687_v6 = vadd.f32 %v5837_v60, %v555_v2 }
  0xb8   :  { %v313_v7 = vpop.permute.xlu0 %312  ;;  %v666_v63 = vadd.f32 %v5835_v59, %v534_v61  ;;  %v667_v2 = vadd.f32 %v5837_v60, %v535_v62 }
  0xb9   :  { %806 = vst [vmem:[#allocation2 + $0x130] sm:$0xff] %v686_v4  ;;  %807 = vst [vmem:[#allocation2 + $0x138] sm:$0xff] %v687_v6  ;;  %v558_v11 = vmul.f32 %v5831_v57, %v313_v7  ;;  %v559_v12 = vmul.f32 %v5833_v58, %v313_v7  ;;  %v263_v4 = vpop.permute.xlu1 %262 }
  0xba   :  { %786 = vst [vmem:[#allocation2 + $0x90] sm:$0xff] %v666_v63  ;;  %787 = vst [vmem:[#allocation2 + $0x98] sm:$0xff] %v667_v2  ;;  %v538_v6 = vmul.f32 %v5831_v57, %v263_v4  ;;  %v539_v7 = vmul.f32 %v5833_v58, %v263_v4  ;;  %v176_v63 = vld [vmem:[%s7258_s22 + $0x100] sm:$0xff]  ;;  %v178_v2 = vld [vmem:[%s7258_s22 + $0x110] sm:$0xff] }
  0xbb   :  { %v690_v17 = vadd.f32 %v5835_v59, %v558_v11  ;;  %v691_v18 = vadd.f32 %v5837_v60, %v559_v12  ;;  %v180_v4 = vld [vmem:[%s7258_s22 + $0x120] sm:$0xff] }
  0xbc   :  { %v323_v21 = vpop.permute.xlu0 %322  ;;  %v670_v8 = vadd.f32 %v5835_v59, %v538_v6  ;;  %v671_v11 = vadd.f32 %v5837_v60, %v539_v7 }
  0xbd   :  { %810 = vst [vmem:[#allocation2 + $0x150] sm:$0xff] %v690_v17  ;;  %811 = vst [vmem:[#allocation2 + $0x158] sm:$0xff] %v691_v18  ;;  %v562_v25 = vmul.f32 %v5831_v57, %v323_v21  ;;  %v563_v26 = vmul.f32 %v5833_v58, %v323_v21  ;;  %v273_v12 = vpop.permute.xlu1 %272 }
  0xbe   :  { %790 = vst [vmem:[#allocation2 + $0xb0] sm:$0xff] %v670_v8  ;;  %791 = vst [vmem:[#allocation2 + $0xb8] sm:$0xff] %v671_v11  ;;  %v542_v13 = vmul.f32 %v5831_v57, %v273_v12  ;;  %v543_v14 = vmul.f32 %v5833_v58, %v273_v12 }
  0xbf   :  { %v694_v30 = vadd.f32 %v5835_v59, %v562_v25  ;;  %v695_v31 = vadd.f32 %v5837_v60, %v563_v26  ;;  %v160_v25 = vld [vmem:[%s7258_s22 + $0x80] sm:$0xff]  ;;  %v162_v26 = vld [vmem:[%s7258_s22 + $0x90] sm:$0xff] }
  0xc0   :  { %v333_v34 = vpop.permute.xlu0 %332  ;;  %v674_v17 = vadd.f32 %v5835_v59, %v542_v13  ;;  %v675_v18 = vadd.f32 %v5837_v60, %v543_v14  ;;  %v182_v13 = vld [vmem:[%s7258_s22 + $0x130] sm:$0xff] }
  0xc1   :  { %814 = vst [vmem:[#allocation2 + $0x170] sm:$0xff] %v694_v30  ;;  %815 = vst [vmem:[#allocation2 + $0x178] sm:$0xff] %v695_v31  ;;  %v566_v36 = vmul.f32 %v5831_v57, %v333_v34  ;;  %v567_v37 = vmul.f32 %v5833_v58, %v333_v34  ;;  %v56_v30 = vld [vmem:[%s7240_s1] sm:$0xff]  ;;  %v173_v34 = vld [vmem:[%s7258_s22 + $0xe8] sm:$0xff] }
  0xc2   :  { %794 = vst [vmem:[#allocation2 + $0xd0] sm:$0xff] %v674_v17  ;;  %795 = vst [vmem:[#allocation2 + $0xd8] sm:$0xff] %v675_v18  ;;  %v168_v31 = vld [vmem:[%s7258_s22 + $0xc0] sm:$0xff]  ;;  %4635 = vmatmul.mubr.msk.f32.vlgmr.msra.gmra.mrb[0].mxu0 %vm65_vm2, %v56_v30  ;;  %v186_v30 = vld [vmem:[%s7258_s22 + $0x150] sm:$0xff] }
  0xc3   :  { %v698_v40 = vadd.f32 %v5835_v59, %v566_v36  ;;  %v699_v41 = vadd.f32 %v5837_v60, %v567_v37  ;;  %v177_v36 = vld [vmem:[%s7258_s22 + $0x108] sm:$0xff]  ;;  %v179_v37 = vld [vmem:[%s7258_s22 + $0x118] sm:$0xff] }
  0xc4   :  { %v343_v44 = vpop.permute.xlu0 %342 }
  0xc5   :  { %818 = vst [vmem:[#allocation2 + $0x190] sm:$0xff] %v698_v40  ;;  %819 = vst [vmem:[#allocation2 + $0x198] sm:$0xff] %v699_v41  ;;  %v570_v46 = vmul.f32 %v5831_v57, %v343_v44  ;;  %v571_v47 = vmul.f32 %v5833_v58, %v343_v44  ;;  %v185_v40 = vld [vmem:[%s7258_s22 + $0x148] sm:$0xff]  ;;  %v187_v41 = vld [vmem:[%s7258_s22 + $0x158] sm:$0xff] }
  0xc6   :  { %v193_v44 = vld [vmem:[%s7258_s22 + $0x188] sm:$0xff] }
  0xc7   :  { %v702_v50 = vadd.f32 %v5835_v59, %v570_v46  ;;  %v703_v51 = vadd.f32 %v5837_v60, %v571_v47  ;;  %v197_v46 = vld [vmem:[%s7258_s22 + $0x1a8] sm:$0xff]  ;;  %v199_v47 = vld [vmem:[%s7258_s22 + $0x1b8] sm:$0xff] }
  0xc9   :  { %822 = vst [vmem:[#allocation2 + $0x1b0] sm:$0xff] %v702_v50  ;;  %823 = vst [vmem:[#allocation2 + $0x1b8] sm:$0xff] %v703_v51  ;;  %v203_v50 = vld [vmem:[%s7258_s22 + $0x1d8] sm:$0xff] }
  0xee   :  { %v5933_v19 = vpop.f32.mrb[0].mxu1 }
  0xef   :  { %v990_v20 = vpop.f32.mrb[1].mxu1  ;;  %v993_v49 = vadd.f32 %v5933_v19, %v5842_v0  ;;  %v174_v0 = vld [vmem:[%s7258_s22 + $0xf0] sm:$0xff] }
  0xf0   :  { %v5936_v21 = vadd.f32 %v990_v20, %v5845_v1  ;;  %v164_v1 = vld [vmem:[%s7258_s22 + $0xa0] sm:$0xff] }
  0xf1   :  { %v995_v51 = vmul.f32 0.5, %v993_v49 }
  0xf2   :  { %5360 = vtanh.f32 %v5936_v21 }
  0xf3   :  { %5362 = vtanh.f32 %v995_v51 }
  0xfc   :  { %v5361_v22 = vpop.eup %5360 }
  0xfd   :  { %1006 = vrot.lane.b32.xlu1 %v5361_v22, %s5582_s2  ;;  %v5363_v53 = vpop.eup %5362  ;;  %v184_v22 = vld [vmem:[%s7258_s22 + $0x140] sm:$0xff] }
  0xfe   :  { %v999_v55 = vmul.f32 0.5, %v5363_v53 }
 0x100   :  { %v6020_v56 = vadd.f32 0.5, %v999_v55 }
 0x101   :  { %287 = vperm.xlu1 %5359, %v160_v25  }
 0x105   :  { %297 = vperm.xlu1 %5359, %v162_v26  }
 0x109   :  { %307 = vperm.xlu1 %5359, %v164_v1  }
 0x10d   :  { %317 = vperm.xlu1 %5359, %v166_v27  }
 0x111   :  { %327 = vperm.xlu1 %5359, %v168_v31  }
 0x115   :  { %337 = vperm.xlu1 %5359, %v170_v32  }
 0x119   :  { %347 = vperm.xlu1 %5359, %v172_v33  }
 0x11d   :  { %352 = vperm.xlu1 %5359, %v173_v34  }
 0x121   :  { %362 = vperm.xlu1 %5359, %v175_v35  }
 0x125   :  { %372 = vperm.xlu1 %5359, %v177_v36   ;;  %v188_v36 = vld [vmem:[%s7258_s22 + $0x160] sm:$0xff] }
 0x129   :  { %382 = vperm.xlu1 %5359, %v179_v37  }
 0x12d   :  { %392 = vperm.xlu1 %5359, %v181_v38  }
 0x131   :  { %402 = vperm.xlu1 %5359, %v183_v39  }
 0x135   :  { %412 = vperm.xlu1 %5359, %v185_v40  }
 0x139   :  { %422 = vperm.xlu1 %5359, %v187_v41  }
 0x13d   :  { %432 = vperm.xlu1 %5359, %v189_v42   ;;  %v190_v42 = vld [vmem:[%s7258_s22 + $0x170] sm:$0xff] }
 0x141   :  { %442 = vperm.xlu1 %5359, %v191_v43  }
 0x145   :  { %452 = vperm.xlu1 %5359, %v193_v44  }
 0x149   :  { %462 = vperm.xlu1 %5359, %v195_v45  }
 0x14d   :  { %472 = vperm.xlu1 %5359, %v197_v46  }
 0x151   :  { %482 = vperm.xlu1 %5359, %v199_v47  }
 0x155   :  { %492 = vperm.xlu1 %5359, %v201_v48   ;;  %v192_v48 = vld [vmem:[%s7258_s22 + $0x180] sm:$0xff] }
 0x159   :  { %502 = vperm.xlu1 %5359, %v203_v50  }
 0x16f   :  { %v1007_v61 = vpop.permute.xlu1 %1006 }
 0x170   :  { %v1009_v62 = vmul.f32 %v1007_v61, %v6020_v56  ;;  %v194_v61 = vld [vmem:[%s7258_s22 + $0x190] sm:$0xff] }
 0x172   :  { %1011 = vrot.lane.b32.xlu0 %v1009_v62, %s5582_s2 }
 0x176   :  { %357 = vperm.xlu0 %5358, %v174_v0  }
 0x17a   :  { %367 = vperm.xlu0 %5358, %v176_v63  }
 0x17e   :  { %377 = vperm.xlu0 %5358, %v178_v2  }
 0x180   :  { %v288_v6 = vpop.permute.xlu1 %287 }
 0x181   :  { %v548_v7 = vmul.f32 %v5831_v57, %v288_v6  ;;  %v549_v8 = vmul.f32 %v5833_v58, %v288_v6  ;;  %v196_v6 = vld [vmem:[%s7258_s22 + $0x1a0] sm:$0xff] }
 0x182   :  { %387 = vperm.xlu0 %5358, %v180_v4  }
 0x183   :  { %v680_v11 = vadd.f32 %v5835_v59, %v548_v7  ;;  %v681_v12 = vadd.f32 %v5837_v60, %v549_v8 }
 0x184   :  { %v298_v14 = vpop.permute.xlu1 %297 }
 0x185   :  { %800 = vst [vmem:[#allocation2 + $0x100] sm:$0xff] %v680_v11  ;;  %801 = vst [vmem:[#allocation2 + $0x108] sm:$0xff] %v681_v12  ;;  %v552_v17 = vmul.f32 %v5831_v57, %v298_v14  ;;  %v553_v18 = vmul.f32 %v5833_v58, %v298_v14  ;;  %v198_v14 = vld [vmem:[%s7258_s22 + $0x1b0] sm:$0xff] }
 0x186   :  { %397 = vperm.xlu0 %5358, %v182_v13  }
 0x187   :  { %v684_v19 = vadd.f32 %v5835_v59, %v552_v17  ;;  %v685_v20 = vadd.f32 %v5837_v60, %v553_v18 }
 0x188   :  { %v308_v25 = vpop.permute.xlu1 %307 }
 0x189   :  { %804 = vst [vmem:[#allocation2 + $0x120] sm:$0xff] %v684_v19  ;;  %805 = vst [vmem:[#allocation2 + $0x128] sm:$0xff] %v685_v20  ;;  %v556_v26 = vmul.f32 %v5831_v57, %v308_v25  ;;  %v557_v1 = vmul.f32 %v5833_v58, %v308_v25  ;;  %v200_v25 = vld [vmem:[%s7258_s22 + $0x1c0] sm:$0xff] }
 0x18a   :  { %407 = vperm.xlu0 %5358, %v184_v22  }
 0x18b   :  { %v688_v27 = vadd.f32 %v5835_v59, %v556_v26  ;;  %v689_v29 = vadd.f32 %v5837_v60, %v557_v1 }
 0x18c   :  { %v318_v31 = vpop.permute.xlu1 %317 }
 0x18d   :  { %808 = vst [vmem:[#allocation2 + $0x140] sm:$0xff] %v688_v27  ;;  %809 = vst [vmem:[#allocation2 + $0x148] sm:$0xff] %v689_v29  ;;  %v560_v32 = vmul.f32 %v5831_v57, %v318_v31  ;;  %v561_v33 = vmul.f32 %v5833_v58, %v318_v31  ;;  %v202_v31 = vld [vmem:[%s7258_s22 + $0x1d0] sm:$0xff] }
 0x18e   :  { %417 = vperm.xlu0 %5358, %v186_v30  }
 0x18f   :  { %v692_v34 = vadd.f32 %v5835_v59, %v560_v32  ;;  %v693_v35 = vadd.f32 %v5837_v60, %v561_v33 }
 0x190   :  { %v328_v37 = vpop.permute.xlu1 %327 }
 0x191   :  { %812 = vst [vmem:[#allocation2 + $0x160] sm:$0xff] %v692_v34  ;;  %813 = vst [vmem:[#allocation2 + $0x168] sm:$0xff] %v693_v35  ;;  %v564_v38 = vmul.f32 %v5831_v57, %v328_v37  ;;  %v565_v39 = vmul.f32 %v5833_v58, %v328_v37 }
 0x192   :  { %427 = vperm.xlu0 %5358, %v188_v36  }
 0x193   :  { %v696_v40 = vadd.f32 %v5835_v59, %v564_v38  ;;  %v697_v41 = vadd.f32 %v5837_v60, %v565_v39 }
 0x194   :  { %v338_v43 = vpop.permute.xlu1 %337 }
 0x195   :  { %816 = vst [vmem:[#allocation2 + $0x180] sm:$0xff] %v696_v40  ;;  %817 = vst [vmem:[#allocation2 + $0x188] sm:$0xff] %v697_v41  ;;  %v568_v44 = vmul.f32 %v5831_v57, %v338_v43  ;;  %v569_v45 = vmul.f32 %v5833_v58, %v338_v43 }
 0x196   :  { %437 = vperm.xlu0 %5358, %v190_v42  }
 0x197   :  { %v700_v46 = vadd.f32 %v5835_v59, %v568_v44  ;;  %v701_v47 = vadd.f32 %v5837_v60, %v569_v45 }
 0x198   :  { %v348_v49 = vpop.permute.xlu1 %347 }
 0x199   :  { %820 = vst [vmem:[#allocation2 + $0x1a0] sm:$0xff] %v700_v46  ;;  %821 = vst [vmem:[#allocation2 + $0x1a8] sm:$0xff] %v701_v47  ;;  %v572_v50 = vmul.f32 %v5831_v57, %v348_v49  ;;  %v573_v51 = vmul.f32 %v5833_v58, %v348_v49 }
 0x19a   :  { %447 = vperm.xlu0 %5358, %v192_v48  }
 0x19b   :  { %v704_v53 = vadd.f32 %v5835_v59, %v572_v50  ;;  %v705_v55 = vadd.f32 %v5837_v60, %v573_v51 }
 0x19c   :  { %v353_v62 = vpop.permute.xlu1 %352 }
 0x19d   :  { %824 = vst [vmem:[#allocation2 + $0x1c0] sm:$0xff] %v704_v53  ;;  %825 = vst [vmem:[#allocation2 + $0x1c8] sm:$0xff] %v705_v55  ;;  %v574_v0 = vmul.f32 %v5831_v57, %v353_v62  ;;  %v575_v63 = vmul.f32 %v5833_v58, %v353_v62 }
 0x19e   :  { %457 = vperm.xlu0 %5358, %v194_v61  }
 0x19f   :  { %v706_v2 = vadd.f32 %v5835_v59, %v574_v0  ;;  %v707_v4 = vadd.f32 %v5837_v60, %v575_v63 }
 0x1a0   :  { %v363_v7 = vpop.permute.xlu1 %362 }
 0x1a1   :  { %826 = vst [vmem:[#allocation2 + $0x1d0] sm:$0xff] %v706_v2  ;;  %827 = vst [vmem:[#allocation2 + $0x1d8] sm:$0xff] %v707_v4  ;;  %v578_v8 = vmul.f32 %v5831_v57, %v363_v7  ;;  %v579_v11 = vmul.f32 %v5833_v58, %v363_v7 }
 0x1a2   :  { %467 = vperm.xlu0 %5358, %v196_v6  }
 0x1a3   :  { %v710_v12 = vadd.f32 %v5835_v59, %v578_v8  ;;  %v711_v13 = vadd.f32 %v5837_v60, %v579_v11 }
 0x1a4   :  { %v373_v17 = vpop.permute.xlu1 %372 }
 0x1a5   :  { %830 = vst [vmem:[#allocation2 + $0x1f0] sm:$0xff] %v710_v12  ;;  %831 = vst [vmem:[#allocation2 + $0x1f8] sm:$0xff] %v711_v13  ;;  %v582_v18 = vmul.f32 %v5831_v57, %v373_v17  ;;  %v583_v19 = vmul.f32 %v5833_v58, %v373_v17 }
 0x1a6   :  { %477 = vperm.xlu0 %5358, %v198_v14  }
 0x1a7   :  { %v714_v20 = vadd.f32 %v5835_v59, %v582_v18  ;;  %v715_v22 = vadd.f32 %v5837_v60, %v583_v19 }
 0x1a8   :  { %v383_v26 = vpop.permute.xlu1 %382 }
 0x1a9   :  { %834 = vst [vmem:[#allocation2 + $0x210] sm:$0xff] %v714_v20  ;;  %835 = vst [vmem:[#allocation2 + $0x218] sm:$0xff] %v715_v22  ;;  %v586_v1 = vmul.f32 %v5831_v57, %v383_v26  ;;  %v587_v27 = vmul.f32 %v5833_v58, %v383_v26 }
 0x1aa   :  { %487 = vperm.xlu0 %5358, %v200_v25  }
 0x1ab   :  { %v718_v29 = vadd.f32 %v5835_v59, %v586_v1  ;;  %v719_v30 = vadd.f32 %v5837_v60, %v587_v27 }
 0x1ac   :  { %v393_v32 = vpop.permute.xlu1 %392 }
 0x1ad   :  { %838 = vst [vmem:[#allocation2 + $0x230] sm:$0xff] %v718_v29  ;;  %839 = vst [vmem:[#allocation2 + $0x238] sm:$0xff] %v719_v30  ;;  %v590_v33 = vmul.f32 %v5831_v57, %v393_v32  ;;  %v591_v34 = vmul.f32 %v5833_v58, %v393_v32 }
 0x1ae   :  { %497 = vperm.xlu0 %5358, %v202_v31  }
 0x1af   :  { %v722_v35 = vadd.f32 %v5835_v59, %v590_v33  ;;  %v723_v36 = vadd.f32 %v5837_v60, %v591_v34 }
 0x1b0   :  { %v403_v37 = vpop.permute.xlu1 %402 }
 0x1b1   :  { %842 = vst [vmem:[#allocation2 + $0x250] sm:$0xff] %v722_v35  ;;  %843 = vst [vmem:[#allocation2 + $0x258] sm:$0xff] %v723_v36  ;;  %v594_v38 = vmul.f32 %v5831_v57, %v403_v37  ;;  %v595_v39 = vmul.f32 %v5833_v58, %v403_v37 }
 0x1b3   :  { %v726_v40 = vadd.f32 %v5835_v59, %v594_v38  ;;  %v727_v41 = vadd.f32 %v5837_v60, %v595_v39 }
 0x1b4   :  { %v413_v42 = vpop.permute.xlu1 %412 }
 0x1b5   :  { %846 = vst [vmem:[#allocation2 + $0x270] sm:$0xff] %v726_v40  ;;  %847 = vst [vmem:[#allocation2 + $0x278] sm:$0xff] %v727_v41  ;;  %v598_v43 = vmul.f32 %v5831_v57, %v413_v42  ;;  %v599_v44 = vmul.f32 %v5833_v58, %v413_v42 }
 0x1b7   :  { %v730_v45 = vadd.f32 %v5835_v59, %v598_v43  ;;  %v731_v46 = vadd.f32 %v5837_v60, %v599_v44 }
 0x1b8   :  { %v423_v47 = vpop.permute.xlu1 %422 }
 0x1b9   :  { %850 = vst [vmem:[#allocation2 + $0x290] sm:$0xff] %v730_v45  ;;  %851 = vst [vmem:[#allocation2 + $0x298] sm:$0xff] %v731_v46  ;;  %v602_v48 = vmul.f32 %v5831_v57, %v423_v47  ;;  %v603_v49 = vmul.f32 %v5833_v58, %v423_v47  ;;  %v4503_v45 = vld [vmem:[%s7251_s16] ss:$0 sm:$0xff]  ;;  %v139_v46 = vpop.f32.mrb[0].mxu0  ;;  %v1004_v47 = vmul.f32 0.0, %v6020_v56 }
 0x1ba   :  { %s6242_s16 = smov 0  }
 0x1bb   :  { %v734_v50 = vadd.f32 %v5835_v59, %v602_v48  ;;  %v735_v51 = vadd.f32 %v5837_v60, %v603_v49  ;;  %v6165_v48 = vadd.f32 %v4503_v45, %v139_v46  ;;  %v4636_v49 = vpop.f32.mrb[1].mxu0 }
 0x1bc   :  { %v433_v53 = vpop.permute.xlu1 %432 }
 0x1bd   :  { %854 = vst [vmem:[#allocation2 + $0x2b0] sm:$0xff] %v734_v50  ;;  %855 = vst [vmem:[#allocation2 + $0x2b8] sm:$0xff] %v735_v51  ;;  %v606_v55 = vmul.f32 %v5831_v57, %v433_v53  ;;  %v607_v61 = vmul.f32 %v5833_v58, %v433_v53  ;;  %v143_v53 = vmax.f32 %v6165_v48, 0.0 }
 0x1bf   :  { %v738_v62 = vadd.f32 %v5835_v59, %v606_v55  ;;  %v739_v0 = vadd.f32 %v5837_v60, %v607_v61 }
 0x1c0   :  { %v443_v63 = vpop.permute.xlu1 %442 }
 0x1c1   :  { %858 = vst [vmem:[#allocation2 + $0x2d0] sm:$0xff] %v738_v62  ;;  %859 = vst [vmem:[#allocation2 + $0x2d8] sm:$0xff] %v739_v0  ;;  %v610_v2 = vmul.f32 %v5831_v57, %v443_v63  ;;  %v611_v4 = vmul.f32 %v5833_v58, %v443_v63 }
 0x1c3   :  { %v742_v6 = vadd.f32 %v5835_v59, %v610_v2  ;;  %v743_v7 = vadd.f32 %v5837_v60, %v611_v4 }
 0x1c4   :  { %v453_v8 = vpop.permute.xlu1 %452 }
 0x1c5   :  { %862 = vst [vmem:[#allocation2 + $0x2f0] sm:$0xff] %v742_v6  ;;  %863 = vst [vmem:[#allocation2 + $0x2f8] sm:$0xff] %v743_v7  ;;  %v614_v11 = vmul.f32 %v5831_v57, %v453_v8  ;;  %v615_v12 = vmul.f32 %v5833_v58, %v453_v8 }
 0x1c7   :  { %v746_v13 = vadd.f32 %v5835_v59, %v614_v11  ;;  %v747_v14 = vadd.f32 %v5837_v60, %v615_v12 }
 0x1c8   :  { %v463_v17 = vpop.permute.xlu1 %462 }
 0x1c9   :  { %866 = vst [vmem:[#allocation2 + $0x310] sm:$0xff] %v746_v13  ;;  %867 = vst [vmem:[#allocation2 + $0x318] sm:$0xff] %v747_v14  ;;  %v618_v18 = vmul.f32 %v5831_v57, %v463_v17  ;;  %v619_v19 = vmul.f32 %v5833_v58, %v463_v17 }
 0x1cb   :  { %v750_v20 = vadd.f32 %v5835_v59, %v618_v18  ;;  %v751_v22 = vadd.f32 %v5837_v60, %v619_v19 }
 0x1cc   :  { %v473_v25 = vpop.permute.xlu1 %472 }
 0x1cd   :  { %870 = vst [vmem:[#allocation2 + $0x330] sm:$0xff] %v750_v20  ;;  %871 = vst [vmem:[#allocation2 + $0x338] sm:$0xff] %v751_v22  ;;  %v622_v26 = vmul.f32 %v5831_v57, %v473_v25  ;;  %v623_v1 = vmul.f32 %v5833_v58, %v473_v25 }
 0x1cf   :  { %v754_v27 = vadd.f32 %v5835_v59, %v622_v26  ;;  %v755_v29 = vadd.f32 %v5837_v60, %v623_v1 }
 0x1d0   :  { %v483_v30 = vpop.permute.xlu1 %482 }
 0x1d1   :  { %874 = vst [vmem:[#allocation2 + $0x350] sm:$0xff] %v754_v27  ;;  %875 = vst [vmem:[#allocation2 + $0x358] sm:$0xff] %v755_v29  ;;  %v626_v31 = vmul.f32 %v5831_v57, %v483_v30  ;;  %v627_v32 = vmul.f32 %v5833_v58, %v483_v30 }
 0x1d3   :  { %v758_v33 = vadd.f32 %v5835_v59, %v626_v31  ;;  %v759_v34 = vadd.f32 %v5837_v60, %v627_v32 }
 0x1d4   :  { %v493_v35 = vpop.permute.xlu1 %492 }
 0x1d5   :  { %878 = vst [vmem:[#allocation2 + $0x370] sm:$0xff] %v758_v33  ;;  %879 = vst [vmem:[#allocation2 + $0x378] sm:$0xff] %v759_v34  ;;  %v630_v36 = vmul.f32 %v5831_v57, %v493_v35  ;;  %v631_v37 = vmul.f32 %v5833_v58, %v493_v35 }
 0x1d7   :  { %v762_v38 = vadd.f32 %v5835_v59, %v630_v36  ;;  %v763_v39 = vadd.f32 %v5837_v60, %v631_v37 }
 0x1d8   :  { %v503_v40 = vpop.permute.xlu1 %502 }
 0x1d9   :  { %882 = vst [vmem:[#allocation2 + $0x390] sm:$0xff] %v762_v38  ;;  %883 = vst [vmem:[#allocation2 + $0x398] sm:$0xff] %v763_v39  ;;  %v634_v41 = vmul.f32 %v5831_v57, %v503_v40  ;;  %v635_v42 = vmul.f32 %v5833_v58, %v503_v40 }
 0x1db   :  { %v766_v43 = vadd.f32 %v5835_v59, %v634_v41  ;;  %v767_v44 = vadd.f32 %v5837_v60, %v635_v42 }
 0x1dd   :  { %886 = vst [vmem:[#allocation2 + $0x3b0] sm:$0xff] %v766_v43  ;;  %887 = vst [vmem:[#allocation2 + $0x3b8] sm:$0xff] %v767_v44 }
 0x1e4   :  { %v1012_v50 = vpop.permute.xlu0 %1011 }
 0x1e5   :  { %v6167_v51 = vadd.f32 %v1012_v50, %v1004_v47  }
 0x1e7   :  { %5364 = vtanh.f32 %v6167_v51 }
 0x1f1   :  { %v5365_v55 = vpop.eup %5364 }
 0x1f2   :  { %1017 = vrot.lane.b32.xlu0 %v5365_v55, %s5582_s2 }
 0x1f5   :  { %v358_v61 = vpop.permute.xlu0 %357 }
 0x1f6   :  { %v576_v62 = vmul.f32 %v5831_v57, %v358_v61  ;;  %v577_v0 = vmul.f32 %v5833_v58, %v358_v61 }
 0x1f8   :  { %v708_v56 = vadd.f32 %v5835_v59, %v576_v62  ;;  %v709_v63 = vadd.f32 %v5837_v60, %v577_v0 }
 0x1f9   :  { %v368_v2 = vpop.permute.xlu0 %367 }
 0x1fa   :  { %828 = vst [vmem:[#allocation2 + $0x1e0] sm:$0xff] %v708_v56  ;;  %829 = vst [vmem:[#allocation2 + $0x1e8] sm:$0xff] %v709_v63  ;;  %v580_v4 = vmul.f32 %v5831_v57, %v368_v2  ;;  %v581_v6 = vmul.f32 %v5833_v58, %v368_v2 }
 0x1fc   :  { %v712_v7 = vadd.f32 %v5835_v59, %v580_v4  ;;  %v713_v8 = vadd.f32 %v5837_v60, %v581_v6 }
 0x1fd   :  { %v378_v11 = vpop.permute.xlu0 %377 }
 0x1fe   :  { %832 = vst [vmem:[#allocation2 + $0x200] sm:$0xff] %v712_v7  ;;  %833 = vst [vmem:[#allocation2 + $0x208] sm:$0xff] %v713_v8  ;;  %v584_v12 = vmul.f32 %v5831_v57, %v378_v11  ;;  %v585_v13 = vmul.f32 %v5833_v58, %v378_v11 }
 0x200   :  { %v716_v14 = vadd.f32 %v5835_v59, %v584_v12  ;;  %v717_v17 = vadd.f32 %v5837_v60, %v585_v13 }
 0x201   :  { %v388_v18 = vpop.permute.xlu0 %387 }
 0x202   :  { %836 = vst [vmem:[#allocation2 + $0x220] sm:$0xff] %v716_v14  ;;  %837 = vst [vmem:[#allocation2 + $0x228] sm:$0xff] %v717_v17  ;;  %v588_v19 = vmul.f32 %v5831_v57, %v388_v18  ;;  %v589_v20 = vmul.f32 %v5833_v58, %v388_v18 }
 0x204   :  { %v720_v22 = vadd.f32 %v5835_v59, %v588_v19  ;;  %v721_v25 = vadd.f32 %v5837_v60, %v589_v20 }
 0x205   :  { %v398_v26 = vpop.permute.xlu0 %397 }
 0x206   :  { %840 = vst [vmem:[#allocation2 + $0x240] sm:$0xff] %v720_v22  ;;  %841 = vst [vmem:[#allocation2 + $0x248] sm:$0xff] %v721_v25  ;;  %v592_v1 = vmul.f32 %v5831_v57, %v398_v26  ;;  %v593_v27 = vmul.f32 %v5833_v58, %v398_v26 }
 0x208   :  { %v724_v29 = vadd.f32 %v5835_v59, %v592_v1  ;;  %v725_v30 = vadd.f32 %v5837_v60, %v593_v27 }
 0x209   :  { %v408_v31 = vpop.permute.xlu0 %407 }
 0x20a   :  { %844 = vst [vmem:[#allocation2 + $0x260] sm:$0xff] %v724_v29  ;;  %845 = vst [vmem:[#allocation2 + $0x268] sm:$0xff] %v725_v30  ;;  %v596_v32 = vmul.f32 %v5831_v57, %v408_v31  ;;  %v597_v33 = vmul.f32 %v5833_v58, %v408_v31 }
 0x20c   :  { %v728_v34 = vadd.f32 %v5835_v59, %v596_v32  ;;  %v729_v35 = vadd.f32 %v5837_v60, %v597_v33 }
 0x20d   :  { %v418_v36 = vpop.permute.xlu0 %417 }
 0x20e   :  { %848 = vst [vmem:[#allocation2 + $0x280] sm:$0xff] %v728_v34  ;;  %849 = vst [vmem:[#allocation2 + $0x288] sm:$0xff] %v729_v35  ;;  %v600_v37 = vmul.f32 %v5831_v57, %v418_v36  ;;  %v601_v38 = vmul.f32 %v5833_v58, %v418_v36  ;;  %v996_v36 = vmul.f32 0.5, %v5936_v21 }
 0x210   :  { %v732_v39 = vadd.f32 %v5835_v59, %v600_v37  ;;  %v733_v40 = vadd.f32 %v5837_v60, %v601_v38  ;;  %5366 = vtanh.f32 %v996_v36 }
 0x211   :  { %v428_v41 = vpop.permute.xlu0 %427 }
 0x212   :  { %852 = vst [vmem:[#allocation2 + $0x2a0] sm:$0xff] %v732_v39  ;;  %853 = vst [vmem:[#allocation2 + $0x2a8] sm:$0xff] %v733_v40  ;;  %v604_v42 = vmul.f32 %v5831_v57, %v428_v41  ;;  %v605_v43 = vmul.f32 %v5833_v58, %v428_v41 }
 0x214   :  { %v736_v44 = vadd.f32 %v5835_v59, %v604_v42  ;;  %v737_v45 = vadd.f32 %v5837_v60, %v605_v43  ;;  %v6233_v42 = vmov 0.0   ;;  %v6235_v43 = vmov 0.0  }
 0x215   :  { %v438_v46 = vpop.permute.xlu0 %437 }
 0x216   :  { %856 = vst [vmem:[#allocation2 + $0x2c0] sm:$0xff] %v736_v44  ;;  %857 = vst [vmem:[#allocation2 + $0x2c8] sm:$0xff] %v737_v45  ;;  %v608_v47 = vmul.f32 %v5831_v57, %v438_v46  ;;  %v609_v49 = vmul.f32 %v5833_v58, %v438_v46 }
 0x218   :  { %v740_v50 = vadd.f32 %v5835_v59, %v608_v47  ;;  %v741_v55 = vadd.f32 %v5837_v60, %v609_v49 }
 0x219   :  { %v448_v61 = vpop.permute.xlu0 %447 }
 0x21a   :  { %860 = vst [vmem:[#allocation2 + $0x2e0] sm:$0xff] %v740_v50  ;;  %861 = vst [vmem:[#allocation2 + $0x2e8] sm:$0xff] %v741_v55  ;;  %v612_v62 = vmul.f32 %v5831_v57, %v448_v61  ;;  %v613_v0 = vmul.f32 %v5833_v58, %v448_v61  ;;  %v5367_v37 = vpop.eup %5366 }
 0x21b   :  { %v1000_v38 = vmul.f32 0.5, %v5367_v37 }
 0x21c   :  { %v744_v56 = vadd.f32 %v5835_v59, %v612_v62  ;;  %v745_v63 = vadd.f32 %v5837_v60, %v613_v0 }
 0x21d   :  { %v458_v2 = vpop.permute.xlu0 %457  ;;  %v1002_v39 = vadd.f32 0.5, %v1000_v38 }
 0x21e   :  { %864 = vst [vmem:[#allocation2 + $0x300] sm:$0xff] %v744_v56  ;;  %865 = vst [vmem:[#allocation2 + $0x308] sm:$0xff] %v745_v63  ;;  %v616_v4 = vmul.f32 %v5831_v57, %v458_v2  ;;  %v617_v6 = vmul.f32 %v5833_v58, %v458_v2 }
 0x220   :  { %v748_v7 = vadd.f32 %v5835_v59, %v616_v4  ;;  %v749_v8 = vadd.f32 %v5837_v60, %v617_v6 }
 0x221   :  { %v468_v11 = vpop.permute.xlu0 %467 }
 0x222   :  { %868 = vst [vmem:[#allocation2 + $0x320] sm:$0xff] %v748_v7  ;;  %869 = vst [vmem:[#allocation2 + $0x328] sm:$0xff] %v749_v8  ;;  %v620_v12 = vmul.f32 %v5831_v57, %v468_v11  ;;  %v621_v13 = vmul.f32 %v5833_v58, %v468_v11 }
 0x224   :  { %v752_v14 = vadd.f32 %v5835_v59, %v620_v12  ;;  %v753_v17 = vadd.f32 %v5837_v60, %v621_v13 }
 0x225   :  { %v478_v18 = vpop.permute.xlu0 %477 }
 0x226   :  { %872 = vst [vmem:[#allocation2 + $0x340] sm:$0xff] %v752_v14  ;;  %873 = vst [vmem:[#allocation2 + $0x348] sm:$0xff] %v753_v17  ;;  %v624_v19 = vmul.f32 %v5831_v57, %v478_v18  ;;  %v625_v20 = vmul.f32 %v5833_v58, %v478_v18 }
 0x228   :  { %v756_v22 = vadd.f32 %v5835_v59, %v624_v19  ;;  %v757_v25 = vadd.f32 %v5837_v60, %v625_v20 }
 0x229   :  { %v488_v26 = vpop.permute.xlu0 %487 }
 0x22a   :  { %876 = vst [vmem:[#allocation2 + $0x360] sm:$0xff] %v756_v22  ;;  %877 = vst [vmem:[#allocation2 + $0x368] sm:$0xff] %v757_v25  ;;  %v628_v1 = vmul.f32 %v5831_v57, %v488_v26  ;;  %v629_v27 = vmul.f32 %v5833_v58, %v488_v26 }
 0x22c   :  { %v760_v29 = vadd.f32 %v5835_v59, %v628_v1  ;;  %v761_v30 = vadd.f32 %v5837_v60, %v629_v27 }
 0x22d   :  { %v498_v31 = vpop.permute.xlu0 %497 }
 0x22e   :  { %880 = vst [vmem:[#allocation2 + $0x380] sm:$0xff] %v760_v29  ;;  %881 = vst [vmem:[#allocation2 + $0x388] sm:$0xff] %v761_v30  ;;  %v632_v32 = vmul.f32 %v5831_v57, %v498_v31  ;;  %v633_v33 = vmul.f32 %v5833_v58, %v498_v31 }
 0x230   :  { %v764_v34 = vadd.f32 %v5835_v59, %v632_v32  ;;  %v765_v35 = vadd.f32 %v5837_v60, %v633_v33 }
 0x232   :  { %884 = vst [vmem:[#allocation2 + $0x3a0] sm:$0xff] %v764_v34  ;;  %885 = vst [vmem:[#allocation2 + $0x3a8] sm:$0xff] %v765_v35 }
 0x264   :  { %v1018_v40 = vpop.permute.xlu0 %1017 }
 0x265   :  { %v1020_v41 = vmul.f32 %v1018_v40, %v1002_v39  }
 0x266 LB: > { %s7259_s19 = sld [smem:[#allocation3_spill]]  ;;  %v1176_v59 = vld [vmem:[%s7242_s7 + $0x8] sm:$0xff]  ;;  %v1178_v21 = vld [vmem:[%s7242_s7 + $0x18] sm:$0xff]  ;;  %v5584_v46 = vmov 0.0   ;;  %v1175_v50 = vld [vmem:[%s7242_s7] sm:$0xff]  ;;  %s6505_s15 = smul.u32 56, %s5578_s16  ;;  %s5578_s16 = sphi %s6242_s16, %s1026_s16   ;;  %v5574_v41 = vphi %v1020_v41, %v7267_v41   ;;  %v5570_v51 = vphi %v6167_v51, %v7266_v51   ;;  %v5566_v43 = vphi %v6235_v43, %v7265_v43   ;;  %v5562_v42 = vphi %v6233_v42, %v7264_v42  }
 0x267   : > { %1124 = vmatprep.mubr.f32.mxu0 %v5584_v46  ;;  %1258 = vmatprep.mubr.f32.mxu1 %v5584_v46  ;;  %v6281_v47 = vpack.c.bf16 %v1178_v21, %v1176_v59  ;;  %v1177_v55 = vld [vmem:[%s7242_s7 + $0x10] sm:$0xff]  ;;  %v1180_v56 = vld [vmem:[%s7242_s7 + $0x28] sm:$0xff]  ;;  %v1182_v63 = vld [vmem:[%s7242_s7 + $0x38] sm:$0xff]  ;;  %s5585_s6 = smov 64   ;;  %s1026_s16 = sadd.s32 1, %s5578_s16  }
 0x268   : > { %v6295_v62 = vpack.c.bf16 %v1177_v55, %v1175_v50  ;;  %v6310_v4 = vpack.c.bf16 %v1182_v63, %v1180_v56  ;;  %v1179_v8 = vld [vmem:[%s7242_s7 + $0x20] sm:$0xff]  ;;  %v1181_v12 = vld [vmem:[%s7242_s7 + $0x30] sm:$0xff]  ;;  %v1184_v19 = vld [vmem:[%s7242_s7 + $0x48] sm:$0xff]  ;;  %s4567_s21 = sadd.s32 8, %s6505_s15  ;;  %s4570_s26 = sadd.s32 16, %s6505_s15 }
 0x269   : > { %4746 = vmatprep.subr.bf16.mxu1 %v6281_v47  ;;  %v6335_v17 = vpack.c.bf16 %v1181_v12, %v1179_v8  ;;  %v1186_v20 = vld [vmem:[%s7242_s7 + $0x58] sm:$0xff]  ;;  %v1183_v1 = vld [vmem:[%s7242_s7 + $0x40] sm:$0xff]  ;;  %v1185_v27 = vld [vmem:[%s7242_s7 + $0x50] sm:$0xff]  ;;  %s1034_s23 = sshra.s32 %s4567_s21, 3  ;;  %s1366_s24 = sshra.s32 %s4570_s26, 3 }
 0x26a   : > { %4748 = vmatpush1.bf16.msra.mxu1 %v6295_v62  ;;  %v6348_v25 = vpack.c.bf16 %v1186_v20, %v1184_v19  ;;  %v1188_v32 = vld [vmem:[%s7242_s7 + $0x68] sm:$0xff]  ;;  %v6373_v33 = vpack.c.bf16 %v1185_v27, %v1183_v1  ;;  %v1190_v35 = vld [vmem:[%s7242_s7 + $0x78] sm:$0xff]  ;;  %v1187_v39 = vld [vmem:[%s7242_s7 + $0x60] sm:$0xff]  ;;  %s4568_s3 = sshll.u32 %s1034_s23, 4  ;;  %s4571_s25 = sshll.u32 %s1366_s24, 4 }
 0x26b   : > { %4750 = vmatprep.subr.bf16.mxu1 %v6310_v4  ;;  %v6387_v38 = vpack.c.bf16 %v1190_v35, %v1188_v32  ;;  %v1189_v40 = vld [vmem:[%s7242_s7 + $0x70] sm:$0xff]  ;;  %v1164_v55 = vld [vmem:[%s7241_s5 + $0x28] sm:$0xff]  ;;  %v1163_v63 = vld [vmem:[%s7241_s5 + $0x20] sm:$0xff]  ;;  %s1038_s1 = scalar_lea.vmem [#allocation2], %s4568_s3  ;;  %s1370_s27 = scalar_lea.vmem [#allocation2], %s4571_s25 }
 0x26c   : > { %v1042_v57 = vld [vmem:[%s7259_s19 + $0x8] sm:$0xff]  ;;  %v1044_v58 = vld [vmem:[%s7259_s19 + $0x18] sm:$0xff]  ;;  %v1041_v44 = vld [vmem:[%s7259_s19] sm:$0xff]  ;;  %v6406_v21 = vpack.c.bf16 %v1189_v40, %v1187_v39  ;;  %s4576_s4 = sadd.s32 32, %s6505_s15  ;;  %s4579_s20 = sadd.s32 40, %s6505_s15 }
 0x26d   : > { %v6268_v60 = vpack.c.bf16 %v1044_v58, %v1042_v57  ;;  %v1043_v45 = vld [vmem:[%s7259_s19 + $0x10] sm:$0xff]  ;;  %v1046_v61 = vld [vmem:[%s7259_s19 + $0x28] sm:$0xff]  ;;  %v1048_v0 = vld [vmem:[%s7259_s19 + $0x38] sm:$0xff]  ;;  %s1934_s30 = sshra.s32 %s4576_s4, 3  ;;  %s2218_s21 = sshra.s32 %s4579_s20, 3 }
 0x26e   : > { %v6283_v49 = vpack.c.bf16 %v1043_v45, %v1041_v44  ;;  %v6308_v2 = vpack.c.bf16 %v1048_v0, %v1046_v61  ;;  %v1045_v6 = vld [vmem:[%s7259_s19 + $0x20] sm:$0xff]  ;;  %v1047_v7 = vld [vmem:[%s7259_s19 + $0x30] sm:$0xff]  ;;  %v1050_v13 = vld [vmem:[%s7259_s19 + $0x48] sm:$0xff]  ;;  %4752 = vmatpush1.bf16.msra.mxu1 %v6335_v17  ;;  %s4577_s18 = sshll.u32 %s1934_s30, 4  ;;  %s4580_s23 = sshll.u32 %s2218_s21, 4 }
 0x26f   : > { %4730 = vmatprep.subr.bf16.mxu0 %v6268_v60  ;;  %v6322_v11 = vpack.c.bf16 %v1047_v7, %v1045_v6  ;;  %v1052_v14 = vld [vmem:[%s7259_s19 + $0x58] sm:$0xff]  ;;  %v1049_v22 = vld [vmem:[%s7259_s19 + $0x40] sm:$0xff]  ;;  %v1051_v26 = vld [vmem:[%s7259_s19 + $0x50] sm:$0xff]  ;;  %4754 = vmatprep.subr.bf16.mxu1 %v6348_v25  ;;  %s1938_s0 = scalar_lea.vmem [#allocation2], %s4577_s18  ;;  %s2222_s3 = scalar_lea.vmem [#allocation2], %s4580_s23 }
 0x270   : > { %4732 = vmatpush1.bf16.msra.mxu0 %v6283_v49  ;;  %v6337_v18 = vpack.c.bf16 %v1052_v14, %v1050_v13  ;;  %v6360_v29 = vpack.c.bf16 %v1051_v26, %v1049_v22  ;;  %v1054_v30 = vld [vmem:[%s7259_s19 + $0x68] sm:$0xff]  ;;  %v1056_v31 = vld [vmem:[%s7259_s19 + $0x78] sm:$0xff]  ;;  %v1053_v36 = vld [vmem:[%s7259_s19 + $0x60] sm:$0xff]  ;;  %p1023_p0 = scmp.ge.s32.totalorder %s1026_s16, 8  }
 0x271   : > { %4734 = vmatprep.subr.bf16.mxu0 %v6308_v2  ;;  %v6375_v34 = vpack.c.bf16 %v1056_v31, %v1054_v30  ;;  %v1055_v37 = vld [vmem:[%s7259_s19 + $0x70] sm:$0xff]  ;;  %v1160_v57 = vld [vmem:[%s7241_s5 + $0x8] sm:$0xff]  ;;  %v1162_v58 = vld [vmem:[%s7241_s5 + $0x18] sm:$0xff]  ;;  %s4573_s19 = sadd.s32 24, %s6505_s15 }
 0x272   : > { %v6402_v59 = vpack.c.bf16 %v1055_v37, %v1053_v36  ;;  %4756 = vmatpush1.bf16.msra.mxu1 %v6373_v33  ;;  %v6409_v44 = vpack.c.bf16 %v1162_v58, %v1160_v57  ;;  %v1159_v45 = vld [vmem:[%s7241_s5] sm:$0xff]  ;;  %v1161_v50 = vld [vmem:[%s7241_s5 + $0x10] sm:$0xff]  ;;  %v1166_v61 = vld [vmem:[%s7241_s5 + $0x38] sm:$0xff]  ;;  %s1650_s28 = sshra.s32 %s4573_s19, 3 }
 0x273   : > { %4758 = vmatprep.subr.bf16.mxu1 %v6387_v38  ;;  %v6425_v0 = vpack.c.bf16 %v1161_v50, %v1159_v45  ;;  %v6429_v56 = vpack.c.bf16 %v1166_v61, %v1164_v55  ;;  %v1165_v6 = vld [vmem:[%s7241_s5 + $0x30] sm:$0xff]  ;;  %v1168_v7 = vld [vmem:[%s7241_s5 + $0x48] sm:$0xff]  ;;  %v1170_v8 = vld [vmem:[%s7241_s5 + $0x58] sm:$0xff]  ;;  %s4574_s29 = sshll.u32 %s1650_s28, 4 }
 0x274   : > { %4736 = vmatpush1.bf16.msra.mxu0 %v6322_v11  ;;  %v6449_v12 = vpack.c.bf16 %v1165_v6, %v1163_v63  ;;  %v6453_v13 = vpack.c.bf16 %v1170_v8, %v1168_v7  ;;  %v1167_v14 = vld [vmem:[%s7241_s5 + $0x40] sm:$0xff]  ;;  %v1172_v19 = vld [vmem:[%s7241_s5 + $0x68] sm:$0xff]  ;;  %v1174_v20 = vld [vmem:[%s7241_s5 + $0x78] sm:$0xff]  ;;  %s1654_s22 = scalar_lea.vmem [#allocation2], %s4574_s29 }
 0x275   : > { %4738 = vmatprep.subr.bf16.mxu0 %v6337_v18  ;;  %v6475_v26 = vpack.c.bf16 %v1174_v20, %v1172_v19  ;;  %v1171_v1 = vld [vmem:[%s7241_s5 + $0x60] sm:$0xff]  ;;  %v1173_v27 = vld [vmem:[%s7241_s5 + $0x70] sm:$0xff]  ;;  %v4371_v48 = vld [vmem:[%s7248_s13 + $0x18] sm:$0xff] (%p1023_p0) }
 0x276   : > { %4760 = vmatpush1.bf16.msra.mxu1 %v6406_v21  ;;  %v6485_v30 = vpack.c.bf16 %v1173_v27, %v1171_v1  ;;  %v1039_v58 = vld [vmem:[%s1038_s1] sm:$0xff] }
 0x277   : > { %4762 = vmatprep.subr.bf16.mxu1 %v6409_v44 }
 0x278   : > { %4740 = vmatpush1.bf16.msra.mxu0 %v6360_v29 }
 0x279   : > { %4742 = vmatprep.subr.bf16.mxu0 %v6375_v34  ;;  %4510 = vmatmul.mubr.msk.f32.vlgmr.msra.gmra.mrb[0].mxu1 %vm918_vm0, %v5566_v43  ;;  %v1169_v43 = vld [vmem:[%s7241_s5 + $0x50] sm:$0xff] }
 0x27a   : > { %4764 = vmatpush1.bf16.msra.mxu1 %v6425_v0  ;;  %1329 = vmatprep.mubr.f32.mxu1 %v5584_v46  ;;  %v6471_v22 = vpack.c.bf16 %v1169_v43, %v1167_v14 }
 0x27b   : > { %4766 = vmatprep.subr.bf16.mxu1 %v6429_v56 }
 0x27c   : > { %4744 = vmatpush1.bf16.msra.mxu0 %v6402_v59 }
 0x27d   : > { %4778 = vmatprep.subr.bf16.mxu0 %v6268_v60 }
 0x27e   : > { %4768 = vmatpush1.bf16.msra.mxu1 %v6449_v12 }
 0x27f   : > { %4509 = vmatmul.mubr.msk.f32.vlgmr.msra.gmra.mrb[0].mxu0 %vm918_vm0, %v5574_v41  ;;  %4770 = vmatprep.subr.bf16.mxu1 %v6453_v13 }
 0x280   : > { %4780 = vmatpush1.bf16.msra.mxu0 %v6283_v49  ;;  %1440 = vmatprep.mubr.f32.mxu0 %v5584_v46 }
 0x281   : > { %4782 = vmatprep.subr.bf16.mxu0 %v6308_v2 }
 0x282   : > { %4772 = vmatpush1.bf16.msra.mxu1 %v6471_v22 }
 0x283   : > { %4774 = vmatprep.subr.bf16.mxu1 %v6475_v26 }
 0x284   : > { %4784 = vmatpush1.bf16.msra.mxu0 %v6322_v11 }
 0x285   : > { %4786 = vmatprep.subr.bf16.mxu0 %v6337_v18 }
 0x286   : > { %4776 = vmatpush1.bf16.msra.mxu1 %v6485_v30 }
 0x287   : > { %4826 = vmatprep.subr.bf16.mxu1 %v6268_v60 }
 0x288   : > { %4788 = vmatpush1.bf16.msra.mxu0 %v6360_v29 }
 0x289   : > { %4790 = vmatprep.subr.bf16.mxu0 %v6375_v34  ;;  %4511 = vmatmul.mubr.msk.f32.vlgmr.msra.gmra.mrb[0].mxu1 %vm918_vm0, %v5574_v41  ;;  %v1040_v41 = vld [vmem:[%s1038_s1 + $0x8] sm:$0xff]  ;;  %s4582_s1 = sadd.s32 48, %s6505_s15 }
 0x28a   : > { %4828 = vmatpush1.bf16.msra.mxu1 %v6283_v49  ;;  %1724 = vmatprep.mubr.f32.mxu1 %v5584_v46  ;;  %s2502_s26 = sshra.s32 %s4582_s1, 3 }
 0x28b   : > { %4830 = vmatprep.subr.bf16.mxu1 %v6308_v2  ;;  %s4583_s24 = sshll.u32 %s2502_s26, 4 }
 0x28c   : > { %4792 = vmatpush1.bf16.msra.mxu0 %v6402_v59  ;;  %s2506_s25 = scalar_lea.vmem [#allocation2], %s4583_s24 }
 0x28d   : > { %4794 = vmatprep.subr.bf16.mxu0 %v6281_v47 }
 0x28e   : > { %4832 = vmatpush1.bf16.msra.mxu1 %v6322_v11 }
 0x28f   : > { %4834 = vmatprep.subr.bf16.mxu1 %v6337_v18 }
 0x292   : > { %4836 = vmatpush1.bf16.msra.mxu1 %v6360_v29 }
 0x293   : > { %4838 = vmatprep.subr.bf16.mxu1 %v6375_v34 }
 0x296   : > { %4840 = vmatpush1.bf16.msra.mxu1 %v6402_v59 }
 0x297   : > { %4842 = vmatprep.subr.bf16.mxu1 %v6281_v47 }
 0x352   : > { %v1126_v31 = vpop.f32.mrb[0].mxu0 }
 0x353   : > { %v1128_v32 = vpop.f32.mrb[1].mxu0  ;;  %v1131_v45 = vadd.f32 %v1126_v31, %v1039_v58 }
 0x354   : > { %v1132_v35 = vadd.f32 %v1128_v32, %v1040_v41 }
 0x355   : > { %v1133_v50 = vmul.f32 0.5, %v1131_v45 }
 0x356   : > { %5368 = vtanh.f32 %v1132_v35  ;;  %v1134_v45 = vmul.f32 0.5, %v1132_v35 }
 0x35c   : > { %v1331_v37 = vpop.f32.mrb[0].mxu1 }
 0x35d   : > { %v1333_v39 = vpop.f32.mrb[1].mxu1  ;;  %v1336_v55 = vadd.f32 %v1331_v37, %v5821_v52 }
 0x35e   : > { %v1337_v40 = vadd.f32 %v1333_v39, %v5823_v54 }
 0x35f   : > { %v1338_v63 = vmul.f32 0.5, %v1336_v55 }
 0x360   : > { %v5369_v36 = vpop.eup %5368  ;;  %5370 = vtanh.f32 %v1337_v40 }
 0x361   : > { %1144 = vrot.lane.b32.xlu0 %v5369_v36, %s5585_s6  ;;  %5372 = vtanh.f32 %v1133_v50  ;;  %v1339_v50 = vmul.f32 0.5, %v1337_v40 }
 0x362   : > { %5374 = vtanh.f32 %v1338_v63 }
 0x36a   : > { %v5371_v57 = vpop.eup %5370 }
 0x36b   : > { %1349 = vrot.lane.b32.xlu0 %v5371_v57, %s5585_s6  ;;  %v5373_v61 = vpop.eup %5372 }
 0x36c   : > { %v1137_v6 = vmul.f32 0.5, %v5373_v61  ;;  %v5375_v43 = vpop.eup %5374 }
 0x36d   : > { %v1342_v19 = vmul.f32 0.5, %v5375_v43 }
 0x36e   : > { %v1139_v7 = vadd.f32 0.5, %v1137_v6 }
 0x36f   : > { %v1344_v20 = vadd.f32 0.5, %v1342_v19 }
 0x370   : > { %v1142_v41 = vmul.f32 %v5570_v51, %v1139_v7 }
 0x371   : > { %v1347_v37 = vmul.f32 %v5562_v42, %v1344_v20 }
 0x3d3   : > { %v1145_v8 = vpop.permute.xlu0 %1144 }
 0x3d4   : > { %v1147_v14 = vmul.f32 %v1145_v8, %v1139_v7 }
 0x3d6   : > { %1149 = vrot.lane.b32.xlu1 %v1147_v14, %s5585_s6  ;;  %v1372_v14 = vld [vmem:[%s1370_s27 + $0x8] sm:$0xff] }
 0x3dd   : > { %v1350_v1 = vpop.permute.xlu0 %1349 }
 0x3de   : > { %v1352_v27 = vmul.f32 %v1350_v1, %v1344_v20 }
 0x3e0   : > { %1354 = vrot.lane.b32.xlu1 %v1352_v27, %s5585_s6 }
 0x448   : > { %v1150_v31 = vpop.permute.xlu1 %1149 }
 0x449   : > { %v6515_v32 = vadd.f32 %v1150_v31, %v1142_v41 }
 0x44b   : > { %5376 = vtanh.f32 %v6515_v32 }
 0x452   : > { %v1355_v39 = vpop.permute.xlu1 %1354 }
 0x453   : > { %v6520_v57 = vadd.f32 %v1355_v39, %v1347_v37  ;;  %v1371_v37 = vld [vmem:[%s1370_s27] sm:$0xff]  ;;  %s4585_s27 = sadd.s32 56, %s6505_s15 }
 0x454   : > { %s2786_s19 = sshra.s32 %s4585_s27, 3 }
 0x455   : > { %v5377_v36 = vpop.eup %5376  ;;  %5378 = vtanh.f32 %v6520_v57  ;;  %s4586_s28 = sshll.u32 %s2786_s19, 4 }
 0x456   : > { %1155 = vrot.lane.b32.xlu0 %v5377_v36, %s5585_s6  ;;  %5380 = vtanh.f32 %v1134_v45  ;;  %s2790_s29 = scalar_lea.vmem [#allocation2], %s4586_s28 }
 0x457   : > { %5382 = vtanh.f32 %v1339_v50 }
 0x45f   : > { %v5379_v58 = vpop.eup %5378 }
 0x460   : > { %1360 = vrot.lane.b32.xlu1 %v5379_v58, %s5585_s6  ;;  %v5381_v51 = vpop.eup %5380 }
 0x461   : > { %v1138_v55 = vmul.f32 0.5, %v5381_v51  ;;  %v5383_v42 = vpop.eup %5382 }
 0x462   : > { %v1343_v35 = vmul.f32 0.5, %v5383_v42 }
 0x463   : > { %v1140_v61 = vadd.f32 0.5, %v1138_v55 }
 0x464   : > { %v1345_v40 = vadd.f32 0.5, %v1343_v35 }
 0x4c8   : > { %v1156_v63 = vpop.permute.xlu0 %1155 }
 0x4c9   : > { %v1158_v6 = vmul.f32 %v1156_v63, %v1140_v61 }
 0x4cb   : > { %4515 = vmatmul.mubr.msk.f32.vlgmr.msra.gmra.mrb[2].mxu0 %vm918_vm0, %v1158_v6 }
 0x4cc   : > { %4796 = vmatpush1.bf16.msra.mxu0 %v6295_v62  ;;  %1542 = vmatprep.mubr.f32.mxu0 %v5584_v46 }
 0x4cd   : > { %4798 = vmatprep.subr.bf16.mxu0 %v6310_v4 }
 0x4d0   : > { %4800 = vmatpush1.bf16.msra.mxu0 %v6335_v17 }
 0x4d1   : > { %4802 = vmatprep.subr.bf16.mxu0 %v6348_v25 }
 0x4d2   : > { %v1361_v7 = vpop.permute.xlu1 %1360 }
 0x4d3   : > { %v1363_v8 = vmul.f32 %v1361_v7, %v1345_v40 }
 0x4d4   : > { %4804 = vmatpush1.bf16.msra.mxu0 %v6373_v33 }
 0x4d5   : > { %4806 = vmatprep.subr.bf16.mxu0 %v6387_v38 }
 0x4d8   : > { %4808 = vmatpush1.bf16.msra.mxu0 %v6406_v21 }
 0x4d9   : > { %4810 = vmatprep.subr.bf16.mxu0 %v6409_v44 }
 0x4db   : > { %4516 = vmatmul.mubr.msk.f32.vlgmr.msra.gmra.mrb[4].mxu0 %vm918_vm0, %v1363_v8 }
 0x4dc   : > { %4812 = vmatpush1.bf16.msra.mxu0 %v6425_v0  ;;  %1613 = vmatprep.mubr.f32.mxu0 %v5584_v46 }
 0x4dd   : > { %4814 = vmatprep.subr.bf16.mxu0 %v6429_v56 }
 0x4e0   : > { %4816 = vmatpush1.bf16.msra.mxu0 %v6449_v12 }
 0x4e1   : > { %4818 = vmatprep.subr.bf16.mxu0 %v6453_v13 }
 0x4e4   : > { %4820 = vmatpush1.bf16.msra.mxu0 %v6471_v22 }
 0x4e5   : > { %4822 = vmatprep.subr.bf16.mxu0 %v6475_v26 }
 0x4e8   : > { %4824 = vmatpush1.bf16.msra.mxu0 %v6485_v30 }
 0x4e9   : > { %4874 = vmatprep.subr.bf16.mxu0 %v6268_v60 }
 0x4eb   : > { %4517 = vmatmul.mubr.msk.f32.vlgmr.msra.gmra.mrb[4].mxu0 %vm918_vm0, %v1158_v6 }
 0x4ec   : > { %4876 = vmatpush1.bf16.msra.mxu0 %v6283_v49  ;;  %2008 = vmatprep.mubr.f32.mxu0 %v5584_v46 }
 0x4ed   : > { %4878 = vmatprep.subr.bf16.mxu0 %v6308_v2 }
 0x4f0   : > { %4880 = vmatpush1.bf16.msra.mxu0 %v6322_v11 }
 0x4f1   : > { %4882 = vmatprep.subr.bf16.mxu0 %v6337_v18 }
 0x4f4   : > { %4884 = vmatpush1.bf16.msra.mxu0 %v6360_v29 }
 0x4f5   : > { %4886 = vmatprep.subr.bf16.mxu0 %v6375_v34 }
 0x4f8   : > { %4888 = vmatpush1.bf16.msra.mxu0 %v6402_v59 }
 0x4f9   : > { %4890 = vmatprep.subr.bf16.mxu0 %v6281_v47 }
 0x59e   : > { %v1442_v43 = vpop.f32.mrb[2].mxu0 }
 0x59f   : > { %v1444_v19 = vpop.f32.mrb[3].mxu0  ;;  %v1447_v39 = vadd.f32 %v1442_v43, %v1371_v37 }
 0x5a0   : > { %v1448_v20 = vadd.f32 %v1444_v19, %v1372_v14 }
 0x5a1   : > { %v1449_v58 = vmul.f32 0.5, %v1447_v39 }
 0x5a2   : > { %5384 = vtanh.f32 %v1448_v20  ;;  %v1450_v39 = vmul.f32 0.5, %v1448_v20 }
 0x5ac   : > { %v5385_v1 = vpop.eup %5384 }
 0x5ad   : > { %1460 = vrot.lane.b32.xlu0 %v5385_v1, %s5585_s6 }
 0x5be   : > { %v1615_v27 = vpop.f32.mrb[4].mxu0 }
 0x5bf   : > { %v1617_v41 = vpop.f32.mrb[5].mxu0  ;;  %v1620_v63 = vadd.f32 %v1615_v27, %v5821_v52 }
 0x5c0   : > { %v1621_v31 = vadd.f32 %v1617_v41, %v5823_v54 }
 0x5c1   : > { %v1622_v6 = vmul.f32 0.5, %v1620_v63 }
 0x5c2   : > { %5386 = vtanh.f32 %v1621_v31 }
 0x5c3   : > { %5388 = vtanh.f32 %v1449_v58 }
 0x5c4   : > { %5390 = vtanh.f32 %v1622_v6 }
 0x5cc   : > { %v5387_v36 = vpop.eup %5386 }
 0x5cd   : > { %1633 = vrot.lane.b32.xlu1 %v5387_v36, %s5585_s6  ;;  %v5389_v45 = vpop.eup %5388 }
 0x5ce   : > { %v1453_v51 = vmul.f32 0.5, %v5389_v45  ;;  %v5391_v42 = vpop.eup %5390 }
 0x5cf   : > { %v1626_v35 = vmul.f32 0.5, %v5391_v42 }
 0x5d0   : > { %v1455_v50 = vadd.f32 0.5, %v1453_v51 }
 0x5d1   : > { %v1628_v40 = vadd.f32 0.5, %v1626_v35 }
 0x5d2   : > { %v1458_v14 = vmul.f32 %v1455_v50, %v6515_v32 }
 0x5d3   : > { %v1631_v27 = vmul.f32 %v1628_v40, %v6520_v57  ;;  %v1623_v57 = vmul.f32 0.5, %v1621_v31  ;;  %v1656_v31 = vld [vmem:[%s1654_s22 + $0x8] sm:$0xff] }
 0x61f   : > { %v1461_v55 = vpop.permute.xlu0 %1460 }
 0x620   : > { %v1463_v61 = vmul.f32 %v1461_v55, %v1455_v50 }
 0x622   : > { %1465 = vrot.lane.b32.xlu0 %v1463_v61, %s5585_s6 }
 0x63f   : > { %v1634_v7 = vpop.permute.xlu1 %1633 }
 0x640   : > { %v1636_v8 = vmul.f32 %v1634_v7, %v1628_v40 }
 0x642   : > { %1638 = vrot.lane.b32.xlu1 %v1636_v8, %s5585_s6 }
 0x694   : > { %v1466_v43 = vpop.permute.xlu0 %1465 }
 0x695   : > { %v6562_v19 = vadd.f32 %v1466_v43, %v1458_v14 }
 0x697   : > { %5392 = vtanh.f32 %v6562_v19 }
 0x6a1   : > { %v5393_v1 = vpop.eup %5392 }
 0x6a2   : > { %1471 = vrot.lane.b32.xlu0 %v5393_v1, %s5585_s6 }
 0x6b4   : > { %v1639_v41 = vpop.permute.xlu1 %1638 }
 0x6b5   : > { %v6567_v36 = vadd.f32 %v1639_v41, %v1631_v27  ;;  %v1655_v27 = vld [vmem:[%s1654_s22] sm:$0xff] }
 0x6b7   : > { %5394 = vtanh.f32 %v6567_v36 }
 0x6b8   : > { %5396 = vtanh.f32 %v1450_v39 }
 0x6b9   : > { %5398 = vtanh.f32 %v1623_v57 }
 0x6c1   : > { %v5395_v37 = vpop.eup %5394 }
 0x6c2   : > { %1644 = vrot.lane.b32.xlu1 %v5395_v37, %s5585_s6  ;;  %v5397_v32 = vpop.eup %5396 }
 0x6c3   : > { %v1454_v58 = vmul.f32 0.5, %v5397_v32  ;;  %v5399_v20 = vpop.eup %5398 }
 0x6c4   : > { %v1627_v55 = vmul.f32 0.5, %v5399_v20 }
 0x6c5   : > { %v1456_v45 = vadd.f32 0.5, %v1454_v58 }
 0x6c6   : > { %v1629_v61 = vadd.f32 0.5, %v1627_v55 }
 0x714   : > { %v1472_v51 = vpop.permute.xlu0 %1471 }
 0x715   : > { %v1474_v50 = vmul.f32 %v1472_v51, %v1456_v45 }
 0x717   : > { %4521 = vmatmul.mubr.msk.f32.vlgmr.msra.gmra.mrb[2].mxu1 %vm918_vm0, %v1474_v50 }
 0x718   : > { %4844 = vmatpush1.bf16.msra.mxu1 %v6295_v62  ;;  %1826 = vmatprep.mubr.f32.mxu1 %v5584_v46 }
 0x719   : > { %4846 = vmatprep.subr.bf16.mxu1 %v6310_v4 }
 0x71c   : > { %4848 = vmatpush1.bf16.msra.mxu1 %v6335_v17 }
 0x71d   : > { %4850 = vmatprep.subr.bf16.mxu1 %v6348_v25 }
 0x720   : > { %4852 = vmatpush1.bf16.msra.mxu1 %v6373_v33 }
 0x721   : > { %4854 = vmatprep.subr.bf16.mxu1 %v6387_v38 }
 0x724   : > { %4856 = vmatpush1.bf16.msra.mxu1 %v6406_v21 }
 0x725   : > { %4858 = vmatprep.subr.bf16.mxu1 %v6409_v44 }
 0x734   : > { %v1645_v63 = vpop.permute.xlu1 %1644 }
 0x735   : > { %v1647_v6 = vmul.f32 %v1645_v63, %v1629_v61 }
 0x737   : > { %4522 = vmatmul.mubr.msk.f32.vlgmr.msra.gmra.mrb[4].mxu1 %vm918_vm0, %v1647_v6 }
 0x738   : > { %4860 = vmatpush1.bf16.msra.mxu1 %v6425_v0  ;;  %1897 = vmatprep.mubr.f32.mxu1 %v5584_v46 }
 0x739   : > { %4862 = vmatprep.subr.bf16.mxu1 %v6429_v56 }
 0x73c   : > { %4864 = vmatpush1.bf16.msra.mxu1 %v6449_v12 }
 0x73d   : > { %4866 = vmatprep.subr.bf16.mxu1 %v6453_v13 }
 0x740   : > { %4868 = vmatpush1.bf16.msra.mxu1 %v6471_v22 }
 0x741   : > { %4870 = vmatprep.subr.bf16.mxu1 %v6475_v26 }
 0x744   : > { %4872 = vmatpush1.bf16.msra.mxu1 %v6485_v30 }
 0x745   : > { %4922 = vmatprep.subr.bf16.mxu1 %v6268_v60 }
 0x747   : > { %4523 = vmatmul.mubr.msk.f32.vlgmr.msra.gmra.mrb[4].mxu1 %vm918_vm0, %v1474_v50 }
 0x748   : > { %4924 = vmatpush1.bf16.msra.mxu1 %v6283_v49  ;;  %2292 = vmatprep.mubr.f32.mxu1 %v5584_v46 }
 0x749   : > { %4926 = vmatprep.subr.bf16.mxu1 %v6308_v2 }
 0x74c   : > { %4928 = vmatpush1.bf16.msra.mxu1 %v6322_v11 }
 0x74d   : > { %4930 = vmatprep.subr.bf16.mxu1 %v6337_v18 }
 0x750   : > { %4932 = vmatpush1.bf16.msra.mxu1 %v6360_v29 }
 0x751   : > { %4934 = vmatprep.subr.bf16.mxu1 %v6375_v34 }
 0x754   : > { %4936 = vmatpush1.bf16.msra.mxu1 %v6402_v59 }
 0x755   : > { %4938 = vmatprep.subr.bf16.mxu1 %v6281_v47 }
 0x7ea   : > { %v1726_v42 = vpop.f32.mrb[2].mxu1 }
 0x7eb   : > { %v1728_v35 = vpop.f32.mrb[3].mxu1  ;;  %v1731_v41 = vadd.f32 %v1726_v42, %v1655_v27 }
 0x7ec   : > { %v1732_v40 = vadd.f32 %v1728_v35, %v1656_v31 }
 0x7ed   : > { %v1733_v37 = vmul.f32 0.5, %v1731_v41 }
 0x7ee   : > { %5400 = vtanh.f32 %v1732_v40  ;;  %v1734_v41 = vmul.f32 0.5, %v1732_v40 }
 0x7f8   : > { %v5401_v7 = vpop.eup %5400 }
 0x7f9   : > { %1744 = vrot.lane.b32.xlu0 %v5401_v7, %s5585_s6 }
 0x81a   : > { %v1899_v8 = vpop.f32.mrb[4].mxu1 }
 0x81b   : > { %v1901_v14 = vpop.f32.mrb[5].mxu1  ;;  %v1904_v50 = vadd.f32 %v1899_v8, %v5821_v52 }
 0x81c   : > { %v1905_v43 = vadd.f32 %v1901_v14, %v5823_v54 }
 0x81d   : > { %v1906_v57 = vmul.f32 0.5, %v1904_v50 }
 0x81e   : > { %5402 = vtanh.f32 %v1905_v43 }
 0x81f   : > { %5404 = vtanh.f32 %v1733_v37 }
 0x820   : > { %5406 = vtanh.f32 %v1906_v57 }
 0x828   : > { %v5403_v1 = vpop.eup %5402 }
 0x829   : > { %1917 = vrot.lane.b32.xlu1 %v5403_v1, %s5585_s6  ;;  %v5405_v39 = vpop.eup %5404 }
 0x82a   : > { %v1737_v32 = vmul.f32 0.5, %v5405_v39  ;;  %v5407_v20 = vpop.eup %5406 }
 0x82b   : > { %v1910_v55 = vmul.f32 0.5, %v5407_v20 }
 0x82c   : > { %v1739_v58 = vadd.f32 0.5, %v1737_v32 }
 0x82d   : > { %v1912_v61 = vadd.f32 0.5, %v1910_v55 }
 0x82e   : > { %v1742_v31 = vmul.f32 %v1739_v58, %v6562_v19 }
 0x82f   : > { %v1915_v8 = vmul.f32 %v1912_v61, %v6567_v36  ;;  %v1907_v36 = vmul.f32 0.5, %v1905_v43  ;;  %v1940_v43 = vld [vmem:[%s1938_s0 + $0x8] sm:$0xff] }
 0x86b   : > { %v1745_v45 = vpop.permute.xlu0 %1744 }
 0x86c   : > { %v1747_v51 = vmul.f32 %v1745_v45, %v1739_v58 }
 0x86e   : > { %1749 = vrot.lane.b32.xlu0 %v1747_v51, %s5585_s6 }
 0x89b   : > { %v1918_v63 = vpop.permute.xlu1 %1917 }
 0x89c   : > { %v1920_v6 = vmul.f32 %v1918_v63, %v1912_v61 }
 0x89e   : > { %1922 = vrot.lane.b32.xlu1 %v1920_v6, %s5585_s6 }
 0x8e0   : > { %v1750_v42 = vpop.permute.xlu0 %1749 }
 0x8e1   : > { %v6609_v35 = vadd.f32 %v1750_v42, %v1742_v31 }
 0x8e3   : > { %5408 = vtanh.f32 %v6609_v35 }
 0x8ed   : > { %v5409_v7 = vpop.eup %5408 }
 0x8ee   : > { %1755 = vrot.lane.b32.xlu0 %v5409_v7, %s5585_s6 }
 0x910   : > { %v1923_v14 = vpop.permute.xlu1 %1922 }
 0x911   : > { %v6614_v1 = vadd.f32 %v1923_v14, %v1915_v8  ;;  %v1939_v8 = vld [vmem:[%s1938_s0] sm:$0xff] }
 0x913   : > { %5410 = vtanh.f32 %v6614_v1 }
 0x914   : > { %5412 = vtanh.f32 %v1734_v41 }
 0x915   : > { %5414 = vtanh.f32 %v1907_v36 }
 0x91d   : > { %v5411_v27 = vpop.eup %5410 }
 0x91e   : > { %1928 = vrot.lane.b32.xlu1 %v5411_v27, %s5585_s6  ;;  %v5413_v19 = vpop.eup %5412 }
 0x91f   : > { %v1738_v37 = vmul.f32 0.5, %v5413_v19  ;;  %v5415_v40 = vpop.eup %5414 }
 0x920   : > { %v1911_v45 = vmul.f32 0.5, %v5415_v40 }
 0x921   : > { %v1740_v39 = vadd.f32 0.5, %v1738_v37 }
 0x922   : > { %v1913_v51 = vadd.f32 0.5, %v1911_v45 }
 0x960   : > { %v1756_v32 = vpop.permute.xlu0 %1755 }
 0x961   : > { %v1758_v58 = vmul.f32 %v1756_v32, %v1740_v39 }
 0x963   : > { %4527 = vmatmul.mubr.msk.f32.vlgmr.msra.gmra.mrb[6].mxu0 %vm918_vm0, %v1758_v58 }
 0x964   : > { %4892 = vmatpush1.bf16.msra.mxu0 %v6295_v62  ;;  %2110 = vmatprep.mubr.f32.mxu0 %v5584_v46 }
 0x965   : > { %4894 = vmatprep.subr.bf16.mxu0 %v6310_v4 }
 0x968   : > { %4896 = vmatpush1.bf16.msra.mxu0 %v6335_v17 }
 0x969   : > { %4898 = vmatprep.subr.bf16.mxu0 %v6348_v25 }
 0x96c   : > { %4900 = vmatpush1.bf16.msra.mxu0 %v6373_v33 }
 0x96d   : > { %4902 = vmatprep.subr.bf16.mxu0 %v6387_v38 }
 0x970   : > { %4904 = vmatpush1.bf16.msra.mxu0 %v6406_v21 }
 0x971   : > { %4906 = vmatprep.subr.bf16.mxu0 %v6409_v44 }
 0x990   : > { %v1929_v50 = vpop.permute.xlu1 %1928 }
 0x991   : > { %v1931_v57 = vmul.f32 %v1929_v50, %v1913_v51 }
 0x993   : > { %4528 = vmatmul.mubr.msk.f32.vlgmr.msra.gmra.mrb[8].mxu0 %vm918_vm0, %v1931_v57 }
 0x994   : > { %4908 = vmatpush1.bf16.msra.mxu0 %v6425_v0  ;;  %2181 = vmatprep.mubr.f32.mxu0 %v5584_v46 }
 0x995   : > { %4910 = vmatprep.subr.bf16.mxu0 %v6429_v56 }
 0x998   : > { %4912 = vmatpush1.bf16.msra.mxu0 %v6449_v12 }
 0x999   : > { %4914 = vmatprep.subr.bf16.mxu0 %v6453_v13 }
 0x99c   : > { %4916 = vmatpush1.bf16.msra.mxu0 %v6471_v22 }
 0x99d   : > { %4918 = vmatprep.subr.bf16.mxu0 %v6475_v26 }
 0x9a0   : > { %4920 = vmatpush1.bf16.msra.mxu0 %v6485_v30 }
 0x9a1   : > { %4970 = vmatprep.subr.bf16.mxu0 %v6268_v60 }
 0x9a3   : > { %4529 = vmatmul.mubr.msk.f32.vlgmr.msra.gmra.mrb[8].mxu0 %vm918_vm0, %v1758_v58 }
 0x9a4   : > { %4972 = vmatpush1.bf16.msra.mxu0 %v6283_v49  ;;  %2576 = vmatprep.mubr.f32.mxu0 %v5584_v46 }
 0x9a5   : > { %4974 = vmatprep.subr.bf16.mxu0 %v6308_v2 }
 0x9a8   : > { %4976 = vmatpush1.bf16.msra.mxu0 %v6322_v11 }
 0x9a9   : > { %4978 = vmatprep.subr.bf16.mxu0 %v6337_v18 }
 0x9ac   : > { %4980 = vmatpush1.bf16.msra.mxu0 %v6360_v29 }
 0x9ad   : > { %4982 = vmatprep.subr.bf16.mxu0 %v6375_v34 }
 0x9b0   : > { %4984 = vmatpush1.bf16.msra.mxu0 %v6402_v59 }
 0x9b1   : > { %4986 = vmatprep.subr.bf16.mxu0 %v6281_v47 }
 0xa36   : > { %v2010_v20 = vpop.f32.mrb[6].mxu0 }
 0xa37   : > { %v2012_v55 = vpop.f32.mrb[7].mxu0  ;;  %v2015_v14 = vadd.f32 %v2010_v20, %v1939_v8 }
 0xa38   : > { %v2016_v61 = vadd.f32 %v2012_v55, %v1940_v43 }
 0xa39   : > { %v2017_v27 = vmul.f32 0.5, %v2015_v14 }
 0xa3a   : > { %5416 = vtanh.f32 %v2016_v61  ;;  %v2018_v14 = vmul.f32 0.5, %v2016_v61 }
 0xa44   : > { %v5417_v63 = vpop.eup %5416 }
 0xa45   : > { %2028 = vrot.lane.b32.xlu0 %v5417_v63, %s5585_s6 }
 0xa76   : > { %v2183_v6 = vpop.f32.mrb[8].mxu0 }
 0xa77   : > { %v2185_v31 = vpop.f32.mrb[9].mxu0  ;;  %v2188_v58 = vadd.f32 %v2183_v6, %v5821_v52 }
 0xa78   : > { %v2189_v42 = vadd.f32 %v2185_v31, %v5823_v54 }
 0xa79   : > { %v2190_v36 = vmul.f32 0.5, %v2188_v58 }
 0xa7a   : > { %5418 = vtanh.f32 %v2189_v42 }
 0xa7b   : > { %5420 = vtanh.f32 %v2017_v27 }
 0xa7c   : > { %5422 = vtanh.f32 %v2190_v36 }
 0xa84   : > { %v5419_v7 = vpop.eup %5418 }
 0xa85   : > { %2201 = vrot.lane.b32.xlu1 %v5419_v7, %s5585_s6  ;;  %v5421_v41 = vpop.eup %5420 }
 0xa86   : > { %v2021_v19 = vmul.f32 0.5, %v5421_v41  ;;  %v5423_v40 = vpop.eup %5422 }
 0xa87   : > { %v2194_v45 = vmul.f32 0.5, %v5423_v40 }
 0xa88   : > { %v2023_v37 = vadd.f32 0.5, %v2021_v19 }
 0xa89   : > { %v2196_v51 = vadd.f32 0.5, %v2194_v45 }
 0xa8a   : > { %v2026_v43 = vmul.f32 %v2023_v37, %v6609_v35 }
 0xa8b   : > { %v2199_v6 = vmul.f32 %v2196_v51, %v6614_v1  ;;  %v2191_v1 = vmul.f32 0.5, %v2189_v42 }
 0xab7   : > { %v2029_v39 = vpop.permute.xlu0 %2028 }
 0xab8   : > { %v2031_v32 = vmul.f32 %v2029_v39, %v2023_v37 }
 0xaba   : > { %2033 = vrot.lane.b32.xlu0 %v2031_v32, %s5585_s6 }
 0xaf7   : > { %v2202_v50 = vpop.permute.xlu1 %2201 }
 0xaf8   : > { %v2204_v57 = vmul.f32 %v2202_v50, %v2196_v51 }
 0xafa   : > { %2206 = vrot.lane.b32.xlu1 %v2204_v57, %s5585_s6 }
 0xb2c   : > { %v2034_v20 = vpop.permute.xlu0 %2033 }
 0xb2d   : > { %v6656_v55 = vadd.f32 %v2034_v20, %v2026_v43 }
 0xb2f   : > { %5424 = vtanh.f32 %v6656_v55 }
 0xb39   : > { %v5425_v63 = vpop.eup %5424 }
 0xb3a   : > { %2039 = vrot.lane.b32.xlu0 %v5425_v63, %s5585_s6 }
 0xb6c   : > { %v2207_v31 = vpop.permute.xlu1 %2206 }
 0xb6d   : > { %v6661_v7 = vadd.f32 %v2207_v31, %v2199_v6 }
 0xb6f   : > { %5426 = vtanh.f32 %v6661_v7 }
 0xb70   : > { %5428 = vtanh.f32 %v2018_v14 }
 0xb71   : > { %5430 = vtanh.f32 %v2191_v1 }
 0xb79   : > { %v5427_v8 = vpop.eup %5426 }
 0xb7a   : > { %2212 = vrot.lane.b32.xlu1 %v5427_v8, %s5585_s6  ;;  %v5429_v35 = vpop.eup %5428 }
 0xb7b   : > { %v2022_v27 = vmul.f32 0.5, %v5429_v35  ;;  %v5431_v61 = vpop.eup %5430 }
 0xb7c   : > { %v2195_v39 = vmul.f32 0.5, %v5431_v61 }
 0xb7d   : > { %v2024_v41 = vadd.f32 0.5, %v2022_v27 }
 0xb7e   : > { %v2197_v32 = vadd.f32 0.5, %v2195_v39 }
 0xbac   : > { %v2040_v19 = vpop.permute.xlu0 %2039 }
 0xbad   : > { %v2042_v37 = vmul.f32 %v2040_v19, %v2024_v41 }
 0xbaf   : > { %4533 = vmatmul.mubr.msk.f32.vlgmr.msra.gmra.mrb[6].mxu1 %vm918_vm0, %v2042_v37 }
 0xbb0   : > { %4940 = vmatpush1.bf16.msra.mxu1 %v6295_v62  ;;  %2394 = vmatprep.mubr.f32.mxu1 %v5584_v46 }
 0xbb1   : > { %4942 = vmatprep.subr.bf16.mxu1 %v6310_v4 }
 0xbb4   : > { %4944 = vmatpush1.bf16.msra.mxu1 %v6335_v17 }
 0xbb5   : > { %4946 = vmatprep.subr.bf16.mxu1 %v6348_v25 }
 0xbb8   : > { %4948 = vmatpush1.bf16.msra.mxu1 %v6373_v33 }
 0xbb9   : > { %4950 = vmatprep.subr.bf16.mxu1 %v6387_v38 }
 0xbbc   : > { %4952 = vmatpush1.bf16.msra.mxu1 %v6406_v21 }
 0xbbd   : > { %4954 = vmatprep.subr.bf16.mxu1 %v6409_v44 }
 0xbec   : > { %v2213_v58 = vpop.permute.xlu1 %2212 }
 0xbed   : > { %v2215_v36 = vmul.f32 %v2213_v58, %v2197_v32 }
 0xbef   : > { %4534 = vmatmul.mubr.msk.f32.vlgmr.msra.gmra.mrb[8].mxu1 %vm918_vm0, %v2215_v36 }
 0xbf0   : > { %4956 = vmatpush1.bf16.msra.mxu1 %v6425_v0  ;;  %2465 = vmatprep.mubr.f32.mxu1 %v5584_v46 }
 0xbf1   : > { %4958 = vmatprep.subr.bf16.mxu1 %v6429_v56 }
 0xbf4   : > { %4960 = vmatpush1.bf16.msra.mxu1 %v6449_v12 }
 0xbf5   : > { %4962 = vmatprep.subr.bf16.mxu1 %v6453_v13 }
 0xbf8   : > { %4964 = vmatpush1.bf16.msra.mxu1 %v6471_v22 }
 0xbf9   : > { %4966 = vmatprep.subr.bf16.mxu1 %v6475_v26 }
 0xbfc   : > { %4968 = vmatpush1.bf16.msra.mxu1 %v6485_v30 }
 0xbfd   : > { %5018 = vmatprep.subr.bf16.mxu1 %v6268_v60  ;;  %v2224_v60 = vld [vmem:[%s2222_s3 + $0x8] sm:$0xff] }
 0xbff   : > { %4535 = vmatmul.mubr.msk.f32.vlgmr.msra.gmra.mrb[8].mxu1 %vm918_vm0, %v2042_v37 }
 0xc00   : > { %5020 = vmatpush1.bf16.msra.mxu1 %v6283_v49  ;;  %2860 = vmatprep.mubr.f32.mxu1 %v5584_v46 }
 0xc01   : > { %5022 = vmatprep.subr.bf16.mxu1 %v6308_v2 }
 0xc04   : > { %5024 = vmatpush1.bf16.msra.mxu1 %v6322_v11 }
 0xc05   : > { %5026 = vmatprep.subr.bf16.mxu1 %v6337_v18 }
 0xc08   : > { %5028 = vmatpush1.bf16.msra.mxu1 %v6360_v29 }
 0xc09   : > { %5030 = vmatprep.subr.bf16.mxu1 %v6375_v34 }
 0xc0c   : > { %5032 = vmatpush1.bf16.msra.mxu1 %v6402_v59 }
 0xc0d   : > { %5034 = vmatprep.subr.bf16.mxu1 %v6281_v47  ;;  %v2223_v47 = vld [vmem:[%s2222_s3] sm:$0xff] }
 0xc82   : > { %v2294_v49 = vpop.f32.mrb[6].mxu1 }
 0xc83   : > { %v2296_v42 = vpop.f32.mrb[7].mxu1  ;;  %v2299_v40 = vadd.f32 %v2294_v49, %v2223_v47 }
 0xc84   : > { %v2300_v2 = vadd.f32 %v2296_v42, %v2224_v60 }
 0xc85   : > { %v2301_v45 = vmul.f32 0.5, %v2299_v40 }
 0xc86   : > { %5432 = vtanh.f32 %v2300_v2  ;;  %v2302_v36 = vmul.f32 0.5, %v2300_v2 }
 0xc90   : > { %v5433_v11 = vpop.eup %5432 }
 0xc91   : > { %2312 = vrot.lane.b32.xlu0 %v5433_v11, %s5585_s6 }
 0xcd2   : > { %v2467_v18 = vpop.f32.mrb[8].mxu1 }
 0xcd3   : > { %v2469_v29 = vpop.f32.mrb[9].mxu1  ;;  %v2472_v63 = vadd.f32 %v2467_v18, %v5821_v52 }
 0xcd4   : > { %v2473_v34 = vadd.f32 %v2469_v29, %v5823_v54 }
 0xcd5   : > { %v2474_v6 = vmul.f32 0.5, %v2472_v63  ;;  %v2507_v63 = vld [vmem:[%s2506_s25] sm:$0xff] }
 0xcd6   : > { %5434 = vtanh.f32 %v2473_v34 }
 0xcd7   : > { %5436 = vtanh.f32 %v2301_v45 }
 0xcd8   : > { %5438 = vtanh.f32 %v2474_v6 }
 0xce0   : > { %v5435_v59 = vpop.eup %5434 }
 0xce1   : > { %2485 = vrot.lane.b32.xlu1 %v5435_v59, %s5585_s6  ;;  %v5437_v51 = vpop.eup %5436 }
 0xce2   : > { %v2305_v50 = vmul.f32 0.5, %v5437_v51  ;;  %v5439_v31 = vpop.eup %5438 }
 0xce3   : > { %v2478_v8 = vmul.f32 0.5, %v5439_v31 }
 0xce4   : > { %v2307_v57 = vadd.f32 0.5, %v2305_v50 }
 0xce5   : > { %v2480_v14 = vadd.f32 0.5, %v2478_v8 }
 0xce6   : > { %v2310_v41 = vmul.f32 %v2307_v57, %v6656_v55 }
 0xce7   : > { %v2483_v61 = vmul.f32 %v2480_v14, %v6661_v7  ;;  %v2475_v7 = vmul.f32 0.5, %v2473_v34  ;;  %v2508_v34 = vld [vmem:[%s2506_s25 + $0x8] sm:$0xff] }
 0xd03   : > { %v2313_v43 = vpop.permute.xlu0 %2312 }
 0xd04   : > { %v2315_v20 = vmul.f32 %v2313_v43, %v2307_v57 }
 0xd06   : > { %2317 = vrot.lane.b32.xlu0 %v2315_v20, %s5585_s6 }
 0xd53   : > { %v2486_v35 = vpop.permute.xlu1 %2485 }
 0xd54   : > { %v2488_v27 = vmul.f32 %v2486_v35, %v2480_v14 }
 0xd56   : > { %2490 = vrot.lane.b32.xlu1 %v2488_v27, %s5585_s6 }
 0xd78   : > { %v2318_v19 = vpop.permute.xlu0 %2317 }
 0xd79   : > { %v6703_v37 = vadd.f32 %v2318_v19, %v2310_v41 }
 0xd7b   : > { %5440 = vtanh.f32 %v6703_v37 }
 0xd85   : > { %v5441_v1 = vpop.eup %5440 }
 0xd86   : > { %2323 = vrot.lane.b32.xlu0 %v5441_v1, %s5585_s6 }
 0xdc8   : > { %v2491_v39 = vpop.permute.xlu1 %2490 }
 0xdc9   : > { %v6708_v32 = vadd.f32 %v2491_v39, %v2483_v61 }
 0xdcb   : > { %5442 = vtanh.f32 %v6708_v32 }
 0xdcc   : > { %5444 = vtanh.f32 %v2302_v36 }
 0xdcd   : > { %5446 = vtanh.f32 %v2475_v7 }
 0xdd5   : > { %v5443_v58 = vpop.eup %5442 }
 0xdd6   : > { %2496 = vrot.lane.b32.xlu1 %v5443_v58, %s5585_s6  ;;  %v5445_v55 = vpop.eup %5444 }
 0xdd7   : > { %v2306_v60 = vmul.f32 0.5, %v5445_v55  ;;  %v5447_v2 = vpop.eup %5446 }
 0xdd8   : > { %v2479_v18 = vmul.f32 0.5, %v5447_v2 }
 0xdd9   : > { %v2308_v49 = vadd.f32 0.5, %v2306_v60 }
 0xdda   : > { %v2481_v29 = vadd.f32 0.5, %v2479_v18 }
 0xdf8   : > { %v2324_v42 = vpop.permute.xlu0 %2323 }
 0xdf9   : > { %v2326_v11 = vmul.f32 %v2324_v42, %v2308_v49 }
 0xdfb   : > { %4539 = vmatmul.mubr.msk.f32.vlgmr.msra.gmra.mrb[10].mxu0 %vm918_vm0, %v2326_v11 }
 0xdfc   : > { %4988 = vmatpush1.bf16.msra.mxu0 %v6295_v62  ;;  %2678 = vmatprep.mubr.f32.mxu0 %v5584_v46 }
 0xdfd   : > { %4990 = vmatprep.subr.bf16.mxu0 %v6310_v4 }
 0xe00   : > { %4992 = vmatpush1.bf16.msra.mxu0 %v6335_v17 }
 0xe01   : > { %4994 = vmatprep.subr.bf16.mxu0 %v6348_v25 }
 0xe04   : > { %4996 = vmatpush1.bf16.msra.mxu0 %v6373_v33 }
 0xe05   : > { %4998 = vmatprep.subr.bf16.mxu0 %v6387_v38 }
 0xe08   : > { %5000 = vmatpush1.bf16.msra.mxu0 %v6406_v21 }
 0xe09   : > { %5002 = vmatprep.subr.bf16.mxu0 %v6409_v44 }
 0xe48   : > { %v2497_v59 = vpop.permute.xlu1 %2496 }
 0xe49   : > { %v2499_v47 = vmul.f32 %v2497_v59, %v2481_v29 }
 0xe4b   : > { %4540 = vmatmul.mubr.msk.f32.vlgmr.msra.gmra.mrb[12].mxu0 %vm918_vm0, %v2499_v47 }
 0xe4c   : > { %5004 = vmatpush1.bf16.msra.mxu0 %v6425_v0  ;;  %2749 = vmatprep.mubr.f32.mxu0 %v5584_v46 }
 0xe4d   : > { %5006 = vmatprep.subr.bf16.mxu0 %v6429_v56 }
 0xe50   : > { %5008 = vmatpush1.bf16.msra.mxu0 %v6449_v12 }
 0xe51   : > { %5010 = vmatprep.subr.bf16.mxu0 %v6453_v13 }
 0xe54   : > { %5012 = vmatpush1.bf16.msra.mxu0 %v6471_v22 }
 0xe55   : > { %5014 = vmatprep.subr.bf16.mxu0 %v6475_v26 }
 0xe58   : > { %5016 = vmatpush1.bf16.msra.mxu0 %v6485_v30 }
 0xe59   :  { %5066 = vmatprep.subr.bf16.mxu0 (%p1023_p0), %v5687_v5 }
 0xe5b   : > { %4541 = vmatmul.mubr.msk.f32.vlgmr.msra.gmra.mrb[12].mxu0 %vm918_vm0, %v2326_v11 }
 0xe5c   :  { %3137 = vmatprep.mubr.f32.mxu0 (%p1023_p0), %v5580_v3  ;;  %5068 = vmatpush1.bf16.msra.mxu0 (%p1023_p0), %v5699_v9 }
 0xe5d   :  { %5070 = vmatprep.subr.bf16.mxu0 (%p1023_p0), %v5701_v10 }
 0xe60   :  { %5072 = vmatpush1.bf16.msra.mxu0 (%p1023_p0), %v5717_v15 }
 0xe61   :  { %5074 = vmatprep.subr.bf16.mxu0 (%p1023_p0), %v5720_v16 }
 0xe64   :  { %5076 = vmatpush1.bf16.msra.mxu0 (%p1023_p0), %v5741_v23 }
 0xe65   :  { %5078 = vmatprep.subr.bf16.mxu0 (%p1023_p0), %v5744_v24 }
 0xe68   :  { %5080 = vmatpush1.bf16.msra.mxu0 (%p1023_p0), %v5756_v28 }
 0xe69   :  { %5114 = vmatprep.subr.bf16.mxu0 (%p1023_p0), %v5687_v5 }
 0xece   : > { %v2578_v40 = vpop.f32.mrb[10].mxu0 }
 0xecf   : > { %v2580_v45 = vpop.f32.mrb[11].mxu0  ;;  %v2583_v6 = vadd.f32 %v2578_v40, %v2507_v63 }
 0xed0   : > { %v2584_v51 = vadd.f32 %v2580_v45, %v2508_v34 }
 0xed1   : > { %v2585_v31 = vmul.f32 0.5, %v2583_v6 }
 0xed2   : > { %5448 = vtanh.f32 %v2584_v51  ;;  %v2586_v59 = vmul.f32 0.5, %v2584_v51 }
 0xedc   : > { %v5449_v50 = vpop.eup %5448 }
 0xedd   : > { %2596 = vrot.lane.b32.xlu0 %v5449_v50, %s5585_s6 }
 0xf2e   : > { %v2751_v57 = vpop.f32.mrb[12].mxu0 }
 0xf2f   : > { %v2753_v43 = vpop.f32.mrb[13].mxu0  ;;  %v2756_v1 = vadd.f32 %v2751_v57, %v5821_v52 }
 0xf30   : > { %v2757_v20 = vadd.f32 %v2753_v43, %v5823_v54 }
 0xf31   : > { %v2758_v61 = vmul.f32 0.5, %v2756_v1 }
 0xf32   : > { %5450 = vtanh.f32 %v2757_v20 }
 0xf33   : > { %5452 = vtanh.f32 %v2585_v31 }
 0xf34   : > { %5454 = vtanh.f32 %v2758_v61 }
 0xf3c   : > { %v5451_v8 = vpop.eup %5450 }
 0xf3d   : > { %2769 = vrot.lane.b32.xlu1 %v5451_v8, %s5585_s6  ;;  %v5453_v14 = vpop.eup %5452 }
 0xf3e   : > { %v2589_v35 = vmul.f32 0.5, %v5453_v14  ;;  %v5455_v39 = vpop.eup %5454 }
 0xf3f   : > { %v2762_v58 = vmul.f32 0.5, %v5455_v39 }
 0xf40   : > { %v2591_v27 = vadd.f32 0.5, %v2589_v35 }
 0xf41   : > { %v2764_v36 = vadd.f32 0.5, %v2762_v58 }
 0xf42   : > { %v2594_v49 = vmul.f32 %v2591_v27, %v6703_v37 }
 0xf43   : > { %v2767_v2 = vmul.f32 %v2764_v36, %v6708_v32  ;;  %v2759_v32 = vmul.f32 0.5, %v2757_v20 }
 0xf4f   : > { %v2597_v41 = vpop.permute.xlu0 %2596 }
 0xf50   : > { %v2599_v19 = vmul.f32 %v2597_v41, %v2591_v27 }
 0xf52   : > { %2601 = vrot.lane.b32.xlu0 %v2599_v19, %s5585_s6 }
 0xfaf   : > { %v2770_v55 = vpop.permute.xlu1 %2769 }
 0xfb0   : > { %v2772_v60 = vmul.f32 %v2770_v55, %v2764_v36 }
 0xfb2   : > { %2774 = vrot.lane.b32.xlu1 %v2772_v60, %s5585_s6 }
 0xfc4   : > { %v2602_v42 = vpop.permute.xlu0 %2601 }
 0xfc5   : > { %v6740_v11 = vadd.f32 %v2602_v42, %v2594_v49 }
 0xfc7   : > { %5456 = vtanh.f32 %v6740_v11 }
 0xfd1   : > { %v5457_v7 = vpop.eup %5456 }
 0xfd2   : > { %2607 = vrot.lane.b32.xlu0 %v5457_v7, %s5585_s6 }
0x1024   : > { %v2775_v18 = vpop.permute.xlu1 %2774 }
0x1025   : > { %v6745_v29 = vadd.f32 %v2775_v18, %v2767_v2 }
0x1027   : > { %5458 = vtanh.f32 %v6745_v29 }
0x1028   : > { %5460 = vtanh.f32 %v2586_v59 }
0x1029   : > { %5462 = vtanh.f32 %v2759_v32  ;;  %v3189_v32 = vld [vmem:[%s7242_s7 + $0x8] sm:$0xff] (%p1023_p0) }
0x1031   : > { %v5459_v47 = vpop.eup %5458 }
0x1032   : > { %2780 = vrot.lane.b32.xlu1 %v5459_v47, %s5585_s6  ;;  %v5461_v37 = vpop.eup %5460 }
0x1033   : > { %v2590_v34 = vmul.f32 0.5, %v5461_v37 }
0x1035   : > { %v2592_v40 = vadd.f32 0.5, %v2590_v34 }
0x1044   : > { %v2608_v45 = vpop.permute.xlu0 %2607 }
0x1045   : > { %v2610_v50 = vmul.f32 %v2608_v45, %v2592_v40 }
0x1047   : > { %4545 = vmatmul.mubr.msk.f32.vlgmr.msra.gmra.mrb[10].mxu1 %vm918_vm0, %v2610_v50 }
0x1048   : > { %5036 = vmatpush1.bf16.msra.mxu1 %v6295_v62  ;;  %2962 = vmatprep.mubr.f32.mxu1 %v5584_v46  ;;  %v5463_v62 = vpop.eup %5462 }
0x1049   : > { %5038 = vmatprep.subr.bf16.mxu1 %v6310_v4  ;;  %v2763_v51 = vmul.f32 0.5, %v5463_v62  ;;  %v3191_v62 = vld [vmem:[%s7242_s7 + $0x18] sm:$0xff] (%p1023_p0) }
0x104b   : > { %v2765_v57 = vadd.f32 0.5, %v2763_v51 }
0x104c   : > { %5040 = vmatpush1.bf16.msra.mxu1 %v6335_v17  ;;  %v2792_v17 = vld [vmem:[%s2790_s29 + $0x8] sm:$0xff] }
0x104d   : > { %5042 = vmatprep.subr.bf16.mxu1 %v6348_v25 }
0x1050   : > { %5044 = vmatpush1.bf16.msra.mxu1 %v6373_v33 }
0x1051   : > { %5046 = vmatprep.subr.bf16.mxu1 %v6387_v38 }
0x1054   : > { %5048 = vmatpush1.bf16.msra.mxu1 %v6406_v21  ;;  %v2791_v21 = vld [vmem:[%s2790_s29] sm:$0xff] }
0x1055   : > { %5050 = vmatprep.subr.bf16.mxu1 %v6409_v44 }
0x10a4   : > { %v2781_v43 = vpop.permute.xlu1 %2780 }
0x10a5   : > { %v2783_v4 = vmul.f32 %v2781_v43, %v2765_v57  ;;  %v3188_v57 = vld [vmem:[%s7242_s7] sm:$0xff] (%p1023_p0) }
0x10a7   : > { %4546 = vmatmul.mubr.msk.f32.vlgmr.msra.gmra.mrb[12].mxu1 %vm918_vm0, %v2783_v4  ;;  %v6817_v4 = vpack.c.bf16 (%p1023_p0), %v3191_v62, %v3189_v32 }
0x10a8   : > { %5052 = vmatpush1.bf16.msra.mxu1 %v6425_v0  ;;  %3033 = vmatprep.mubr.f32.mxu1 %v5584_v46 }
0x10a9   : > { %5054 = vmatprep.subr.bf16.mxu1 %v6429_v56 }
0x10ac   : > { %5056 = vmatpush1.bf16.msra.mxu1 %v6449_v12 }
0x10ad   : > { %5058 = vmatprep.subr.bf16.mxu1 %v6453_v13 }
0x10b0   : > { %5060 = vmatpush1.bf16.msra.mxu1 %v6471_v22 }
0x10b1   : > { %5062 = vmatprep.subr.bf16.mxu1 %v6475_v26 }
0x10b4   : > { %5064 = vmatpush1.bf16.msra.mxu1 %v6485_v30 }
0x10b5   :  { %5082 = vmatprep.subr.bf16.mxu1 (%p1023_p0), %v6817_v4 }
0x10b7   : > { %4547 = vmatmul.mubr.msk.f32.vlgmr.msra.gmra.mrb[12].mxu1 %vm918_vm0, %v2610_v50 }
0x10b8   :  { %3271 = vmatprep.mubr.f32.mxu1 (%p1023_p0), %v5580_v3 }
0x111a   : > { %v2862_v46 = vpop.f32.mrb[10].mxu1 }
0x111b   : > { %v2864_v25 = vpop.f32.mrb[11].mxu1  ;;  %v2867_v44 = vadd.f32 %v2862_v46, %v2791_v21  ;;  %v3199_v21 = vld [vmem:[%s7242_s7 + $0x58] sm:$0xff] (%p1023_p0) }
0x111c   : > { %v2868_v33 = vadd.f32 %v2864_v25, %v2792_v17  ;;  %v3192_v25 = vld [vmem:[%s7242_s7 + $0x20] sm:$0xff] (%p1023_p0) }
0x111d   : > { %v2869_v0 = vmul.f32 0.5, %v2867_v44 }
0x111e   : > { %5464 = vtanh.f32 %v2868_v33  ;;  %v2870_v36 = vmul.f32 0.5, %v2868_v33  ;;  %v3194_v33 = vld [vmem:[%s7242_s7 + $0x30] sm:$0xff] (%p1023_p0) }
0x111f   : > { %5466 = vtanh.f32 %v2869_v0  ;;  %v6848_v44 = vpack.c.bf16 (%p1023_p0), %v3194_v33, %v3192_v25 }
0x1128   : > { %v5465_v38 = vpop.eup %5464 }
0x1129   : > { %2880 = vrot.lane.b32.xlu0 %v5465_v38, %s5585_s6  ;;  %v5467_v22 = vpop.eup %5466  ;;  %v3197_v38 = vld [vmem:[%s7242_s7 + $0x48] sm:$0xff] (%p1023_p0) }
0x112a   : > { %v2873_v26 = vmul.f32 0.5, %v5467_v22  ;;  %v6852_v0 = vpack.c.bf16 (%p1023_p0), %v3199_v21, %v3197_v38  ;;  %v3203_v22 = vld [vmem:[%s7242_s7 + $0x78] sm:$0xff] (%p1023_p0) }
0x112c   : > { %v2875_v20 = vadd.f32 0.5, %v2873_v26 }
0x112e   : > { %v2878_v1 = vmul.f32 %v2875_v20, %v6740_v11 }
0x118a   : > { %v3035_v56 = vpop.f32.mrb[12].mxu1 }
0x118b   : > { %v3037_v12 = vpop.f32.mrb[13].mxu1  ;;  %v3040_v31 = vadd.f32 %v3035_v56, %v5821_v52  ;;  %v3196_v56 = vld [vmem:[%s7242_s7 + $0x40] sm:$0xff] (%p1023_p0) }
0x118c   : > { %v3041_v13 = vadd.f32 %v3037_v12, %v5823_v54  ;;  %v3198_v12 = vld [vmem:[%s7242_s7 + $0x50] sm:$0xff] (%p1023_p0) }
0x118d   : > { %v3042_v8 = vmul.f32 0.5, %v3040_v31  ;;  %v6868_v26 = vpack.c.bf16 (%p1023_p0), %v3198_v12, %v3196_v56  ;;  %v3175_v31 = vld [vmem:[%s7241_s5 + $0x18] sm:$0xff] (%p1023_p0) }
0x118e   : > { %5468 = vtanh.f32 %v3041_v13  ;;  %v3043_v37 = vmul.f32 0.5, %v3041_v13  ;;  %v3201_v13 = vld [vmem:[%s7242_s7 + $0x68] sm:$0xff] (%p1023_p0) }
0x118f   : > { %5470 = vtanh.f32 %v3042_v8 }
0x1198   : > { %v5469_v30 = vpop.eup %5468 }
0x1199   : > { %3053 = vrot.lane.b32.xlu1 %v5469_v30, %s5585_s6  ;;  %v5471_v14 = vpop.eup %5470  ;;  %v6872_v30 = vpack.c.bf16 (%p1023_p0), %v3203_v22, %v3201_v13 }
0x119a   : > { %v3046_v35 = vmul.f32 0.5, %v5471_v14 }
0x119b   : > { %v2881_v63 = vpop.permute.xlu0 %2880 }
0x119c   : > { %v2883_v6 = vmul.f32 %v2881_v63, %v2875_v20  ;;  %v3048_v27 = vadd.f32 0.5, %v3046_v35  ;;  %v3200_v20 = vld [vmem:[%s7242_s7 + $0x60] sm:$0xff] (%p1023_p0)  ;;  %v3202_v63 = vld [vmem:[%s7242_s7 + $0x70] sm:$0xff] (%p1023_p0) }
0x119d   :  { %v6888_v8 = vpack.c.bf16 (%p1023_p0), %v3202_v63, %v3200_v20  ;;  %v3172_v35 = vld [vmem:[%s7241_s5] sm:$0xff] (%p1023_p0) }
0x119e   : > { %2885 = vrot.lane.b32.xlu0 %v2883_v6, %s5585_s6  ;;  %v3051_v55 = vmul.f32 %v3048_v27, %v6745_v29  ;;  %v3173_v6 = vld [vmem:[%s7241_s5 + $0x8] sm:$0xff] (%p1023_p0) }
0x119f   :  { %v6892_v14 = vpack.c.bf16 (%p1023_p0), %v3175_v31, %v3173_v6 }
0x120b   : > { %v3054_v41 = vpop.permute.xlu1 %3053 }
0x120c   : > { %v3056_v19 = vmul.f32 %v3054_v41, %v3048_v27  ;;  %v3174_v27 = vld [vmem:[%s7241_s5 + $0x10] sm:$0xff] (%p1023_p0) }
0x120e   : > { %3058 = vrot.lane.b32.xlu1 %v3056_v19, %s5585_s6  ;;  %v3179_v19 = vld [vmem:[%s7241_s5 + $0x38] sm:$0xff] (%p1023_p0) }
0x1210   : > { %v2886_v61 = vpop.permute.xlu0 %2885 }
0x1211   : > { %v6777_v51 = vadd.f32 %v2886_v61, %v2878_v1   ;;  %v6910_v1 = vpack.c.bf16 (%p1023_p0), %v3174_v27, %v3172_v35 }
0x1213   : > { %v7260_v39 = vmov %v6777_v51 }
0x1214   : > { %5472 = vtanh.f32 %v7260_v39  ;;  %v7266_v51 = vmov %v7260_v39 }
0x1215   : > { %5474 = vtanh.f32 %v2870_v36  ;;  %v3193_v51 = vld [vmem:[%s7242_s7 + $0x28] sm:$0xff] (%p1023_p0)  ;;  %v3178_v36 = vld [vmem:[%s7241_s5 + $0x30] sm:$0xff] (%p1023_p0) }
0x121e   : > { %v5473_v58 = vpop.eup %5472 }
0x121f   : > { %2891 = vrot.lane.b32.xlu0 %v5473_v58, %s5585_s6  ;;  %v5475_v7 = vpop.eup %5474  ;;  %v3176_v58 = vld [vmem:[%s7241_s5 + $0x20] sm:$0xff] (%p1023_p0) }
0x1220   : > { %v2874_v2 = vmul.f32 0.5, %v5475_v7  ;;  %v6933_v7 = vpack.c.bf16 (%p1023_p0), %v3178_v36, %v3176_v58 }
0x1222   : > { %v2876_v18 = vadd.f32 0.5, %v2874_v2 }
0x1280   : > { %v3059_v60 = vpop.permute.xlu1 %3058 }
0x1281   : > { %v6782_v42 = vadd.f32 %v3059_v60, %v3051_v55   ;;  %v3181_v55 = vld [vmem:[%s7241_s5 + $0x48] sm:$0xff] (%p1023_p0)  ;;  %v3183_v60 = vld [vmem:[%s7241_s5 + $0x58] sm:$0xff] (%p1023_p0) }
0x1282   :  { %v6937_v2 = vpack.c.bf16 (%p1023_p0), %v3183_v60, %v3181_v55 }
0x1283   : > { %v7261_v49 = vmov %v6782_v42 }
0x1284   : > { %5476 = vtanh.f32 %v7261_v49  ;;  %v7264_v42 = vmov %v7261_v49 }
0x1285   : > { %5478 = vtanh.f32 %v3043_v37  ;;  %v3190_v42 = vld [vmem:[%s7242_s7 + $0x10] sm:$0xff] (%p1023_p0)  ;;  %v3187_v37 = vld [vmem:[%s7241_s5 + $0x78] sm:$0xff] (%p1023_p0) }
0x1286   :  { %v6830_v17 = vpack.c.bf16 (%p1023_p0), %v3190_v42, %v3188_v57 }
0x1288   :  { %5084 = vmatpush1.bf16.msra.mxu1 (%p1023_p0), %v6830_v17 }
0x128e   : > { %v5477_v11 = vpop.eup %5476 }
0x128f   : > { %3064 = vrot.lane.b32.xlu1 %v5477_v11, %s5585_s6  ;;  %v5479_v34 = vpop.eup %5478  ;;  %v3180_v11 = vld [vmem:[%s7241_s5 + $0x40] sm:$0xff] (%p1023_p0) }
0x1290   : > { %v3047_v40 = vmul.f32 0.5, %v5479_v34 }
0x1291   : > { %v2892_v59 = vpop.permute.xlu0 %2891 }
0x1292   : > { %v6786_v41 = vmul.f32 %v2892_v59, %v2876_v18   ;;  %v3049_v45 = vadd.f32 0.5, %v3047_v40  ;;  %v3182_v18 = vld [vmem:[%s7241_s5 + $0x50] sm:$0xff] (%p1023_p0)  ;;  %v3185_v59 = vld [vmem:[%s7241_s5 + $0x68] sm:$0xff] (%p1023_p0) }
0x1293   :  { %v6954_v34 = vpack.c.bf16 (%p1023_p0), %v3182_v18, %v3180_v11  ;;  %v6957_v40 = vpack.c.bf16 (%p1023_p0), %v3187_v37, %v3185_v59 }
0x1294   : > { %v7262_v47 = vmov %v6786_v41 }
0x1295   : > { %v7267_v41 = vmov %v7262_v47  ;;  %4548 = vmatmul.mubr.msk.f32.vlgmr.msra.gmra.mrb[0].mxu0 (%p1023_p0), %vm918_vm0, %v7262_v47 }
0x1296   :  { %v3177_v41 = vld [vmem:[%s7241_s5 + $0x28] sm:$0xff] (%p1023_p0)  ;;  %5116 = vmatpush1.bf16.msra.mxu0 (%p1023_p0), %v5699_v9  ;;  %3446 = vmatprep.mubr.f32.mxu0 (%p1023_p0), %v5580_v3 }
0x1297   :  { %v6913_v61 = vpack.c.bf16 (%p1023_p0), %v3179_v19, %v3177_v41  ;;  %5118 = vmatprep.subr.bf16.mxu0 (%p1023_p0), %v5701_v10 }
0x129a   :  { %5120 = vmatpush1.bf16.msra.mxu0 (%p1023_p0), %v5717_v15 }
0x129b   :  { %5122 = vmatprep.subr.bf16.mxu0 (%p1023_p0), %v5720_v16 }
0x129e   :  { %5124 = vmatpush1.bf16.msra.mxu0 (%p1023_p0), %v5741_v23 }
0x129f   :  { %5126 = vmatprep.subr.bf16.mxu0 (%p1023_p0), %v5744_v24 }
0x12a2   :  { %5128 = vmatpush1.bf16.msra.mxu0 (%p1023_p0), %v5756_v28 }
0x12a3   :  { %5130 = vmatprep.subr.bf16.mxu0 (%p1023_p0), %v6817_v4 }
0x12ff   :  { %1025 = sbr.rel (!%p1023_p0) target bundleno = 614 (0x266), region = 102 }
0x1301   : > { %v3065_v29 = vpop.permute.xlu1 %3064 }
0x1302   : > { %v6788_v43 = vmul.f32 %v3065_v29, %v3049_v45   ;;  %v3184_v45 = vld [vmem:[%s7241_s5 + $0x60] sm:$0xff] (%p1023_p0)  ;;  %v3186_v29 = vld [vmem:[%s7241_s5 + $0x70] sm:$0xff] (%p1023_p0) }
0x1304   : > { %v7263_v50 = vmov %v6788_v43 }
0x1305   : > { %v7265_v43 = vmov %v7263_v50 }
0x1306   :  { %v3195_v43 = vld [vmem:[%s7242_s7 + $0x38] sm:$0xff] }
0x1307   :  { %v6832_v46 = vpack.c.bf16 %v3195_v43, %v3193_v51 }
0x1309   :  { %5086 = vmatprep.subr.bf16.mxu1 %v6832_v46 }
0x130a   :  { %5088 = vmatpush1.bf16.msra.mxu1 %v6848_v44 }
0x130b   :  { %5090 = vmatprep.subr.bf16.mxu1 %v6852_v0 }
0x130e   :  { %5092 = vmatpush1.bf16.msra.mxu1 %v6868_v26 }
0x130f   :  { %5094 = vmatprep.subr.bf16.mxu1 %v6872_v30 }
0x1312   :  { %5096 = vmatpush1.bf16.msra.mxu1 %v6888_v8 }
0x1313   :  { %5098 = vmatprep.subr.bf16.mxu1 %v6892_v14 }
0x1315   :  { %4549 = vmatmul.mubr.msk.f32.vlgmr.msra.gmra.mrb[0].mxu1 %vm918_vm0, %v7263_v50  ;;  %v6968_v50 = vpack.c.bf16 %v3186_v29, %v3184_v45 }
0x1316   :  { %5100 = vmatpush1.bf16.msra.mxu1 %v6910_v1  ;;  %3342 = vmatprep.mubr.f32.mxu1 %v5580_v3 }
0x1317   :  { %5102 = vmatprep.subr.bf16.mxu1 %v6913_v61 }
0x131a   :  { %5104 = vmatpush1.bf16.msra.mxu1 %v6933_v7 }
0x131b   :  { %5106 = vmatprep.subr.bf16.mxu1 %v6937_v2 }
0x131e   :  { %5108 = vmatpush1.bf16.msra.mxu1 %v6954_v34 }
0x131f   :  { %5110 = vmatprep.subr.bf16.mxu1 %v6957_v40 }
0x1322   :  { %5112 = vmatpush1.bf16.msra.mxu1 %v6968_v50 }
0x1323   :  { %5162 = vmatprep.subr.bf16.mxu1 %v5687_v5  ;;  %v3069_v5 = vld [vmem:[#allocation2 + $0x398] sm:$0xff] }
0x1325   :  { %4550 = vmatmul.mubr.msk.f32.vlgmr.msra.gmra.mrb[0].mxu1 %vm918_vm0, %v7262_v47 }
0x1326   :  { %5164 = vmatpush1.bf16.msra.mxu1 %v5699_v9  ;;  %3723 = vmatprep.mubr.f32.mxu1 %v5580_v3 }
0x1327   :  { %5166 = vmatprep.subr.bf16.mxu1 %v5701_v10 }
0x132a   :  { %5168 = vmatpush1.bf16.msra.mxu1 %v5717_v15 }
0x132b   :  { %5170 = vmatprep.subr.bf16.mxu1 %v5720_v16 }
0x132e   :  { %5172 = vmatpush1.bf16.msra.mxu1 %v5741_v23 }
0x132f   :  { %5174 = vmatprep.subr.bf16.mxu1 %v5744_v24  ;;  %v3068_v24 = vld [vmem:[#allocation2 + $0x390] sm:$0xff] }
0x1332   :  { %5176 = vmatpush1.bf16.msra.mxu1 %v5756_v28 }
0x1333   :  { %5178 = vmatprep.subr.bf16.mxu1 %v6817_v4 }
0x1368   :  { %v3139_v47 = vpop.f32.mrb[0].mxu0 }
0x1369   :  { %v3141_v32 = vpop.f32.mrb[1].mxu0  ;;  %v3144_v28 = vadd.f32 %v3139_v47, %v3068_v24  ;;  %v3377_v24 = vld [vmem:[#allocation2 + $0x3a0] sm:$0xff] }
0x136a   :  { %v3145_v9 = vadd.f32 %v3141_v32, %v3069_v5 }
0x136b   :  { %v3146_v57 = vmul.f32 0.5, %v3144_v28 }
0x136c   :  { %5480 = vtanh.f32 %v3145_v9  ;;  %v3147_v36 = vmul.f32 0.5, %v3145_v9 }
0x1376   :  { %v5481_v62 = vpop.eup %5480 }
0x1377   :  { %3157 = vrot.lane.b32.xlu0 %v5481_v62, %s5582_s2 }
0x13e9   :  { %v3158_v38 = vpop.permute.xlu0 %3157 }
0x13f8   :  { %v3344_v10 = vpop.f32.mrb[0].mxu1 }
0x13f9   :  { %v3346_v15 = vpop.f32.mrb[1].mxu1  ;;  %v3349_v51 = vadd.f32 %v3344_v10, %v5821_v52 }
0x13fa   :  { %v3350_v16 = vadd.f32 %v3346_v15, %v5823_v54 }
0x13fb   :  { %v3351_v25 = vmul.f32 0.5, %v3349_v51 }
0x13fc   :  { %5482 = vtanh.f32 %v3350_v16  ;;  %v3352_v60 = vmul.f32 0.5, %v3350_v16 }
0x13fd   :  { %5484 = vtanh.f32 %v3146_v57 }
0x13fe   :  { %5486 = vtanh.f32 %v3351_v25 }
0x1406   :  { %v5483_v23 = vpop.eup %5482 }
0x1407   :  { %3362 = vrot.lane.b32.xlu0 %v5483_v23, %s5582_s2  ;;  %v5485_v42 = vpop.eup %5484 }
0x1408   :  { %v3150_v43 = vmul.f32 0.5, %v5485_v42  ;;  %v5487_v56 = vpop.eup %5486 }
0x1409   :  { %v3355_v12 = vmul.f32 0.5, %v5487_v56 }
0x140a   :  { %v3152_v33 = vadd.f32 0.5, %v3150_v43 }
0x140b   :  { %v3357_v13 = vadd.f32 0.5, %v3355_v12 }
0x140c   :  { %v3160_v21 = vmul.f32 %v3158_v38, %v3152_v33  ;;  %v3155_v63 = vmul.f32 %v3152_v33, %v7260_v39 }
0x140d   :  { %v3360_v27 = vmul.f32 %v3357_v13, %v7261_v49 }
0x140e   :  { %3162 = vrot.lane.b32.xlu1 %v3160_v21, %s5582_s2 }
0x1479   :  { %v3363_v22 = vpop.permute.xlu0 %3362 }
0x147a   :  { %v3365_v20 = vmul.f32 %v3363_v22, %v3357_v13 }
0x147c   :  { %3367 = vrot.lane.b32.xlu1 %v3365_v20, %s5582_s2 }
0x1480   :  { %v3163_v6 = vpop.permute.xlu1 %3162 }
0x1481   :  { %v6993_v31 = vadd.f32 %v3163_v6, %v3155_v63 }
0x1483   :  { %5488 = vtanh.f32 %v6993_v31 }
0x148d   :  { %v5489_v35 = vpop.eup %5488 }
0x148e   :  { %3168 = vrot.lane.b32.xlu0 %v5489_v35, %s5582_s2 }
0x14ee   :  { %v3368_v41 = vpop.permute.xlu1 %3367 }
0x14ef   :  { %v6998_v19 = vadd.f32 %v3368_v41, %v3360_v27 }
0x14f1   :  { %5490 = vtanh.f32 %v6998_v19 }
0x14f2   :  { %5492 = vtanh.f32 %v3147_v36 }
0x14f3   :  { %5494 = vtanh.f32 %v3352_v60 }
0x14fb   :  { %v5491_v58 = vpop.eup %5490 }
0x14fc   :  { %3373 = vrot.lane.b32.xlu1 %v5491_v58, %s5582_s2  ;;  %v5493_v39 = vpop.eup %5492 }
0x14fd   :  { %v3151_v55 = vmul.f32 0.5, %v5493_v39  ;;  %v5495_v49 = vpop.eup %5494 }
0x14fe   :  { %v3356_v37 = vmul.f32 0.5, %v5495_v49 }
0x14ff   :  { %v3153_v11 = vadd.f32 0.5, %v3151_v55 }
0x1500   :  { %v3169_v18 = vpop.permute.xlu0 %3168  ;;  %v3358_v45 = vadd.f32 0.5, %v3356_v37 }
0x1501   :  { %v3171_v59 = vmul.f32 %v3169_v18, %v3153_v11 }
0x1503   :  { %4551 = vmatmul.mubr.msk.f32.vlgmr.msra.gmra.mrb[2].mxu0 %vm918_vm0, %v3171_v59 }
0x1504   :  { %5132 = vmatpush1.bf16.msra.mxu0 %v6830_v17  ;;  %3548 = vmatprep.mubr.f32.mxu0 %v5580_v3 }
0x1505   :  { %5134 = vmatprep.subr.bf16.mxu0 %v6832_v46 }
0x1508   :  { %5136 = vmatpush1.bf16.msra.mxu0 %v6848_v44 }
0x1509   :  { %5138 = vmatprep.subr.bf16.mxu0 %v6852_v0 }
0x150c   :  { %5140 = vmatpush1.bf16.msra.mxu0 %v6868_v26 }
0x150d   :  { %5142 = vmatprep.subr.bf16.mxu0 %v6872_v30 }
0x1510   :  { %5144 = vmatpush1.bf16.msra.mxu0 %v6888_v8 }
0x1511   :  { %5146 = vmatprep.subr.bf16.mxu0 %v6892_v14 }
0x156e   :  { %v3374_v29 = vpop.permute.xlu1 %3373 }
0x156f   :  { %v3376_v5 = vmul.f32 %v3374_v29, %v3358_v45 }
0x1571   :  { %4552 = vmatmul.mubr.msk.f32.vlgmr.msra.gmra.mrb[4].mxu0 %vm918_vm0, %v3376_v5 }
0x1572   :  { %5148 = vmatpush1.bf16.msra.mxu0 %v6910_v1  ;;  %3619 = vmatprep.mubr.f32.mxu0 %v5580_v3 }
0x1573   :  { %5150 = vmatprep.subr.bf16.mxu0 %v6913_v61 }
0x1576   :  { %5152 = vmatpush1.bf16.msra.mxu0 %v6933_v7 }
0x1577   :  { %5154 = vmatprep.subr.bf16.mxu0 %v6937_v2 }
0x157a   :  { %5156 = vmatpush1.bf16.msra.mxu0 %v6954_v34 }
0x157b   :  { %5158 = vmatprep.subr.bf16.mxu0 %v6957_v40 }
0x157e   :  { %5160 = vmatpush1.bf16.msra.mxu0 %v6968_v50 }
0x157f   :  { %5210 = vmatprep.subr.bf16.mxu0 %v6817_v4  ;;  %v3378_v4 = vld [vmem:[#allocation2 + $0x3a8] sm:$0xff] }
0x1581   :  { %4553 = vmatmul.mubr.msk.f32.vlgmr.msra.gmra.mrb[4].mxu0 %vm918_vm0, %v3171_v59 }
0x1582   :  { %5212 = vmatpush1.bf16.msra.mxu0 %v6830_v17  ;;  %3998 = vmatprep.mubr.f32.mxu0 %v5580_v3 }
0x1583   :  { %5214 = vmatprep.subr.bf16.mxu0 %v6832_v46 }
0x1586   :  { %5216 = vmatpush1.bf16.msra.mxu0 %v6848_v44 }
0x1587   :  { %5218 = vmatprep.subr.bf16.mxu0 %v6852_v0 }
0x158a   :  { %5220 = vmatpush1.bf16.msra.mxu0 %v6868_v26 }
0x158b   :  { %5222 = vmatprep.subr.bf16.mxu0 %v6872_v30 }
0x158e   :  { %5224 = vmatpush1.bf16.msra.mxu0 %v6888_v8 }
0x158f   :  { %5226 = vmatprep.subr.bf16.mxu0 %v6892_v14 }
0x15d6   :  { %v3448_v47 = vpop.f32.mrb[2].mxu0 }
0x15d7   :  { %v3450_v32 = vpop.f32.mrb[3].mxu0  ;;  %v3453_v28 = vadd.f32 %v3448_v47, %v3377_v24  ;;  %v3654_v47 = vld [vmem:[#allocation2 + $0x3b0] sm:$0xff] }
0x15d8   :  { %v3454_v9 = vadd.f32 %v3450_v32, %v3378_v4 }
0x15d9   :  { %v3455_v57 = vmul.f32 0.5, %v3453_v28 }
0x15da   :  { %5496 = vtanh.f32 %v3454_v9  ;;  %v3456_v55 = vmul.f32 0.5, %v3454_v9 }
0x15e4   :  { %v5497_v62 = vpop.eup %5496 }
0x15e5   :  { %3466 = vrot.lane.b32.xlu0 %v5497_v62, %s5582_s2 }
0x1654   :  { %v3621_v10 = vpop.f32.mrb[4].mxu0 }
0x1655   :  { %v3623_v15 = vpop.f32.mrb[5].mxu0  ;;  %v3626_v38 = vadd.f32 %v3621_v10, %v5821_v52 }
0x1656   :  { %v3627_v16 = vadd.f32 %v3623_v15, %v5823_v54 }
0x1657   :  { %v3467_v25 = vpop.permute.xlu0 %3466  ;;  %v3628_v21 = vmul.f32 0.5, %v3626_v38 }
0x1658   :  { %5498 = vtanh.f32 %v3627_v16 }
0x1659   :  { %5500 = vtanh.f32 %v3455_v57 }
0x165a   :  { %5502 = vtanh.f32 %v3628_v21 }
0x1662   :  { %v5499_v23 = vpop.eup %5498 }
0x1663   :  { %3639 = vrot.lane.b32.xlu1 %v5499_v23, %s5582_s2  ;;  %v5501_v42 = vpop.eup %5500 }
0x1664   :  { %v3459_v51 = vmul.f32 0.5, %v5501_v42  ;;  %v5503_v56 = vpop.eup %5502 }
0x1665   :  { %v3632_v12 = vmul.f32 0.5, %v5503_v56 }
0x1666   :  { %v3461_v43 = vadd.f32 0.5, %v3459_v51 }
0x1667   :  { %v3634_v13 = vadd.f32 0.5, %v3632_v12 }
0x1668   :  { %v3469_v33 = vmul.f32 %v3467_v25, %v3461_v43  ;;  %v3464_v63 = vmul.f32 %v3461_v43, %v6993_v31 }
0x1669   :  { %v3637_v41 = vmul.f32 %v3634_v13, %v6998_v19  ;;  %v3629_v19 = vmul.f32 0.5, %v3627_v16 }
0x166a   :  { %3471 = vrot.lane.b32.xlu0 %v3469_v33, %s5582_s2 }
0x16d5   :  { %v3640_v22 = vpop.permute.xlu1 %3639 }
0x16d6   :  { %v3642_v20 = vmul.f32 %v3640_v22, %v3634_v13 }
0x16d8   :  { %3644 = vrot.lane.b32.xlu1 %v3642_v20, %s5582_s2 }
0x16dc   :  { %v3472_v6 = vpop.permute.xlu0 %3471 }
0x16dd   :  { %v7039_v35 = vadd.f32 %v3472_v6, %v3464_v63 }
0x16df   :  { %5504 = vtanh.f32 %v7039_v35 }
0x16e9   :  { %v5505_v27 = vpop.eup %5504 }
0x16ea   :  { %3477 = vrot.lane.b32.xlu0 %v5505_v27, %s5582_s2 }
0x174a   :  { %v3645_v58 = vpop.permute.xlu1 %3644 }
0x174b   :  { %v7044_v36 = vadd.f32 %v3645_v58, %v3637_v41 }
0x174d   :  { %5506 = vtanh.f32 %v7044_v36 }
0x174e   :  { %5508 = vtanh.f32 %v3456_v55 }
0x174f   :  { %5510 = vtanh.f32 %v3629_v19 }
0x1757   :  { %v5507_v39 = vpop.eup %5506 }
0x1758   :  { %3650 = vrot.lane.b32.xlu1 %v5507_v39, %s5582_s2  ;;  %v5509_v31 = vpop.eup %5508 }
0x1759   :  { %v3460_v60 = vmul.f32 0.5, %v5509_v31  ;;  %v5511_v49 = vpop.eup %5510 }
0x175b   :  { %v3462_v11 = vadd.f32 0.5, %v3460_v60 }
0x175c   :  { %v3478_v18 = vpop.permute.xlu0 %3477 }
0x175d   :  { %v3480_v59 = vmul.f32 %v3478_v18, %v3462_v11 }
0x175f   :  { %4554 = vmatmul.mubr.msk.f32.vlgmr.msra.gmra.mrb[2].mxu1 %vm918_vm0, %v3480_v59 }
0x1760   :  { %5180 = vmatpush1.bf16.msra.mxu1 %v6830_v17  ;;  %3825 = vmatprep.mubr.f32.mxu1 %v5580_v3  ;;  %v3633_v17 = vmul.f32 0.5, %v5511_v49 }
0x1761   :  { %5182 = vmatprep.subr.bf16.mxu1 %v6832_v46  ;;  %v3655_v46 = vld [vmem:[#allocation2 + $0x3b8] sm:$0xff] }
0x1762   :  { %v3635_v37 = vadd.f32 0.5, %v3633_v17  ;;  %v4108_v17 = vld [vmem:[%s7243_s8] sm:$0xff] }
0x1764   :  { %5184 = vmatpush1.bf16.msra.mxu1 %v6848_v44 }
0x1765   :  { %5186 = vmatprep.subr.bf16.mxu1 %v6852_v0 }
0x1768   :  { %5188 = vmatpush1.bf16.msra.mxu1 %v6868_v26 }
0x1769   :  { %5190 = vmatprep.subr.bf16.mxu1 %v6872_v30 }
0x176c   :  { %5192 = vmatpush1.bf16.msra.mxu1 %v6888_v8 }
0x176d   :  { %5194 = vmatprep.subr.bf16.mxu1 %v6892_v14 }
0x17ca   :  { %v3651_v45 = vpop.permute.xlu1 %3650 }
0x17cb   :  { %v3653_v29 = vmul.f32 %v3651_v45, %v3635_v37  ;;  %v5586_v37 = vmov 0.0|0.0  }
0x17cd   :  { %4555 = vmatmul.mubr.msk.f32.vlgmr.msra.gmra.mrb[4].mxu1 %vm918_vm0, %v3653_v29  ;;  %v4111_v29 = vld [vmem:[%s7243_s8 + $0x18] sm:$0xff] }
0x17ce   :  { %5196 = vmatpush1.bf16.msra.mxu1 %v6910_v1  ;;  %3896 = vmatprep.mubr.f32.mxu1 %v5580_v3 }
0x17cf   :  { %5198 = vmatprep.subr.bf16.mxu1 %v6913_v61 }
0x17d2   :  { %5200 = vmatpush1.bf16.msra.mxu1 %v6933_v7 }
0x17d3   :  { %5202 = vmatprep.subr.bf16.mxu1 %v6937_v2 }
0x17d6   :  { %5204 = vmatpush1.bf16.msra.mxu1 %v6954_v34 }
0x17d7   :  { %5206 = vmatprep.subr.bf16.mxu1 %v6957_v40 }
0x17da   :  { %5208 = vmatpush1.bf16.msra.mxu1 %v6968_v50 }
0x17db   :  { %5241 = vmatprep.subr.bf16.mxu1 %v5586_v37 }
0x17dd   :  { %4556 = vmatmul.mubr.msk.f32.vlgmr.msra.gmra.mrb[4].mxu1 %vm918_vm0, %v3480_v59 }
0x17de   :  { %4653 = vmatprep.mubr.msk.f32.mxu1 %vm5583_vm3, %v5580_v3 }
0x1832   :  { %v3725_v44 = vpop.f32.mrb[2].mxu1 }
0x1833   :  { %v3727_v0 = vpop.f32.mrb[3].mxu1  ;;  %v3730_v32 = vadd.f32 %v3725_v44, %v3654_v47  ;;  %v4112_v44 = vld [vmem:[%s7243_s8 + $0x20] sm:$0xff] }
0x1834   :  { %v3731_v26 = vadd.f32 %v3727_v0, %v3655_v46  ;;  %v4113_v0 = vld [vmem:[%s7243_s8 + $0x28] sm:$0xff] }
0x1835   :  { %v3732_v9 = vmul.f32 0.5, %v3730_v32  ;;  %v4205_v32 = vld [vmem:[%s7246_s11] sm:$0xff] }
0x1836   :  { %5512 = vtanh.f32 %v3731_v26  ;;  %v3733_v27 = vmul.f32 0.5, %v3731_v26  ;;  %v5248_v26 = vpack.c.bf16 %v4113_v0, %v4112_v44 }
0x1840   :  { %v5513_v30 = vpop.eup %5512 }
0x1841   :  { %3743 = vrot.lane.b32.xlu1 %v5513_v30, %s5582_s2 }
0x18b0   :  { %v3898_v8 = vpop.f32.mrb[4].mxu1 }
0x18b1   :  { %v3900_v14 = vpop.f32.mrb[5].mxu1  ;;  %v3903_v24 = vadd.f32 %v3898_v8, %v5821_v52  ;;  %v4114_v8 = vld [vmem:[%s7243_s8 + $0x30] sm:$0xff] }
0x18b2   :  { %v3904_v5 = vadd.f32 %v3900_v14, %v5823_v54  ;;  %v4115_v14 = vld [vmem:[%s7243_s8 + $0x38] sm:$0xff] }
0x18b3   :  { %v3744_v16 = vpop.permute.xlu1 %3743  ;;  %v3905_v28 = vmul.f32 0.5, %v3903_v24  ;;  %v4210_v24 = vld [vmem:[%s7246_s11 + $0x28] sm:$0xff] }
0x18b4   :  { %5514 = vtanh.f32 %v3904_v5  ;;  %v3906_v63 = vmul.f32 0.5, %v3904_v5 }
0x18b5   :  { %5516 = vtanh.f32 %v3732_v9  ;;  %v4206_v9 = vld [vmem:[%s7246_s11 + $0x8] sm:$0xff] }
0x18b6   :  { %5518 = vtanh.f32 %v3905_v28 }
0x18be   :  { %v5515_v4 = vpop.eup %5514 }
0x18bf   :  { %3916 = vrot.lane.b32.xlu0 %v5515_v4, %s5582_s2  ;;  %v5517_v62 = vpop.eup %5516  ;;  %v5251_v4 = vpack.c.bf16 %v4115_v14, %v4114_v8 }
0x18c0   :  { %v3736_v10 = vmul.f32 0.5, %v5517_v62  ;;  %v5519_v57 = vpop.eup %5518  ;;  %v5254_v62 = vpack.c.bf16 %v4206_v9, %v4205_v32 }
0x18c1   :  { %v3909_v42 = vmul.f32 0.5, %v5519_v57 }
0x18c2   :  { %v3738_v15 = vadd.f32 0.5, %v3736_v10  ;;  %v4207_v10 = vld [vmem:[%s7246_s11 + $0x10] sm:$0xff] }
0x18c3   :  { %v3911_v51 = vadd.f32 0.5, %v3909_v42 }
0x18c4   :  { %v3746_v23 = vmul.f32 %v3744_v16, %v3738_v15  ;;  %v3741_v33 = vmul.f32 %v3738_v15, %v7039_v35  ;;  %v4208_v15 = vld [vmem:[%s7246_s11 + $0x18] sm:$0xff] }
0x18c5   :  { %v3914_v12 = vmul.f32 %v3911_v51, %v7044_v36  ;;  %v5257_v16 = vpack.c.bf16 %v4208_v15, %v4207_v10 }
0x18c6   :  { %3748 = vrot.lane.b32.xlu1 %v3746_v23, %s5582_s2  ;;  %v4209_v23 = vld [vmem:[%s7246_s11 + $0x20] sm:$0xff] }
0x18c7   :  { %v5260_v28 = vpack.c.bf16 %v4210_v24, %v4209_v23 }
0x1931   :  { %v3917_v43 = vpop.permute.xlu0 %3916 }
0x1932   :  { %v3919_v25 = vmul.f32 %v3917_v43, %v3911_v51 }
0x1934   :  { %3921 = vrot.lane.b32.xlu0 %v3919_v25, %s5582_s2 }
0x1938   :  { %v3749_v38 = vpop.permute.xlu1 %3748 }
0x1939   :  { %v3751_v21 = vadd.f32 %v3749_v38, %v3741_v33  ;;  %v4197_v33 = vld [vmem:[%s7245_s10] sm:$0xff]  ;;  %v4198_v38 = vld [vmem:[%s7245_s10 + $0x8] sm:$0xff] }
0x193b   :  { %5520 = vtanh.f32 %v3751_v21 }
0x1945   :  { %v5521_v56 = vpop.eup %5520 }
0x1946   :  { %3754 = vrot.lane.b32.xlu1 %v5521_v56, %s5582_s2 }
0x19a6   :  { %v3922_v13 = vpop.permute.xlu0 %3921 }
0x19a7   :  { %v3924_v22 = vadd.f32 %v3922_v13, %v3914_v12  ;;  %v5266_v12 = vpack.c.bf16 %v4198_v38, %v4197_v33 }
0x19a9   :  { %5522 = vtanh.f32 %v3924_v22 }
0x19aa   :  { %5524 = vtanh.f32 %v3906_v63 }
0x19ab   :  { %5526 = vtanh.f32 %v3733_v27  ;;  %v4202_v27 = vld [vmem:[%s7245_s10 + $0x28] sm:$0xff] }
0x19b3   :  { %v5523_v20 = vpop.eup %5522 }
0x19b4   :  { %3927 = vrot.lane.b32.xlu0 %v5523_v20, %s5582_s2  ;;  %v5525_v6 = vpop.eup %5524  ;;  %v4200_v20 = vld [vmem:[%s7245_s10 + $0x18] sm:$0xff] }
0x19b5   :  { %v3910_v41 = vmul.f32 0.5, %v5525_v6  ;;  %v5527_v36 = vpop.eup %5526  ;;  %v4201_v6 = vld [vmem:[%s7245_s10 + $0x20] sm:$0xff] }
0x19b6   :  { %v3737_v55 = vmul.f32 0.5, %v5527_v36  ;;  %v4203_v36 = vld [vmem:[%s7245_s10 + $0x30] sm:$0xff] }
0x19b7   :  { %v3912_v35 = vadd.f32 0.5, %v3910_v41  ;;  %v5272_v41 = vpack.c.bf16 %v4202_v27, %v4201_v6 }
0x19b8   :  { %v3755_v31 = vpop.permute.xlu1 %3754  ;;  %v3739_v60 = vadd.f32 0.5, %v3737_v55  ;;  %v4204_v55 = vld [vmem:[%s7245_s10 + $0x38] sm:$0xff] }
0x19ba   :  { %v3757_v11 = vmul.f32 %v3755_v31, %v3739_v60  ;;  %v5275_v31 = vpack.c.bf16 %v4204_v55, %v4203_v36  ;;  %v4368_v60 = vld [vmem:[%s7248_s13] sm:$0xff] }
0x1a26   :  { %v3928_v58 = vpop.permute.xlu0 %3927 }
0x1a27   :  { %v3930_v39 = vmul.f32 %v3928_v58, %v3912_v35  ;;  %v4211_v35 = vld [vmem:[%s7246_s11 + $0x30] sm:$0xff]  ;;  %v4212_v58 = vld [vmem:[%s7246_s11 + $0x38] sm:$0xff] }
0x1a29   :  { %4557 = vmatmul.mubr.msk.f32.vlgmr.msra.gmra.mrb[6].mxu0 %vm918_vm0, %v3930_v39  ;;  %v5263_v39 = vpack.c.bf16 %v4212_v58, %v4211_v35 }
0x1a2a   :  { %5228 = vmatpush1.bf16.msra.mxu0 %v6910_v1  ;;  %4072 = vmatprep.mubr.f32.mxu0 %v5580_v3 }
0x1a2b   :  { %5230 = vmatprep.subr.bf16.mxu0 %v6913_v61 }
0x1a2e   :  { %5232 = vmatpush1.bf16.msra.mxu0 %v6933_v7 }
0x1a2f   :  { %5234 = vmatprep.subr.bf16.mxu0 %v6937_v2 }
0x1a32   :  { %5236 = vmatpush1.bf16.msra.mxu0 %v6954_v34 }
0x1a33   :  { %5238 = vmatprep.subr.bf16.mxu0 %v6957_v40 }
0x1a36   :  { %5240 = vmatpush1.bf16.msra.mxu0 %v6968_v50 }
0x1a37   :  { %5253 = vmatprep.subr.bf16.mxu0 %v5586_v37 }
0x1a39   :  { %4558 = vmatmul.mubr.msk.f32.vlgmr.msra.gmra.mrb[6].mxu0 %vm918_vm0, %v3757_v11  ;;  %v4369_v11 = vld [vmem:[%s7248_s13 + $0x8] sm:$0xff] }
0x1a3a   :  { %4672 = vmatprep.mubr.msk.f32.mxu0 %vm5583_vm3, %v5580_v3  ;;  %5255 = vmatpush3.bf16.msra.mxu0 %v5254_v62 }
0x1a3b   :  { %5256 = vmatprep.subr.bf16.mxu0 %v5586_v37 }
0x1a3e   :  { %5258 = vmatpush3.bf16.msra.mxu0 %v5257_v16 }
0x1a3f   :  { %5259 = vmatprep.subr.bf16.mxu0 %v5586_v37 }
0x1a42   :  { %5261 = vmatpush3.bf16.msra.mxu0 %v5260_v28 }
0x1a43   :  { %5262 = vmatprep.subr.bf16.mxu0 %v5586_v37 }
0x1a46   :  { %5264 = vmatpush3.bf16.msra.mxu0 %v5263_v39 }
0x1a47   :  { %5277 = vmatprep.subr.bf16.mxu0 %v5586_v37 }
0x1a49   :  { %4673 = vmatmul.mubr.msk.f32.vlgmr.msra.gmra.mrb[8].mxu0 %vm918_vm0, %v143_v53 }
0x1a4a   :  { %4710 = vmatprep.mubr.msk.f32.mxu0 %vm5583_vm3, %v5580_v3 }
0x1b0c   :  { %v4074_v1 = vpop.f32.mrb[6].mxu0 }
0x1b0d   :  { %v4076_v61 = vpop.f32.mrb[7].mxu0  ;;  %v4079_v34 = vadd.f32 %v4074_v1, %v5821_v52  ;;  %v4110_v52 = vld [vmem:[%s7243_s8 + $0x10] sm:$0xff] }
0x1b0e   :  { %v4080_v7 = vadd.f32 %v4076_v61, %v5823_v54  ;;  %v4109_v54 = vld [vmem:[%s7243_s8 + $0x8] sm:$0xff]  ;;  %v5245_v46 = vpack.c.bf16 %v4111_v29, %v4110_v52  ;;  %v4370_v1 = vld [vmem:[%s7248_s13 + $0x10] sm:$0xff]  ;;  %v5278_v61 = vpack.c.bf16 %v4369_v11, %v4368_v60  ;;  %v4563_v29 = vld [vmem:[%s7247_s12] ss:$0 sm:$0xff] }
0x1b0f   :  { %v4081_v40 = vmul.f32 0.5, %v4079_v34  ;;  %v5242_v45 = vpack.c.bf16 %v4109_v54, %v4108_v17  ;;  %v5281_v53 = vpack.c.bf16 %v4371_v48, %v4370_v1  ;;  %v4374_v17 = vld [vmem:[%s7248_s13 + $0x30] sm:$0xff]  ;;  %v4375_v54 = vld [vmem:[%s7248_s13 + $0x38] sm:$0xff] }
0x1b10   :  { %5528 = vtanh.f32 %v4080_v7  ;;  %v4082_v42 = vmul.f32 0.5, %v4080_v7  ;;  %5279 = vmatpush3.bf16.msra.mxu0 %v5278_v61  ;;  %v4559_v7 = vld [vmem:[%s7244_s9] ss:$0 sm:$0xff]  ;;  %v5287_v52 = vpack.c.bf16 %v4375_v54, %v4374_v17 }
0x1b11   :  { %5530 = vtanh.f32 %v4081_v40  ;;  %5243 = vmatpush3.bf16.msra.mxu1 %v5242_v45  ;;  %5280 = vmatprep.subr.bf16.mxu0 %v5586_v37 }
0x1b12   :  { %5244 = vmatprep.subr.bf16.mxu1 %v5586_v37 }
0x1b14   :  { %5282 = vmatpush3.bf16.msra.mxu0 %v5281_v53 }
0x1b15   :  { %5246 = vmatpush3.bf16.msra.mxu1 %v5245_v46  ;;  %5283 = vmatprep.subr.bf16.mxu0 %v5586_v37 }
0x1b16   :  { %5247 = vmatprep.subr.bf16.mxu1 %v5586_v37 }
0x1b19   :  { %5249 = vmatpush3.bf16.msra.mxu1 %v5248_v26 }
0x1b1a   :  { %v5529_v2 = vpop.eup %5528  ;;  %5250 = vmatprep.subr.bf16.mxu1 %v5586_v37 }
0x1b1b   :  { %4092 = vrot.lane.b32.xlu0 %v5529_v2, %s5582_s2  ;;  %v5531_v18 = vpop.eup %5530 }
0x1b1c   :  { %v4085_v50 = vmul.f32 0.5, %v5531_v18  ;;  %v4372_v18 = vld [vmem:[%s7248_s13 + $0x20] sm:$0xff] }
0x1b1d   :  { %5252 = vmatpush3.bf16.msra.mxu1 %v5251_v4 }
0x1b1e   :  { %v4087_v59 = vadd.f32 0.5, %v4085_v50  ;;  %5265 = vmatprep.subr.bf16.mxu1 %v5586_v37  ;;  %v4373_v50 = vld [vmem:[%s7248_s13 + $0x28] sm:$0xff] }
0x1b20   :  { %v4090_v30 = vmul.f32 %v4087_v59, %v3924_v22  ;;  %v4199_v22 = vld [vmem:[%s7245_s10 + $0x10] sm:$0xff] }
0x1b21   :  { %v5269_v63 = vpack.c.bf16 %v4200_v20, %v4199_v22 }
0x1b8d   :  { %v4093_v19 = vpop.permute.xlu0 %4092 }
0x1b8e   :  { %v4095_v49 = vmul.f32 %v4093_v19, %v4087_v59  ;;  %v5284_v59 = vpack.c.bf16 %v4373_v50, %v4372_v18  ;;  %v4282_v19 = vpop.f32.mrb[8].mxu0 }
0x1b90   :  { %4097 = vrot.lane.b32.xlu1 %v4095_v49, %s5582_s2  ;;  %v4674_v49 = vpop.f32.mrb[9].mxu0  ;;  %5285 = vmatpush3.bf16.msra.mxu0 %v5284_v59 }
0x1b91   :  { %5286 = vmatprep.subr.bf16.mxu0 %v5586_v37 }
0x1b94   :  { %5288 = vmatpush3.bf16.msra.mxu0 %v5287_v52 }
0x1c02   :  { %v4098_v5 = vpop.permute.xlu1 %4097 }
0x1c03   :  { %v4100_v47 = vadd.f32 %v4098_v5, %v4090_v30 }
0x1c05   :  { %5532 = vtanh.f32 %v4100_v47 }
0x1c06   :  { %5534 = vtanh.f32 %v4082_v42 }
0x1c0f   :  { %v5533_v57 = vpop.eup %5532 }
0x1c10   :  { %4103 = vrot.lane.b32.xlu0 %v5533_v57, %s5582_s2  ;;  %v5535_v51 = vpop.eup %5534 }
0x1c11   :  { %v4086_v43 = vmul.f32 0.5, %v5535_v51 }
0x1c13   :  { %v4088_v25 = vadd.f32 0.5, %v4086_v43 }
0x1c82   :  { %v4104_v21 = vpop.permute.xlu0 %4103 }
0x1c83   :  { %v4106_v56 = vmul.f32 %v4104_v21, %v4088_v25 }
0x1c85   :  { %v4107_v13 = vmax.f32 %v4106_v56, 0.0 }
0x1c87   :  { %4654 = vmatmul.mubr.msk.f32.vlgmr.msra.gmra.mrb[6].mxu1 %vm918_vm0, %v4107_v13 }
0x1c88   :  { %5267 = vmatpush3.bf16.msra.mxu1 %v5266_v12  ;;  %4691 = vmatprep.mubr.msk.f32.mxu1 %vm5583_vm3, %v5580_v3 }
0x1c89   :  { %5268 = vmatprep.subr.bf16.mxu1 %v5586_v37 }
0x1c8c   :  { %5270 = vmatpush3.bf16.msra.mxu1 %v5269_v63 }
0x1c8d   :  { %5271 = vmatprep.subr.bf16.mxu1 %v5586_v37 }
0x1c90   :  { %5273 = vmatpush3.bf16.msra.mxu1 %v5272_v41 }
0x1c91   :  { %5274 = vmatprep.subr.bf16.mxu1 %v5586_v37  ;;  %v4564_v37 = vld [vmem:[%s7249_s14] ss:$0 sm:$0xff] }
0x1c94   :  { %5276 = vmatpush3.bf16.msra.mxu1 %v5275_v31 }
0x1d5a   :  { %v4192_v2 = vpop.f32.mrb[6].mxu1 }
0x1d5b   :  { %v4193_v34 = vadd.f32 %v4559_v7, %v4192_v2  ;;  %v4655_v40 = vpop.f32.mrb[7].mxu1 }
0x1d5d   :  { %v4196_v3 = vmax.f32 %v4193_v34, 0.0 }
0x1d5f   :  { %4692 = vmatmul.mubr.msk.f32.vlgmr.msra.gmra.mrb[8].mxu1 %vm918_vm0, %v4196_v3 }
0x1e32   :  { %v4355_v45 = vpop.f32.mrb[8].mxu1 }
0x1e33   :  { %v4356_v46 = vadd.f32 %v4355_v45, %v4282_v19  ;;  %v4693_v44 = vpop.f32.mrb[9].mxu1 }
0x1e35   :  { %v4366_v0 = vadd.f32 %v4563_v29, %v4356_v46 }
0x1e37   :  { %v4367_v26 = vmax.f32 %v4366_v0, 0.0 }
0x1e39   :  { %4711 = vmatmul.mubr.msk.f32.vlgmr.msra.gmra.mrb[10].mxu0 %vm918_vm0, %v4367_v26 }
0x1f0c   :  { %v4452_v30 = vpop.f32.mrb[10].mxu0 }
0x1f0d   :  { %v4453_v8 = vadd.f32 %v4564_v37, %v4452_v30  ;;  %v4712_v14 = vpop.f32.mrb[11].mxu0 }
0x1f0f   :  { %v4456_v5 = vsel %vm65_vm2, %v4453_v8, -inf }
0x1f10   :  { %4457 = vmax.xlane.f32.xlu1 %v4456_v5 }
0x1f9d   :  { %v4458_v4 = vpop.xlane.xlu1 %4457 }
0x1f9e   :  { %v4459_v47 = vsub.f32 %v4453_v8, %v4458_v4 }
0x1fa0   :  { %v4460_v32 = vmul.f32 1.442695, %v4459_v47 }
0x1fa2   :  { %5536 = vpow2.f32 %v4460_v32 }
0x1fac   :  { %v5537_v9 = vpop.eup %5536 }
0x1fad   :  { %v4462_v62 = vsel %vm65_vm2, %v5537_v9, 0.0 }
0x1fae   :  { %4463 = vadd.xlane.f32.xlu0 %v4462_v62 }
0x203b   :  { %v4464_v10 = vpop.xlane.xlu0 %4463 }
0x203c   :  { %5538 = vrcp.f32 %v4464_v10 }
0x2046   :  { %v5539_v15 = vpop.eup %5538 }
0x2047   :  { %v4466_v16 = vmul.f32 %v5539_v15, %v5537_v9 }
0x2049   :  { %4467 = vst.msk [vmem:[%s7250_s17] sm:$0xff] %vm65_vm2, %v4466_v16 }

</bundles_post_ra>
